<compile_context>
chip_gen: v5e
topology: v5e:2x2
jax: 0.10.0
libtpu: 0.0.40
codegen_flags: <defaults>
</compile_context>

<pallas_src>
import math

import jax
import jax.numpy as jnp
from jax.experimental import pallas as pl
from jax.experimental.pallas import tpu as pltpu

# ----- tiny config (stands in for ViT-L-14: 224px/14patch/1024w/16h/24L) -----
IMG_SIZE = 16
PATCH = 8
C_IN = 3
WIDTH = 64
HEADS = 4
LAYERS = 2
MLP_DIM = 4 * WIDTH
GRID_HW = IMG_SIZE // PATCH
N_PATCH = GRID_HW * GRID_HW          # 4
SEQ = N_PATCH + 1                    # 5
SEQ_PAD = 8                          # sublane-aligned padded sequence length
PATCH_DIM = C_IN * PATCH * PATCH     # 192
HEAD_DIM = WIDTH // HEADS            # 16
EPS = 1e-5
MEAN = (0.48145466, 0.4578275, 0.40821073)
STD = (0.26862954, 0.26130258, 0.27577711)


# --------------------------- fused encoder kernel ----------------------------
def _encoder_kernel(xp_ref, wp_ref, base_ref, lnpre_g, lnpre_b,
                    ln1g, ln1b, wq, bq, wk, bk, wv, bv, wo, bo,
                    ln2g, ln2b, w1, b1, w2, b2,
                    lnpost_g, lnpost_b, o_ref):
    f32 = jnp.float32

    def ln(z, g, b):
        mu = jnp.mean(z, axis=-1, keepdims=True)
        var = jnp.mean((z - mu) ** 2, axis=-1, keepdims=True)
        return (z - mu) * jax.lax.rsqrt(var + EPS) * g + b

    M = xp_ref.shape[0]              # N * SEQ_PAD (sublane aligned)
    NB = M // SEQ_PAD

    # patch embed (/255 + mean/std folded into wp/base) + CLS + positional embedding
    x = jnp.dot(xp_ref[...], wp_ref[...], preferred_element_type=f32) + base_ref[...]
    x = ln(x, lnpre_g[...], lnpre_b[...])                        # ln_pre

    # key-padding mask for the padded key columns SEQ..SEQ_PAD-1 (hoisted out of loops)
    kmask = jax.lax.broadcasted_iota(jnp.int32, (NB, SEQ_PAD, SEQ_PAD), 2) < SEQ
    neg_big = jnp.float32(-1e30)

    for l in range(LAYERS):                                      # static layer loop
        # ---- pre-LN multi-head self-attention (torch MHA semantics) ----------
        h = ln(x, ln1g[l], ln1b[l])
        acc = None
        for hh in range(HEADS):                                  # static head loop
            # per-head weights were pre-split at trace time: no in-kernel lane slicing
            qh = jnp.dot(h, wq[l, hh], preferred_element_type=f32) + bq[l, hh]
            kh = jnp.dot(h, wk[l, hh], preferred_element_type=f32) + bk[l, hh]
            vh = jnp.dot(h, wv[l, hh], preferred_element_type=f32) + bv[l, hh]
            q3 = qh.reshape(NB, SEQ_PAD, HEAD_DIM)               # leading/sublane split only
            k3 = kh.reshape(NB, SEQ_PAD, HEAD_DIM)
            v3 = vh.reshape(NB, SEQ_PAD, HEAD_DIM)
            # batched-over-batch attention (q already carries the 1/sqrt(HEAD_DIM) scale)
            s = jnp.einsum('bqd,bkd->bqk', q3, k3, preferred_element_type=f32)
            s = jnp.where(kmask, s, neg_big)
            s = s - jnp.max(s, axis=-1, keepdims=True)
            p = jnp.exp(s)
            p = p * pl.reciprocal(jnp.sum(p, axis=-1, keepdims=True), approx=True)
            ctx = jnp.einsum('bqk,bkd->bqd', p, v3, preferred_element_type=f32)
            # accumulate the output projection per head (replaces the lane-axis concat)
            part = jnp.dot(ctx.reshape(M, HEAD_DIM), wo[l, hh],
                           preferred_element_type=f32)
            acc = part if acc is None else acc + part
        x = x + acc + bo[l]                                      # LayerScale ls_1 == Identity

        # ---- pre-LN MLP with exact (erf) GELU ---------------------------------
        h2 = ln(x, ln2g[l], ln2b[l])
        m = jnp.dot(h2, w1[l], preferred_element_type=f32) + b1[l]
        m = 0.5 * m * (1.0 + jax.lax.erf(m * (1.0 / math.sqrt(2.0))))
        m = jnp.dot(m, w2[l], preferred_element_type=f32) + b2[l]
        x = x + m                                                # LayerScale ls_2 == Identity

    # CLS select + ln_post (padded rows are never read; global_average_pool=False)
    cls = x.reshape(NB, SEQ_PAD, WIDTH)[:, 0, :]
    o_ref[...] = ln(cls, lnpost_g[...], lnpost_b[...])


def _full_spec(a):
    nd = a.ndim

    def idx(i):
        return (0,) * nd

    return pl.BlockSpec(a.shape, idx)


# --------------------------- parameters --------------------------------------
def init_params(key):
    ks = jax.random.split(key, 3 + LAYERS)

    def nrm(k, shape, scale=0.02):
        return scale * jax.random.normal(k, shape, jnp.float32)

    p = {
        "conv1_w": nrm(ks[0], (WIDTH, C_IN, PATCH, PATCH)),   # torch Conv2d weight layout
        "class_embedding": nrm(ks[1], (WIDTH,)),
        "positional_embedding": nrm(ks[2], (SEQ, WIDTH)),
        "ln_pre_g": jnp.ones((WIDTH,), jnp.float32),
        "ln_pre_b": jnp.zeros((WIDTH,), jnp.float32),
        "ln_post_g": jnp.ones((WIDTH,), jnp.float32),
        "ln_post_b": jnp.zeros((WIDTH,), jnp.float32),
        "blocks": [],
    }
    # linear weights stored as (in, out), i.e. already transposed vs torch's (out, in)
    for l in range(LAYERS):
        bk = jax.random.split(ks[3 + l], 4)
        p["blocks"].append(dict(
            ln1_g=jnp.ones((WIDTH,), jnp.float32), ln1_b=jnp.zeros((WIDTH,), jnp.float32),
            wqkv=nrm(bk[0], (WIDTH, 3 * WIDTH)), bqkv=jnp.zeros((3 * WIDTH,), jnp.float32),
            wout=nrm(bk[1], (WIDTH, WIDTH)), bout=jnp.zeros((WIDTH,), jnp.float32),
            ln2_g=jnp.ones((WIDTH,), jnp.float32), ln2_b=jnp.zeros((WIDTH,), jnp.float32),
            w1=nrm(bk[2], (WIDTH, MLP_DIM)), b1=jnp.zeros((MLP_DIM,), jnp.float32),
            w2=nrm(bk[3], (MLP_DIM, WIDTH)), b2=jnp.zeros((WIDTH,), jnp.float32),
        ))
    return p


# --------------------------- forward ------------------------------------------
def clip_encode(x, params):
    N = x.shape[0]
    if x.shape[2:] != (IMG_SIZE, IMG_SIZE):
        # TODO(synk): torch F.interpolate(bicubic, antialias=True) has no exact JAX equivalent
        x = jax.image.resize(x, (N, C_IN, IMG_SIZE, IMG_SIZE), method="cubic")
    assert x.shape[2:] == (IMG_SIZE, IMG_SIZE)
    x = x.astype(jnp.float32)

    # ---- patch extraction (pure layout; == stride-PATCH conv1, (C, ph, pw) flatten) ----
    xp = x.reshape(N, C_IN, GRID_HW, PATCH, GRID_HW, PATCH)
    xp = xp.transpose(0, 2, 4, 1, 3, 5).reshape(N, N_PATCH, PATCH_DIM)
    # scatter patch rows to sequence positions 1..N_PATCH; row 0 (CLS) and rows SEQ.. (pad) = 0
    xp_full = jnp.pad(xp, ((0, 0), (1, SEQ_PAD - 1 - N_PATCH), (0, 0)))
    xp_full = xp_full.reshape(N * SEQ_PAD, PATCH_DIM)

    # ---- fold /255 + per-channel mean/std into the patch-embed weight & bias ----
    std_vec = jnp.repeat(jnp.array(STD, jnp.float32), PATCH * PATCH)      # (PATCH_DIM,)
    mean_vec = jnp.repeat(jnp.array(MEAN, jnp.float32), PATCH * PATCH)
    w_conv = params["conv1_w"].reshape(WIDTH, PATCH_DIM).T                # (PATCH_DIM, WIDTH)
    w_patch = w_conv * (1.0 / (255.0 * std_vec))[:, None]
    b_patch = -(mean_vec / std_vec) @ w_conv                              # (WIDTH,)

    # per-row additive base: CLS row = cls_emb + pos[0]; patch rows = b_patch + pos[1:];
    # padded rows = 0 (so they stay finite and never leak through the masked attention)
    pos = params["positional_embedding"]
    base = jnp.concatenate([
        (params["class_embedding"] + pos[0])[None, :],
        b_patch[None, :] + pos[1:],
        jnp.zeros((SEQ_PAD - SEQ, WIDTH), jnp.float32),
    ], axis=0)                                                            # (SEQ_PAD, WIDTH)
    base = jnp.tile(base, (N, 1))                                         # (N*SEQ_PAD, WIDTH)

    # ---- stack per-layer weights, pre-split heads, fold 1/sqrt(HEAD_DIM) into q ----
    blks = params["blocks"]
    scale = 1.0 / math.sqrt(HEAD_DIM)

    def stack(name):
        return jnp.stack([b[name] for b in blks])

    wqkv = stack("wqkv")                                                  # (L, W, 3W)
    bqkv = stack("bqkv")                                                  # (L, 3W)

    def split_heads_w(w):   # (L, W, W) -> (L, HEADS, W, HEAD_DIM)
        return w.reshape(LAYERS, WIDTH, HEADS, HEAD_DIM).transpose(0, 2, 1, 3)

    def split_heads_b(b):   # (L, W) -> (L, HEADS, 1, HEAD_DIM)
        return b.reshape(LAYERS, HEADS, 1, HEAD_DIM)

    wq = split_heads_w(wqkv[:, :, 0 * WIDTH:1 * WIDTH]) * scale
    wk = split_heads_w(wqkv[:, :, 1 * WIDTH:2 * WIDTH])
    wv = split_heads_w(wqkv[:, :, 2 * WIDTH:3 * WIDTH])
    bq = split_heads_b(bqkv[:, 0 * WIDTH:1 * WIDTH]) * scale
    bk = split_heads_b(bqkv[:, 1 * WIDTH:2 * WIDTH])
    bv = split_heads_b(bqkv[:, 2 * WIDTH:3 * WIDTH])
    wo = stack("wout").reshape(LAYERS, HEADS, HEAD_DIM, WIDTH)            # wout rows per head
    bo = stack("bout")[:, None, :]                                        # (L, 1, W)
    ln1g = stack("ln1_g")[:, None, :]
    ln1b = stack("ln1_b")[:, None, :]
    ln2g = stack("ln2_g")[:, None, :]
    ln2b = stack("ln2_b")[:, None, :]
    w1 = stack("w1")                                                      # (L, W, MLP)
    b1 = stack("b1")[:, None, :]                                          # (L, 1, MLP)
    w2 = stack("w2")                                                      # (L, MLP, W)
    b2 = stack("b2")[:, None, :]                                          # (L, 1, W)

    args = [
        xp_full, w_patch, base,
        params["ln_pre_g"].reshape(1, WIDTH), params["ln_pre_b"].reshape(1, WIDTH),
        ln1g, ln1b, wq, bq, wk, bk, wv, bv, wo, bo,
        ln2g, ln2b, w1, b1, w2, b2,
        params["ln_post_g"].reshape(1, WIDTH), params["ln_post_b"].reshape(1, WIDTH),
    ]
    return pl.pallas_call(
        _encoder_kernel,
        out_shape=jax.ShapeDtypeStruct((N, WIDTH), jnp.float32),
        grid=(1,),                     # whole batch per step: activations stay in VMEM
        in_specs=[_full_spec(a) for a in args],
        out_specs=pl.BlockSpec((N, WIDTH), lambda i: (0, 0)),
        compiler_params=pltpu.CompilerParams(dimension_semantics=("arbitrary",)),
    )(*args)


if __name__ == "__main__":
    key = jax.random.PRNGKey(0)
    pkey, xkey = jax.random.split(key)
    params = init_params(pkey)
    # synthetic "uint8-scale" images, already at model input size
    x = jax.random.uniform(xkey, (2, C_IN, IMG_SIZE, IMG_SIZE), jnp.float32, 0.0, 255.0)
    out = jax.jit(lambda xx: clip_encode(xx, params))(x)
    jax.block_until_ready(out)
    assert out.shape == (2, WIDTH) and out.dtype == jnp.float32
    print("KERNEL_OK")
</pallas_src>

<mosaic_0001>
module attributes {stable_mosaic.version = 11 : i64} {
  func.func @_encoder_kernel(%arg0: i32, %arg1: memref<16x192xf32, #tpu.memory_space<vmem>>, %arg2: memref<192x64xf32, #tpu.memory_space<vmem>>, %arg3: memref<16x64xf32, #tpu.memory_space<vmem>>, %arg4: memref<1x64xf32, #tpu.memory_space<vmem>>, %arg5: memref<1x64xf32, #tpu.memory_space<vmem>>, %arg6: memref<2x1x64xf32, #tpu.memory_space<vmem>>, %arg7: memref<2x1x64xf32, #tpu.memory_space<vmem>>, %arg8: memref<2x4x64x16xf32, #tpu.memory_space<vmem>>, %arg9: memref<2x4x1x16xf32, #tpu.memory_space<vmem>>, %arg10: memref<2x4x64x16xf32, #tpu.memory_space<vmem>>, %arg11: memref<2x4x1x16xf32, #tpu.memory_space<vmem>>, %arg12: memref<2x4x64x16xf32, #tpu.memory_space<vmem>>, %arg13: memref<2x4x1x16xf32, #tpu.memory_space<vmem>>, %arg14: memref<2x4x16x64xf32, #tpu.memory_space<vmem>>, %arg15: memref<2x1x64xf32, #tpu.memory_space<vmem>>, %arg16: memref<2x1x64xf32, #tpu.memory_space<vmem>>, %arg17: memref<2x1x64xf32, #tpu.memory_space<vmem>>, %arg18: memref<2x64x256xf32, #tpu.memory_space<vmem>>, %arg19: memref<2x1x256xf32, #tpu.memory_space<vmem>>, %arg20: memref<2x256x64xf32, #tpu.memory_space<vmem>>, %arg21: memref<2x1x64xf32, #tpu.memory_space<vmem>>, %arg22: memref<1x64xf32, #tpu.memory_space<vmem>>, %arg23: memref<1x64xf32, #tpu.memory_space<vmem>>, %arg24: memref<2x64xf32, #tpu.memory_space<vmem>>) attributes {dimension_semantics = [#tpu.dimension_semantics<arbitrary>], iteration_bounds = array<i64: 1>, scalar_prefetch = 0 : i64, scratch_operands = 0 : i64, tpu.core_type = #tpu.core_type<tc>, window_params = [{pipeline_mode = #tpu.pipeline_mode<synchronous>, transform_indices = @transform_0, window_bounds = array<i64: 16, 192>}, {pipeline_mode = #tpu.pipeline_mode<synchronous>, transform_indices = @transform_1, window_bounds = array<i64: 192, 64>}, {pipeline_mode = #tpu.pipeline_mode<synchronous>, transform_indices = @transform_2, window_bounds = array<i64: 16, 64>}, {pipeline_mode = #tpu.pipeline_mode<synchronous>, transform_indices = @transform_3, window_bounds = array<i64: 1, 64>}, {pipeline_mode = #tpu.pipeline_mode<synchronous>, transform_indices = @transform_4, window_bounds = array<i64: 1, 64>}, {pipeline_mode = #tpu.pipeline_mode<synchronous>, transform_indices = @transform_5, window_bounds = array<i64: 2, 1, 64>}, {pipeline_mode = #tpu.pipeline_mode<synchronous>, transform_indices = @transform_6, window_bounds = array<i64: 2, 1, 64>}, {pipeline_mode = #tpu.pipeline_mode<synchronous>, transform_indices = @transform_7, window_bounds = array<i64: 2, 4, 64, 16>}, {pipeline_mode = #tpu.pipeline_mode<synchronous>, transform_indices = @transform_8, window_bounds = array<i64: 2, 4, 1, 16>}, {pipeline_mode = #tpu.pipeline_mode<synchronous>, transform_indices = @transform_9, window_bounds = array<i64: 2, 4, 64, 16>}, {pipeline_mode = #tpu.pipeline_mode<synchronous>, transform_indices = @transform_10, window_bounds = array<i64: 2, 4, 1, 16>}, {pipeline_mode = #tpu.pipeline_mode<synchronous>, transform_indices = @transform_11, window_bounds = array<i64: 2, 4, 64, 16>}, {pipeline_mode = #tpu.pipeline_mode<synchronous>, transform_indices = @transform_12, window_bounds = array<i64: 2, 4, 1, 16>}, {pipeline_mode = #tpu.pipeline_mode<synchronous>, transform_indices = @transform_13, window_bounds = array<i64: 2, 4, 16, 64>}, {pipeline_mode = #tpu.pipeline_mode<synchronous>, transform_indices = @transform_14, window_bounds = array<i64: 2, 1, 64>}, {pipeline_mode = #tpu.pipeline_mode<synchronous>, transform_indices = @transform_15, window_bounds = array<i64: 2, 1, 64>}, {pipeline_mode = #tpu.pipeline_mode<synchronous>, transform_indices = @transform_16, window_bounds = array<i64: 2, 1, 64>}, {pipeline_mode = #tpu.pipeline_mode<synchronous>, transform_indices = @transform_17, window_bounds = array<i64: 2, 64, 256>}, {pipeline_mode = #tpu.pipeline_mode<synchronous>, transform_indices = @transform_18, window_bounds = array<i64: 2, 1, 256>}, {pipeline_mode = #tpu.pipeline_mode<synchronous>, transform_indices = @transform_19, window_bounds = array<i64: 2, 256, 64>}, {pipeline_mode = #tpu.pipeline_mode<synchronous>, transform_indices = @transform_20, window_bounds = array<i64: 2, 1, 64>}, {pipeline_mode = #tpu.pipeline_mode<synchronous>, transform_indices = @transform_21, window_bounds = array<i64: 1, 64>}, {pipeline_mode = #tpu.pipeline_mode<synchronous>, transform_indices = @transform_22, window_bounds = array<i64: 1, 64>}, {pipeline_mode = #tpu.pipeline_mode<synchronous>, transform_indices = @transform_23, window_bounds = array<i64: 2, 64>}]} {
    %c0 = arith.constant 0 : index
    %c0_0 = arith.constant 0 : index
    %0 = vector.load %arg1[%c0, %c0_0] : memref<16x192xf32, #tpu.memory_space<vmem>>, vector<16x192xf32>
    %c0_1 = arith.constant 0 : index
    %c0_2 = arith.constant 0 : index
    %1 = vector.load %arg2[%c0_1, %c0_2] : memref<192x64xf32, #tpu.memory_space<vmem>>, vector<192x64xf32>
    %cst = arith.constant dense<0.000000e+00> : vector<16x64xf32>
    %2 = tpu.matmul %0, %1, %cst {dimension_numbers = #tpu.dot_dimension_numbers<[1], [0], [0], [1], [0, 0, 1, 1], [], []>} : vector<16x192xf32>, vector<192x64xf32>, vector<16x64xf32> -> vector<16x64xf32>
    %c0_3 = arith.constant 0 : index
    %c0_4 = arith.constant 0 : index
    %3 = vector.load %arg3[%c0_3, %c0_4] : memref<16x64xf32, #tpu.memory_space<vmem>>, vector<16x64xf32>
    %4 = arith.addf %2, %3 : vector<16x64xf32>
    %c0_5 = arith.constant 0 : index
    %c0_6 = arith.constant 0 : index
    %5 = vector.load %arg4[%c0_5, %c0_6] : memref<1x64xf32, #tpu.memory_space<vmem>>, vector<1x64xf32>
    %c0_7 = arith.constant 0 : index
    %c0_8 = arith.constant 0 : index
    %6 = vector.load %arg5[%c0_7, %c0_8] : memref<1x64xf32, #tpu.memory_space<vmem>>, vector<1x64xf32>
    %cst_9 = arith.constant dense<0.000000e+00> : vector<16xf32>
    %7 = vector.multi_reduction <add>, %4, %cst_9 [1] : vector<16x64xf32> to vector<16xf32>
    %8 = vector.shape_cast %7 : vector<16xf32> to vector<16x1xf32>
    %cst_10 = arith.constant 6.400000e+01 : f32
    %9 = vector.broadcast %cst_10 : f32 to vector<16x1xf32>
    %10 = arith.divf %8, %9 : vector<16x1xf32>
    %11 = vector.broadcast %10 : vector<16x1xf32> to vector<16x64xf32>
    %12 = arith.subf %4, %11 : vector<16x64xf32>
    %13 = arith.mulf %12, %12 : vector<16x64xf32>
    %cst_11 = arith.constant dense<0.000000e+00> : vector<16xf32>
    %14 = vector.multi_reduction <add>, %13, %cst_11 [1] : vector<16x64xf32> to vector<16xf32>
    %15 = vector.shape_cast %14 : vector<16xf32> to vector<16x1xf32>
    %cst_12 = arith.constant 6.400000e+01 : f32
    %16 = vector.broadcast %cst_12 : f32 to vector<16x1xf32>
    %17 = arith.divf %15, %16 : vector<16x1xf32>
    %18 = vector.broadcast %10 : vector<16x1xf32> to vector<16x64xf32>
    %19 = arith.subf %4, %18 : vector<16x64xf32>
    %cst_13 = arith.constant 9.99999974E-6 : f32
    %20 = vector.broadcast %cst_13 : f32 to vector<16x1xf32>
    %21 = arith.addf %17, %20 : vector<16x1xf32>
    %22 = math.rsqrt %21 : vector<16x1xf32>
    %23 = vector.broadcast %22 : vector<16x1xf32> to vector<16x64xf32>
    %24 = arith.mulf %19, %23 : vector<16x64xf32>
    %25 = vector.broadcast %5 : vector<1x64xf32> to vector<16x64xf32>
    %26 = arith.mulf %24, %25 : vector<16x64xf32>
    %27 = vector.broadcast %6 : vector<1x64xf32> to vector<16x64xf32>
    %28 = arith.addf %26, %27 : vector<16x64xf32>
    %29 = tpu.iota {dimensions = array<i32: 2>} : vector<2x8x8xi32>
    %c5_i32 = arith.constant 5 : i32
    %30 = vector.broadcast %c5_i32 : i32 to vector<2x8x8xi32>
    %31 = arith.cmpi slt, %29, %30 : vector<2x8x8xi32>
    %c0_14 = arith.constant 0 : index
    %c0_15 = arith.constant 0 : index
    %c0_16 = arith.constant 0 : index
    %32 = vector.load %arg6[%c0_14, %c0_15, %c0_16] : memref<2x1x64xf32, #tpu.memory_space<vmem>>, vector<1x1x64xf32>
    %33 = vector.shape_cast %32 : vector<1x1x64xf32> to vector<1x64xf32>
    %c0_17 = arith.constant 0 : index
    %c0_18 = arith.constant 0 : index
    %c0_19 = arith.constant 0 : index
    %34 = vector.load %arg7[%c0_17, %c0_18, %c0_19] : memref<2x1x64xf32, #tpu.memory_space<vmem>>, vector<1x1x64xf32>
    %35 = vector.shape_cast %34 : vector<1x1x64xf32> to vector<1x64xf32>
    %cst_20 = arith.constant dense<0.000000e+00> : vector<16xf32>
    %36 = vector.multi_reduction <add>, %28, %cst_20 [1] : vector<16x64xf32> to vector<16xf32>
    %37 = vector.shape_cast %36 : vector<16xf32> to vector<16x1xf32>
    %cst_21 = arith.constant 6.400000e+01 : f32
    %38 = vector.broadcast %cst_21 : f32 to vector<16x1xf32>
    %39 = arith.divf %37, %38 : vector<16x1xf32>
    %40 = vector.broadcast %39 : vector<16x1xf32> to vector<16x64xf32>
    %41 = arith.subf %28, %40 : vector<16x64xf32>
    %42 = arith.mulf %41, %41 : vector<16x64xf32>
    %cst_22 = arith.constant dense<0.000000e+00> : vector<16xf32>
    %43 = vector.multi_reduction <add>, %42, %cst_22 [1] : vector<16x64xf32> to vector<16xf32>
    %44 = vector.shape_cast %43 : vector<16xf32> to vector<16x1xf32>
    %cst_23 = arith.constant 6.400000e+01 : f32
    %45 = vector.broadcast %cst_23 : f32 to vector<16x1xf32>
    %46 = arith.divf %44, %45 : vector<16x1xf32>
    %47 = vector.broadcast %39 : vector<16x1xf32> to vector<16x64xf32>
    %48 = arith.subf %28, %47 : vector<16x64xf32>
    %cst_24 = arith.constant 9.99999974E-6 : f32
    %49 = vector.broadcast %cst_24 : f32 to vector<16x1xf32>
    %50 = arith.addf %46, %49 : vector<16x1xf32>
    %51 = math.rsqrt %50 : vector<16x1xf32>
    %52 = vector.broadcast %51 : vector<16x1xf32> to vector<16x64xf32>
    %53 = arith.mulf %48, %52 : vector<16x64xf32>
    %54 = vector.broadcast %33 : vector<1x64xf32> to vector<16x64xf32>
    %55 = arith.mulf %53, %54 : vector<16x64xf32>
    %56 = vector.broadcast %35 : vector<1x64xf32> to vector<16x64xf32>
    %57 = arith.addf %55, %56 : vector<16x64xf32>
    %c0_25 = arith.constant 0 : index
    %c0_26 = arith.constant 0 : index
    %c0_27 = arith.constant 0 : index
    %c0_28 = arith.constant 0 : index
    %58 = vector.load %arg8[%c0_25, %c0_26, %c0_27, %c0_28] : memref<2x4x64x16xf32, #tpu.memory_space<vmem>>, vector<1x1x64x16xf32>
    %59 = vector.shape_cast %58 : vector<1x1x64x16xf32> to vector<64x16xf32>
    %cst_29 = arith.constant dense<0.000000e+00> : vector<16x16xf32>
    %60 = tpu.matmul %57, %59, %cst_29 {dimension_numbers = #tpu.dot_dimension_numbers<[1], [0], [0], [1], [0, 0, 1, 1], [], []>} : vector<16x64xf32>, vector<64x16xf32>, vector<16x16xf32> -> vector<16x16xf32>
    %c0_30 = arith.constant 0 : index
    %c0_31 = arith.constant 0 : index
    %c0_32 = arith.constant 0 : index
    %c0_33 = arith.constant 0 : index
    %61 = vector.load %arg9[%c0_30, %c0_31, %c0_32, %c0_33] : memref<2x4x1x16xf32, #tpu.memory_space<vmem>>, vector<1x1x1x16xf32>
    %62 = vector.shape_cast %61 : vector<1x1x1x16xf32> to vector<1x16xf32>
    %63 = vector.broadcast %62 : vector<1x16xf32> to vector<16x16xf32>
    %64 = arith.addf %60, %63 : vector<16x16xf32>
    %c0_34 = arith.constant 0 : index
    %c0_35 = arith.constant 0 : index
    %c0_36 = arith.constant 0 : index
    %c0_37 = arith.constant 0 : index
    %65 = vector.load %arg10[%c0_34, %c0_35, %c0_36, %c0_37] : memref<2x4x64x16xf32, #tpu.memory_space<vmem>>, vector<1x1x64x16xf32>
    %66 = vector.shape_cast %65 : vector<1x1x64x16xf32> to vector<64x16xf32>
    %cst_38 = arith.constant dense<0.000000e+00> : vector<16x16xf32>
    %67 = tpu.matmul %57, %66, %cst_38 {dimension_numbers = #tpu.dot_dimension_numbers<[1], [0], [0], [1], [0, 0, 1, 1], [], []>} : vector<16x64xf32>, vector<64x16xf32>, vector<16x16xf32> -> vector<16x16xf32>
    %c0_39 = arith.constant 0 : index
    %c0_40 = arith.constant 0 : index
    %c0_41 = arith.constant 0 : index
    %c0_42 = arith.constant 0 : index
    %68 = vector.load %arg11[%c0_39, %c0_40, %c0_41, %c0_42] : memref<2x4x1x16xf32, #tpu.memory_space<vmem>>, vector<1x1x1x16xf32>
    %69 = vector.shape_cast %68 : vector<1x1x1x16xf32> to vector<1x16xf32>
    %70 = vector.broadcast %69 : vector<1x16xf32> to vector<16x16xf32>
    %71 = arith.addf %67, %70 : vector<16x16xf32>
    %c0_43 = arith.constant 0 : index
    %c0_44 = arith.constant 0 : index
    %c0_45 = arith.constant 0 : index
    %c0_46 = arith.constant 0 : index
    %72 = vector.load %arg12[%c0_43, %c0_44, %c0_45, %c0_46] : memref<2x4x64x16xf32, #tpu.memory_space<vmem>>, vector<1x1x64x16xf32>
    %73 = vector.shape_cast %72 : vector<1x1x64x16xf32> to vector<64x16xf32>
    %cst_47 = arith.constant dense<0.000000e+00> : vector<16x16xf32>
    %74 = tpu.matmul %57, %73, %cst_47 {dimension_numbers = #tpu.dot_dimension_numbers<[1], [0], [0], [1], [0, 0, 1, 1], [], []>} : vector<16x64xf32>, vector<64x16xf32>, vector<16x16xf32> -> vector<16x16xf32>
    %c0_48 = arith.constant 0 : index
    %c0_49 = arith.constant 0 : index
    %c0_50 = arith.constant 0 : index
    %c0_51 = arith.constant 0 : index
    %75 = vector.load %arg13[%c0_48, %c0_49, %c0_50, %c0_51] : memref<2x4x1x16xf32, #tpu.memory_space<vmem>>, vector<1x1x1x16xf32>
    %76 = vector.shape_cast %75 : vector<1x1x1x16xf32> to vector<1x16xf32>
    %77 = vector.broadcast %76 : vector<1x16xf32> to vector<16x16xf32>
    %78 = arith.addf %74, %77 : vector<16x16xf32>
    %79 = vector.shape_cast %64 : vector<16x16xf32> to vector<2x8x16xf32>
    %80 = vector.shape_cast %71 : vector<16x16xf32> to vector<2x8x16xf32>
    %81 = vector.shape_cast %78 : vector<16x16xf32> to vector<2x8x16xf32>
    "tpu.trace_start"() <{level = 10 : i32, message = "bqd,bkd->bqk"}> : () -> ()
    %cst_52 = arith.constant dense<0.000000e+00> : vector<2x8x8xf32>
    %82 = tpu.matmul %79, %80, %cst_52 {dimension_numbers = #tpu.dot_dimension_numbers<[2], [2], [1], [1], [0, 0, 0, 1, 1, 1], [0], [0]>} : vector<2x8x16xf32>, vector<2x8x16xf32>, vector<2x8x8xf32> -> vector<2x8x8xf32>
    %cst_53 = arith.constant -1.000000e+30 : f32
    "tpu.trace_stop"() : () -> ()
    %83 = vector.broadcast %cst_53 : f32 to vector<2x8x8xf32>
    %84 = arith.select %31, %82, %83 : vector<2x8x8xi1>, vector<2x8x8xf32>
    %cst_54 = arith.constant dense<0xFF800000> : vector<2x8xf32>
    %85 = vector.multi_reduction <maximumf>, %84, %cst_54 [2] : vector<2x8x8xf32> to vector<2x8xf32>
    %86 = vector.shape_cast %85 : vector<2x8xf32> to vector<2x8x1xf32>
    %87 = vector.broadcast %86 : vector<2x8x1xf32> to vector<2x8x8xf32>
    %88 = arith.subf %84, %87 : vector<2x8x8xf32>
    %89 = math.exp %88 : vector<2x8x8xf32>
    %cst_55 = arith.constant dense<0.000000e+00> : vector<2x8xf32>
    %90 = vector.multi_reduction <add>, %89, %cst_55 [2] : vector<2x8x8xf32> to vector<2x8xf32>
    %91 = vector.shape_cast %90 : vector<2x8xf32> to vector<2x8x1xf32>
    %92 = tpu.reciprocal %91 {approx = true} : vector<2x8x1xf32> -> vector<2x8x1xf32>
    %93 = vector.broadcast %92 : vector<2x8x1xf32> to vector<2x8x8xf32>
    %94 = arith.mulf %89, %93 : vector<2x8x8xf32>
    "tpu.trace_start"() <{level = 10 : i32, message = "bqk,bkd->bqd"}> : () -> ()
    %cst_56 = arith.constant dense<0.000000e+00> : vector<2x8x16xf32>
    %95 = tpu.matmul %94, %81, %cst_56 {dimension_numbers = #tpu.dot_dimension_numbers<[2], [1], [1], [2], [0, 0, 0, 1, 1, 2], [0], [0]>} : vector<2x8x8xf32>, vector<2x8x16xf32>, vector<2x8x16xf32> -> vector<2x8x16xf32>
    "tpu.trace_stop"() : () -> ()
    %96 = vector.shape_cast %95 : vector<2x8x16xf32> to vector<16x16xf32>
    %c0_57 = arith.constant 0 : index
    %c0_58 = arith.constant 0 : index
    %c0_59 = arith.constant 0 : index
    %c0_60 = arith.constant 0 : index
    %97 = vector.load %arg14[%c0_57, %c0_58, %c0_59, %c0_60] : memref<2x4x16x64xf32, #tpu.memory_space<vmem>>, vector<1x1x16x64xf32>
    %98 = vector.shape_cast %97 : vector<1x1x16x64xf32> to vector<16x64xf32>
    %cst_61 = arith.constant dense<0.000000e+00> : vector<16x64xf32>
    %99 = tpu.matmul %96, %98, %cst_61 {dimension_numbers = #tpu.dot_dimension_numbers<[1], [0], [0], [1], [0, 0, 1, 1], [], []>} : vector<16x16xf32>, vector<16x64xf32>, vector<16x64xf32> -> vector<16x64xf32>
    %c0_62 = arith.constant 0 : index
    %c1 = arith.constant 1 : index
    %c0_63 = arith.constant 0 : index
    %c0_64 = arith.constant 0 : index
    %100 = vector.load %arg8[%c0_62, %c1, %c0_63, %c0_64] : memref<2x4x64x16xf32, #tpu.memory_space<vmem>>, vector<1x1x64x16xf32>
    %101 = vector.shape_cast %100 : vector<1x1x64x16xf32> to vector<64x16xf32>
    %cst_65 = arith.constant dense<0.000000e+00> : vector<16x16xf32>
    %102 = tpu.matmul %57, %101, %cst_65 {dimension_numbers = #tpu.dot_dimension_numbers<[1], [0], [0], [1], [0, 0, 1, 1], [], []>} : vector<16x64xf32>, vector<64x16xf32>, vector<16x16xf32> -> vector<16x16xf32>
    %c0_66 = arith.constant 0 : index
    %c1_67 = arith.constant 1 : index
    %c0_68 = arith.constant 0 : index
    %c0_69 = arith.constant 0 : index
    %103 = vector.load %arg9[%c0_66, %c1_67, %c0_68, %c0_69] : memref<2x4x1x16xf32, #tpu.memory_space<vmem>>, vector<1x1x1x16xf32>
    %104 = vector.shape_cast %103 : vector<1x1x1x16xf32> to vector<1x16xf32>
    %105 = vector.broadcast %104 : vector<1x16xf32> to vector<16x16xf32>
    %106 = arith.addf %102, %105 : vector<16x16xf32>
    %c0_70 = arith.constant 0 : index
    %c1_71 = arith.constant 1 : index
    %c0_72 = arith.constant 0 : index
    %c0_73 = arith.constant 0 : index
    %107 = vector.load %arg10[%c0_70, %c1_71, %c0_72, %c0_73] : memref<2x4x64x16xf32, #tpu.memory_space<vmem>>, vector<1x1x64x16xf32>
    %108 = vector.shape_cast %107 : vector<1x1x64x16xf32> to vector<64x16xf32>
    %cst_74 = arith.constant dense<0.000000e+00> : vector<16x16xf32>
    %109 = tpu.matmul %57, %108, %cst_74 {dimension_numbers = #tpu.dot_dimension_numbers<[1], [0], [0], [1], [0, 0, 1, 1], [], []>} : vector<16x64xf32>, vector<64x16xf32>, vector<16x16xf32> -> vector<16x16xf32>
    %c0_75 = arith.constant 0 : index
    %c1_76 = arith.constant 1 : index
    %c0_77 = arith.constant 0 : index
    %c0_78 = arith.constant 0 : index
    %110 = vector.load %arg11[%c0_75, %c1_76, %c0_77, %c0_78] : memref<2x4x1x16xf32, #tpu.memory_space<vmem>>, vector<1x1x1x16xf32>
    %111 = vector.shape_cast %110 : vector<1x1x1x16xf32> to vector<1x16xf32>
    %112 = vector.broadcast %111 : vector<1x16xf32> to vector<16x16xf32>
    %113 = arith.addf %109, %112 : vector<16x16xf32>
    %c0_79 = arith.constant 0 : index
    %c1_80 = arith.constant 1 : index
    %c0_81 = arith.constant 0 : index
    %c0_82 = arith.constant 0 : index
    %114 = vector.load %arg12[%c0_79, %c1_80, %c0_81, %c0_82] : memref<2x4x64x16xf32, #tpu.memory_space<vmem>>, vector<1x1x64x16xf32>
    %115 = vector.shape_cast %114 : vector<1x1x64x16xf32> to vector<64x16xf32>
    %cst_83 = arith.constant dense<0.000000e+00> : vector<16x16xf32>
    %116 = tpu.matmul %57, %115, %cst_83 {dimension_numbers = #tpu.dot_dimension_numbers<[1], [0], [0], [1], [0, 0, 1, 1], [], []>} : vector<16x64xf32>, vector<64x16xf32>, vector<16x16xf32> -> vector<16x16xf32>
    %c0_84 = arith.constant 0 : index
    %c1_85 = arith.constant 1 : index
    %c0_86 = arith.constant 0 : index
    %c0_87 = arith.constant 0 : index
    %117 = vector.load %arg13[%c0_84, %c1_85, %c0_86, %c0_87] : memref<2x4x1x16xf32, #tpu.memory_space<vmem>>, vector<1x1x1x16xf32>
    %118 = vector.shape_cast %117 : vector<1x1x1x16xf32> to vector<1x16xf32>
    %119 = vector.broadcast %118 : vector<1x16xf32> to vector<16x16xf32>
    %120 = arith.addf %116, %119 : vector<16x16xf32>
    %121 = vector.shape_cast %106 : vector<16x16xf32> to vector<2x8x16xf32>
    %122 = vector.shape_cast %113 : vector<16x16xf32> to vector<2x8x16xf32>
    %123 = vector.shape_cast %120 : vector<16x16xf32> to vector<2x8x16xf32>
    "tpu.trace_start"() <{level = 10 : i32, message = "bqd,bkd->bqk"}> : () -> ()
    %cst_88 = arith.constant dense<0.000000e+00> : vector<2x8x8xf32>
    %124 = tpu.matmul %121, %122, %cst_88 {dimension_numbers = #tpu.dot_dimension_numbers<[2], [2], [1], [1], [0, 0, 0, 1, 1, 1], [0], [0]>} : vector<2x8x16xf32>, vector<2x8x16xf32>, vector<2x8x8xf32> -> vector<2x8x8xf32>
    %cst_89 = arith.constant -1.000000e+30 : f32
    "tpu.trace_stop"() : () -> ()
    %125 = vector.broadcast %cst_89 : f32 to vector<2x8x8xf32>
    %126 = arith.select %31, %124, %125 : vector<2x8x8xi1>, vector<2x8x8xf32>
    %cst_90 = arith.constant dense<0xFF800000> : vector<2x8xf32>
    %127 = vector.multi_reduction <maximumf>, %126, %cst_90 [2] : vector<2x8x8xf32> to vector<2x8xf32>
    %128 = vector.shape_cast %127 : vector<2x8xf32> to vector<2x8x1xf32>
    %129 = vector.broadcast %128 : vector<2x8x1xf32> to vector<2x8x8xf32>
    %130 = arith.subf %126, %129 : vector<2x8x8xf32>
    %131 = math.exp %130 : vector<2x8x8xf32>
    %cst_91 = arith.constant dense<0.000000e+00> : vector<2x8xf32>
    %132 = vector.multi_reduction <add>, %131, %cst_91 [2] : vector<2x8x8xf32> to vector<2x8xf32>
    %133 = vector.shape_cast %132 : vector<2x8xf32> to vector<2x8x1xf32>
    %134 = tpu.reciprocal %133 {approx = true} : vector<2x8x1xf32> -> vector<2x8x1xf32>
    %135 = vector.broadcast %134 : vector<2x8x1xf32> to vector<2x8x8xf32>
    %136 = arith.mulf %131, %135 : vector<2x8x8xf32>
    "tpu.trace_start"() <{level = 10 : i32, message = "bqk,bkd->bqd"}> : () -> ()
    %cst_92 = arith.constant dense<0.000000e+00> : vector<2x8x16xf32>
    %137 = tpu.matmul %136, %123, %cst_92 {dimension_numbers = #tpu.dot_dimension_numbers<[2], [1], [1], [2], [0, 0, 0, 1, 1, 2], [0], [0]>} : vector<2x8x8xf32>, vector<2x8x16xf32>, vector<2x8x16xf32> -> vector<2x8x16xf32>
    "tpu.trace_stop"() : () -> ()
    %138 = vector.shape_cast %137 : vector<2x8x16xf32> to vector<16x16xf32>
    %c0_93 = arith.constant 0 : index
    %c1_94 = arith.constant 1 : index
    %c0_95 = arith.constant 0 : index
    %c0_96 = arith.constant 0 : index
    %139 = vector.load %arg14[%c0_93, %c1_94, %c0_95, %c0_96] : memref<2x4x16x64xf32, #tpu.memory_space<vmem>>, vector<1x1x16x64xf32>
    %140 = vector.shape_cast %139 : vector<1x1x16x64xf32> to vector<16x64xf32>
    %cst_97 = arith.constant dense<0.000000e+00> : vector<16x64xf32>
    %141 = tpu.matmul %138, %140, %cst_97 {dimension_numbers = #tpu.dot_dimension_numbers<[1], [0], [0], [1], [0, 0, 1, 1], [], []>} : vector<16x16xf32>, vector<16x64xf32>, vector<16x64xf32> -> vector<16x64xf32>
    %142 = arith.addf %99, %141 : vector<16x64xf32>
    %c0_98 = arith.constant 0 : index
    %c2 = arith.constant 2 : index
    %c0_99 = arith.constant 0 : index
    %c0_100 = arith.constant 0 : index
    %143 = vector.load %arg8[%c0_98, %c2, %c0_99, %c0_100] : memref<2x4x64x16xf32, #tpu.memory_space<vmem>>, vector<1x1x64x16xf32>
    %144 = vector.shape_cast %143 : vector<1x1x64x16xf32> to vector<64x16xf32>
    %cst_101 = arith.constant dense<0.000000e+00> : vector<16x16xf32>
    %145 = tpu.matmul %57, %144, %cst_101 {dimension_numbers = #tpu.dot_dimension_numbers<[1], [0], [0], [1], [0, 0, 1, 1], [], []>} : vector<16x64xf32>, vector<64x16xf32>, vector<16x16xf32> -> vector<16x16xf32>
    %c0_102 = arith.constant 0 : index
    %c2_103 = arith.constant 2 : index
    %c0_104 = arith.constant 0 : index
    %c0_105 = arith.constant 0 : index
    %146 = vector.load %arg9[%c0_102, %c2_103, %c0_104, %c0_105] : memref<2x4x1x16xf32, #tpu.memory_space<vmem>>, vector<1x1x1x16xf32>
    %147 = vector.shape_cast %146 : vector<1x1x1x16xf32> to vector<1x16xf32>
    %148 = vector.broadcast %147 : vector<1x16xf32> to vector<16x16xf32>
    %149 = arith.addf %145, %148 : vector<16x16xf32>
    %c0_106 = arith.constant 0 : index
    %c2_107 = arith.constant 2 : index
    %c0_108 = arith.constant 0 : index
    %c0_109 = arith.constant 0 : index
    %150 = vector.load %arg10[%c0_106, %c2_107, %c0_108, %c0_109] : memref<2x4x64x16xf32, #tpu.memory_space<vmem>>, vector<1x1x64x16xf32>
    %151 = vector.shape_cast %150 : vector<1x1x64x16xf32> to vector<64x16xf32>
    %cst_110 = arith.constant dense<0.000000e+00> : vector<16x16xf32>
    %152 = tpu.matmul %57, %151, %cst_110 {dimension_numbers = #tpu.dot_dimension_numbers<[1], [0], [0], [1], [0, 0, 1, 1], [], []>} : vector<16x64xf32>, vector<64x16xf32>, vector<16x16xf32> -> vector<16x16xf32>
    %c0_111 = arith.constant 0 : index
    %c2_112 = arith.constant 2 : index
    %c0_113 = arith.constant 0 : index
    %c0_114 = arith.constant 0 : index
    %153 = vector.load %arg11[%c0_111, %c2_112, %c0_113, %c0_114] : memref<2x4x1x16xf32, #tpu.memory_space<vmem>>, vector<1x1x1x16xf32>
    %154 = vector.shape_cast %153 : vector<1x1x1x16xf32> to vector<1x16xf32>
    %155 = vector.broadcast %154 : vector<1x16xf32> to vector<16x16xf32>
    %156 = arith.addf %152, %155 : vector<16x16xf32>
    %c0_115 = arith.constant 0 : index
    %c2_116 = arith.constant 2 : index
    %c0_117 = arith.constant 0 : index
    %c0_118 = arith.constant 0 : index
    %157 = vector.load %arg12[%c0_115, %c2_116, %c0_117, %c0_118] : memref<2x4x64x16xf32, #tpu.memory_space<vmem>>, vector<1x1x64x16xf32>
    %158 = vector.shape_cast %157 : vector<1x1x64x16xf32> to vector<64x16xf32>
    %cst_119 = arith.constant dense<0.000000e+00> : vector<16x16xf32>
    %159 = tpu.matmul %57, %158, %cst_119 {dimension_numbers = #tpu.dot_dimension_numbers<[1], [0], [0], [1], [0, 0, 1, 1], [], []>} : vector<16x64xf32>, vector<64x16xf32>, vector<16x16xf32> -> vector<16x16xf32>
    %c0_120 = arith.constant 0 : index
    %c2_121 = arith.constant 2 : index
    %c0_122 = arith.constant 0 : index
    %c0_123 = arith.constant 0 : index
    %160 = vector.load %arg13[%c0_120, %c2_121, %c0_122, %c0_123] : memref<2x4x1x16xf32, #tpu.memory_space<vmem>>, vector<1x1x1x16xf32>
    %161 = vector.shape_cast %160 : vector<1x1x1x16xf32> to vector<1x16xf32>
    %162 = vector.broadcast %161 : vector<1x16xf32> to vector<16x16xf32>
    %163 = arith.addf %159, %162 : vector<16x16xf32>
    %164 = vector.shape_cast %149 : vector<16x16xf32> to vector<2x8x16xf32>
    %165 = vector.shape_cast %156 : vector<16x16xf32> to vector<2x8x16xf32>
    %166 = vector.shape_cast %163 : vector<16x16xf32> to vector<2x8x16xf32>
    "tpu.trace_start"() <{level = 10 : i32, message = "bqd,bkd->bqk"}> : () -> ()
    %cst_124 = arith.constant dense<0.000000e+00> : vector<2x8x8xf32>
    %167 = tpu.matmul %164, %165, %cst_124 {dimension_numbers = #tpu.dot_dimension_numbers<[2], [2], [1], [1], [0, 0, 0, 1, 1, 1], [0], [0]>} : vector<2x8x16xf32>, vector<2x8x16xf32>, vector<2x8x8xf32> -> vector<2x8x8xf32>
    %cst_125 = arith.constant -1.000000e+30 : f32
    "tpu.trace_stop"() : () -> ()
    %168 = vector.broadcast %cst_125 : f32 to vector<2x8x8xf32>
    %169 = arith.select %31, %167, %168 : vector<2x8x8xi1>, vector<2x8x8xf32>
    %cst_126 = arith.constant dense<0xFF800000> : vector<2x8xf32>
    %170 = vector.multi_reduction <maximumf>, %169, %cst_126 [2] : vector<2x8x8xf32> to vector<2x8xf32>
    %171 = vector.shape_cast %170 : vector<2x8xf32> to vector<2x8x1xf32>
    %172 = vector.broadcast %171 : vector<2x8x1xf32> to vector<2x8x8xf32>
    %173 = arith.subf %169, %172 : vector<2x8x8xf32>
    %174 = math.exp %173 : vector<2x8x8xf32>
    %cst_127 = arith.constant dense<0.000000e+00> : vector<2x8xf32>
    %175 = vector.multi_reduction <add>, %174, %cst_127 [2] : vector<2x8x8xf32> to vector<2x8xf32>
    %176 = vector.shape_cast %175 : vector<2x8xf32> to vector<2x8x1xf32>
    %177 = tpu.reciprocal %176 {approx = true} : vector<2x8x1xf32> -> vector<2x8x1xf32>
    %178 = vector.broadcast %177 : vector<2x8x1xf32> to vector<2x8x8xf32>
    %179 = arith.mulf %174, %178 : vector<2x8x8xf32>
    "tpu.trace_start"() <{level = 10 : i32, message = "bqk,bkd->bqd"}> : () -> ()
    %cst_128 = arith.constant dense<0.000000e+00> : vector<2x8x16xf32>
    %180 = tpu.matmul %179, %166, %cst_128 {dimension_numbers = #tpu.dot_dimension_numbers<[2], [1], [1], [2], [0, 0, 0, 1, 1, 2], [0], [0]>} : vector<2x8x8xf32>, vector<2x8x16xf32>, vector<2x8x16xf32> -> vector<2x8x16xf32>
    "tpu.trace_stop"() : () -> ()
    %181 = vector.shape_cast %180 : vector<2x8x16xf32> to vector<16x16xf32>
    %c0_129 = arith.constant 0 : index
    %c2_130 = arith.constant 2 : index
    %c0_131 = arith.constant 0 : index
    %c0_132 = arith.constant 0 : index
    %182 = vector.load %arg14[%c0_129, %c2_130, %c0_131, %c0_132] : memref<2x4x16x64xf32, #tpu.memory_space<vmem>>, vector<1x1x16x64xf32>
    %183 = vector.shape_cast %182 : vector<1x1x16x64xf32> to vector<16x64xf32>
    %cst_133 = arith.constant dense<0.000000e+00> : vector<16x64xf32>
    %184 = tpu.matmul %181, %183, %cst_133 {dimension_numbers = #tpu.dot_dimension_numbers<[1], [0], [0], [1], [0, 0, 1, 1], [], []>} : vector<16x16xf32>, vector<16x64xf32>, vector<16x64xf32> -> vector<16x64xf32>
    %185 = arith.addf %142, %184 : vector<16x64xf32>
    %c0_134 = arith.constant 0 : index
    %c3 = arith.constant 3 : index
    %c0_135 = arith.constant 0 : index
    %c0_136 = arith.constant 0 : index
    %186 = vector.load %arg8[%c0_134, %c3, %c0_135, %c0_136] : memref<2x4x64x16xf32, #tpu.memory_space<vmem>>, vector<1x1x64x16xf32>
    %187 = vector.shape_cast %186 : vector<1x1x64x16xf32> to vector<64x16xf32>
    %cst_137 = arith.constant dense<0.000000e+00> : vector<16x16xf32>
    %188 = tpu.matmul %57, %187, %cst_137 {dimension_numbers = #tpu.dot_dimension_numbers<[1], [0], [0], [1], [0, 0, 1, 1], [], []>} : vector<16x64xf32>, vector<64x16xf32>, vector<16x16xf32> -> vector<16x16xf32>
    %c0_138 = arith.constant 0 : index
    %c3_139 = arith.constant 3 : index
    %c0_140 = arith.constant 0 : index
    %c0_141 = arith.constant 0 : index
    %189 = vector.load %arg9[%c0_138, %c3_139, %c0_140, %c0_141] : memref<2x4x1x16xf32, #tpu.memory_space<vmem>>, vector<1x1x1x16xf32>
    %190 = vector.shape_cast %189 : vector<1x1x1x16xf32> to vector<1x16xf32>
    %191 = vector.broadcast %190 : vector<1x16xf32> to vector<16x16xf32>
    %192 = arith.addf %188, %191 : vector<16x16xf32>
    %c0_142 = arith.constant 0 : index
    %c3_143 = arith.constant 3 : index
    %c0_144 = arith.constant 0 : index
    %c0_145 = arith.constant 0 : index
    %193 = vector.load %arg10[%c0_142, %c3_143, %c0_144, %c0_145] : memref<2x4x64x16xf32, #tpu.memory_space<vmem>>, vector<1x1x64x16xf32>
    %194 = vector.shape_cast %193 : vector<1x1x64x16xf32> to vector<64x16xf32>
    %cst_146 = arith.constant dense<0.000000e+00> : vector<16x16xf32>
    %195 = tpu.matmul %57, %194, %cst_146 {dimension_numbers = #tpu.dot_dimension_numbers<[1], [0], [0], [1], [0, 0, 1, 1], [], []>} : vector<16x64xf32>, vector<64x16xf32>, vector<16x16xf32> -> vector<16x16xf32>
    %c0_147 = arith.constant 0 : index
    %c3_148 = arith.constant 3 : index
    %c0_149 = arith.constant 0 : index
    %c0_150 = arith.constant 0 : index
    %196 = vector.load %arg11[%c0_147, %c3_148, %c0_149, %c0_150] : memref<2x4x1x16xf32, #tpu.memory_space<vmem>>, vector<1x1x1x16xf32>
    %197 = vector.shape_cast %196 : vector<1x1x1x16xf32> to vector<1x16xf32>
    %198 = vector.broadcast %197 : vector<1x16xf32> to vector<16x16xf32>
    %199 = arith.addf %195, %198 : vector<16x16xf32>
    %c0_151 = arith.constant 0 : index
    %c3_152 = arith.constant 3 : index
    %c0_153 = arith.constant 0 : index
    %c0_154 = arith.constant 0 : index
    %200 = vector.load %arg12[%c0_151, %c3_152, %c0_153, %c0_154] : memref<2x4x64x16xf32, #tpu.memory_space<vmem>>, vector<1x1x64x16xf32>
    %201 = vector.shape_cast %200 : vector<1x1x64x16xf32> to vector<64x16xf32>
    %cst_155 = arith.constant dense<0.000000e+00> : vector<16x16xf32>
    %202 = tpu.matmul %57, %201, %cst_155 {dimension_numbers = #tpu.dot_dimension_numbers<[1], [0], [0], [1], [0, 0, 1, 1], [], []>} : vector<16x64xf32>, vector<64x16xf32>, vector<16x16xf32> -> vector<16x16xf32>
    %c0_156 = arith.constant 0 : index
    %c3_157 = arith.constant 3 : index
    %c0_158 = arith.constant 0 : index
    %c0_159 = arith.constant 0 : index
    %203 = vector.load %arg13[%c0_156, %c3_157, %c0_158, %c0_159] : memref<2x4x1x16xf32, #tpu.memory_space<vmem>>, vector<1x1x1x16xf32>
    %204 = vector.shape_cast %203 : vector<1x1x1x16xf32> to vector<1x16xf32>
    %205 = vector.broadcast %204 : vector<1x16xf32> to vector<16x16xf32>
    %206 = arith.addf %202, %205 : vector<16x16xf32>
    %207 = vector.shape_cast %192 : vector<16x16xf32> to vector<2x8x16xf32>
    %208 = vector.shape_cast %199 : vector<16x16xf32> to vector<2x8x16xf32>
    %209 = vector.shape_cast %206 : vector<16x16xf32> to vector<2x8x16xf32>
    "tpu.trace_start"() <{level = 10 : i32, message = "bqd,bkd->bqk"}> : () -> ()
    %cst_160 = arith.constant dense<0.000000e+00> : vector<2x8x8xf32>
    %210 = tpu.matmul %207, %208, %cst_160 {dimension_numbers = #tpu.dot_dimension_numbers<[2], [2], [1], [1], [0, 0, 0, 1, 1, 1], [0], [0]>} : vector<2x8x16xf32>, vector<2x8x16xf32>, vector<2x8x8xf32> -> vector<2x8x8xf32>
    %cst_161 = arith.constant -1.000000e+30 : f32
    "tpu.trace_stop"() : () -> ()
    %211 = vector.broadcast %cst_161 : f32 to vector<2x8x8xf32>
    %212 = arith.select %31, %210, %211 : vector<2x8x8xi1>, vector<2x8x8xf32>
    %cst_162 = arith.constant dense<0xFF800000> : vector<2x8xf32>
    %213 = vector.multi_reduction <maximumf>, %212, %cst_162 [2] : vector<2x8x8xf32> to vector<2x8xf32>
    %214 = vector.shape_cast %213 : vector<2x8xf32> to vector<2x8x1xf32>
    %215 = vector.broadcast %214 : vector<2x8x1xf32> to vector<2x8x8xf32>
    %216 = arith.subf %212, %215 : vector<2x8x8xf32>
    %217 = math.exp %216 : vector<2x8x8xf32>
    %cst_163 = arith.constant dense<0.000000e+00> : vector<2x8xf32>
    %218 = vector.multi_reduction <add>, %217, %cst_163 [2] : vector<2x8x8xf32> to vector<2x8xf32>
    %219 = vector.shape_cast %218 : vector<2x8xf32> to vector<2x8x1xf32>
    %220 = tpu.reciprocal %219 {approx = true} : vector<2x8x1xf32> -> vector<2x8x1xf32>
    %221 = vector.broadcast %220 : vector<2x8x1xf32> to vector<2x8x8xf32>
    %222 = arith.mulf %217, %221 : vector<2x8x8xf32>
    "tpu.trace_start"() <{level = 10 : i32, message = "bqk,bkd->bqd"}> : () -> ()
    %cst_164 = arith.constant dense<0.000000e+00> : vector<2x8x16xf32>
    %223 = tpu.matmul %222, %209, %cst_164 {dimension_numbers = #tpu.dot_dimension_numbers<[2], [1], [1], [2], [0, 0, 0, 1, 1, 2], [0], [0]>} : vector<2x8x8xf32>, vector<2x8x16xf32>, vector<2x8x16xf32> -> vector<2x8x16xf32>
    "tpu.trace_stop"() : () -> ()
    %224 = vector.shape_cast %223 : vector<2x8x16xf32> to vector<16x16xf32>
    %c0_165 = arith.constant 0 : index
    %c3_166 = arith.constant 3 : index
    %c0_167 = arith.constant 0 : index
    %c0_168 = arith.constant 0 : index
    %225 = vector.load %arg14[%c0_165, %c3_166, %c0_167, %c0_168] : memref<2x4x16x64xf32, #tpu.memory_space<vmem>>, vector<1x1x16x64xf32>
    %226 = vector.shape_cast %225 : vector<1x1x16x64xf32> to vector<16x64xf32>
    %cst_169 = arith.constant dense<0.000000e+00> : vector<16x64xf32>
    %227 = tpu.matmul %224, %226, %cst_169 {dimension_numbers = #tpu.dot_dimension_numbers<[1], [0], [0], [1], [0, 0, 1, 1], [], []>} : vector<16x16xf32>, vector<16x64xf32>, vector<16x64xf32> -> vector<16x64xf32>
    %228 = arith.addf %185, %227 : vector<16x64xf32>
    %229 = arith.addf %28, %228 : vector<16x64xf32>
    %c0_170 = arith.constant 0 : index
    %c0_171 = arith.constant 0 : index
    %c0_172 = arith.constant 0 : index
    %230 = vector.load %arg15[%c0_170, %c0_171, %c0_172] : memref<2x1x64xf32, #tpu.memory_space<vmem>>, vector<1x1x64xf32>
    %231 = vector.shape_cast %230 : vector<1x1x64xf32> to vector<1x64xf32>
    %232 = vector.broadcast %231 : vector<1x64xf32> to vector<16x64xf32>
    %233 = arith.addf %229, %232 : vector<16x64xf32>
    %c0_173 = arith.constant 0 : index
    %c0_174 = arith.constant 0 : index
    %c0_175 = arith.constant 0 : index
    %234 = vector.load %arg16[%c0_173, %c0_174, %c0_175] : memref<2x1x64xf32, #tpu.memory_space<vmem>>, vector<1x1x64xf32>
    %235 = vector.shape_cast %234 : vector<1x1x64xf32> to vector<1x64xf32>
    %c0_176 = arith.constant 0 : index
    %c0_177 = arith.constant 0 : index
    %c0_178 = arith.constant 0 : index
    %236 = vector.load %arg17[%c0_176, %c0_177, %c0_178] : memref<2x1x64xf32, #tpu.memory_space<vmem>>, vector<1x1x64xf32>
    %237 = vector.shape_cast %236 : vector<1x1x64xf32> to vector<1x64xf32>
    %cst_179 = arith.constant dense<0.000000e+00> : vector<16xf32>
    %238 = vector.multi_reduction <add>, %233, %cst_179 [1] : vector<16x64xf32> to vector<16xf32>
    %239 = vector.shape_cast %238 : vector<16xf32> to vector<16x1xf32>
    %cst_180 = arith.constant 6.400000e+01 : f32
    %240 = vector.broadcast %cst_180 : f32 to vector<16x1xf32>
    %241 = arith.divf %239, %240 : vector<16x1xf32>
    %242 = vector.broadcast %241 : vector<16x1xf32> to vector<16x64xf32>
    %243 = arith.subf %233, %242 : vector<16x64xf32>
    %244 = arith.mulf %243, %243 : vector<16x64xf32>
    %cst_181 = arith.constant dense<0.000000e+00> : vector<16xf32>
    %245 = vector.multi_reduction <add>, %244, %cst_181 [1] : vector<16x64xf32> to vector<16xf32>
    %246 = vector.shape_cast %245 : vector<16xf32> to vector<16x1xf32>
    %cst_182 = arith.constant 6.400000e+01 : f32
    %247 = vector.broadcast %cst_182 : f32 to vector<16x1xf32>
    %248 = arith.divf %246, %247 : vector<16x1xf32>
    %249 = vector.broadcast %241 : vector<16x1xf32> to vector<16x64xf32>
    %250 = arith.subf %233, %249 : vector<16x64xf32>
    %cst_183 = arith.constant 9.99999974E-6 : f32
    %251 = vector.broadcast %cst_183 : f32 to vector<16x1xf32>
    %252 = arith.addf %248, %251 : vector<16x1xf32>
    %253 = math.rsqrt %252 : vector<16x1xf32>
    %254 = vector.broadcast %253 : vector<16x1xf32> to vector<16x64xf32>
    %255 = arith.mulf %250, %254 : vector<16x64xf32>
    %256 = vector.broadcast %235 : vector<1x64xf32> to vector<16x64xf32>
    %257 = arith.mulf %255, %256 : vector<16x64xf32>
    %258 = vector.broadcast %237 : vector<1x64xf32> to vector<16x64xf32>
    %259 = arith.addf %257, %258 : vector<16x64xf32>
    %c0_184 = arith.constant 0 : index
    %c0_185 = arith.constant 0 : index
    %c0_186 = arith.constant 0 : index
    %260 = vector.load %arg18[%c0_184, %c0_185, %c0_186] : memref<2x64x256xf32, #tpu.memory_space<vmem>>, vector<1x64x256xf32>
    %261 = vector.shape_cast %260 : vector<1x64x256xf32> to vector<64x256xf32>
    %cst_187 = arith.constant dense<0.000000e+00> : vector<16x256xf32>
    %262 = tpu.matmul %259, %261, %cst_187 {dimension_numbers = #tpu.dot_dimension_numbers<[1], [0], [0], [1], [0, 0, 1, 1], [], []>} : vector<16x64xf32>, vector<64x256xf32>, vector<16x256xf32> -> vector<16x256xf32>
    %c0_188 = arith.constant 0 : index
    %c0_189 = arith.constant 0 : index
    %c0_190 = arith.constant 0 : index
    %263 = vector.load %arg19[%c0_188, %c0_189, %c0_190] : memref<2x1x256xf32, #tpu.memory_space<vmem>>, vector<1x1x256xf32>
    %264 = vector.shape_cast %263 : vector<1x1x256xf32> to vector<1x256xf32>
    %265 = vector.broadcast %264 : vector<1x256xf32> to vector<16x256xf32>
    %266 = arith.addf %262, %265 : vector<16x256xf32>
    %cst_191 = arith.constant 5.000000e-01 : f32
    %267 = vector.broadcast %cst_191 : f32 to vector<16x256xf32>
    %268 = arith.mulf %267, %266 : vector<16x256xf32>
    %cst_192 = arith.constant 0.707106769 : f32
    %269 = vector.broadcast %cst_192 : f32 to vector<16x256xf32>
    %270 = arith.mulf %266, %269 : vector<16x256xf32>
    %271 = math.erf %270 : vector<16x256xf32>
    %cst_193 = arith.constant 1.000000e+00 : f32
    %272 = vector.broadcast %cst_193 : f32 to vector<16x256xf32>
    %273 = arith.addf %272, %271 : vector<16x256xf32>
    %274 = arith.mulf %268, %273 : vector<16x256xf32>
    %c0_194 = arith.constant 0 : index
    %c0_195 = arith.constant 0 : index
    %c0_196 = arith.constant 0 : index
    %275 = vector.load %arg20[%c0_194, %c0_195, %c0_196] : memref<2x256x64xf32, #tpu.memory_space<vmem>>, vector<1x256x64xf32>
    %276 = vector.shape_cast %275 : vector<1x256x64xf32> to vector<256x64xf32>
    %cst_197 = arith.constant dense<0.000000e+00> : vector<16x64xf32>
    %277 = tpu.matmul %274, %276, %cst_197 {dimension_numbers = #tpu.dot_dimension_numbers<[1], [0], [0], [1], [0, 0, 1, 1], [], []>} : vector<16x256xf32>, vector<256x64xf32>, vector<16x64xf32> -> vector<16x64xf32>
    %c0_198 = arith.constant 0 : index
    %c0_199 = arith.constant 0 : index
    %c0_200 = arith.constant 0 : index
    %278 = vector.load %arg21[%c0_198, %c0_199, %c0_200] : memref<2x1x64xf32, #tpu.memory_space<vmem>>, vector<1x1x64xf32>
    %279 = vector.shape_cast %278 : vector<1x1x64xf32> to vector<1x64xf32>
    %280 = vector.broadcast %279 : vector<1x64xf32> to vector<16x64xf32>
    %281 = arith.addf %277, %280 : vector<16x64xf32>
    %282 = arith.addf %233, %281 : vector<16x64xf32>
    %c1_201 = arith.constant 1 : index
    %c0_202 = arith.constant 0 : index
    %c0_203 = arith.constant 0 : index
    %283 = vector.load %arg6[%c1_201, %c0_202, %c0_203] : memref<2x1x64xf32, #tpu.memory_space<vmem>>, vector<1x1x64xf32>
    %284 = vector.shape_cast %283 : vector<1x1x64xf32> to vector<1x64xf32>
    %c1_204 = arith.constant 1 : index
    %c0_205 = arith.constant 0 : index
    %c0_206 = arith.constant 0 : index
    %285 = vector.load %arg7[%c1_204, %c0_205, %c0_206] : memref<2x1x64xf32, #tpu.memory_space<vmem>>, vector<1x1x64xf32>
    %286 = vector.shape_cast %285 : vector<1x1x64xf32> to vector<1x64xf32>
    %cst_207 = arith.constant dense<0.000000e+00> : vector<16xf32>
    %287 = vector.multi_reduction <add>, %282, %cst_207 [1] : vector<16x64xf32> to vector<16xf32>
    %288 = vector.shape_cast %287 : vector<16xf32> to vector<16x1xf32>
    %cst_208 = arith.constant 6.400000e+01 : f32
    %289 = vector.broadcast %cst_208 : f32 to vector<16x1xf32>
    %290 = arith.divf %288, %289 : vector<16x1xf32>
    %291 = vector.broadcast %290 : vector<16x1xf32> to vector<16x64xf32>
    %292 = arith.subf %282, %291 : vector<16x64xf32>
    %293 = arith.mulf %292, %292 : vector<16x64xf32>
    %cst_209 = arith.constant dense<0.000000e+00> : vector<16xf32>
    %294 = vector.multi_reduction <add>, %293, %cst_209 [1] : vector<16x64xf32> to vector<16xf32>
    %295 = vector.shape_cast %294 : vector<16xf32> to vector<16x1xf32>
    %cst_210 = arith.constant 6.400000e+01 : f32
    %296 = vector.broadcast %cst_210 : f32 to vector<16x1xf32>
    %297 = arith.divf %295, %296 : vector<16x1xf32>
    %298 = vector.broadcast %290 : vector<16x1xf32> to vector<16x64xf32>
    %299 = arith.subf %282, %298 : vector<16x64xf32>
    %cst_211 = arith.constant 9.99999974E-6 : f32
    %300 = vector.broadcast %cst_211 : f32 to vector<16x1xf32>
    %301 = arith.addf %297, %300 : vector<16x1xf32>
    %302 = math.rsqrt %301 : vector<16x1xf32>
    %303 = vector.broadcast %302 : vector<16x1xf32> to vector<16x64xf32>
    %304 = arith.mulf %299, %303 : vector<16x64xf32>
    %305 = vector.broadcast %284 : vector<1x64xf32> to vector<16x64xf32>
    %306 = arith.mulf %304, %305 : vector<16x64xf32>
    %307 = vector.broadcast %286 : vector<1x64xf32> to vector<16x64xf32>
    %308 = arith.addf %306, %307 : vector<16x64xf32>
    %c1_212 = arith.constant 1 : index
    %c0_213 = arith.constant 0 : index
    %c0_214 = arith.constant 0 : index
    %c0_215 = arith.constant 0 : index
    %309 = vector.load %arg8[%c1_212, %c0_213, %c0_214, %c0_215] : memref<2x4x64x16xf32, #tpu.memory_space<vmem>>, vector<1x1x64x16xf32>
    %310 = vector.shape_cast %309 : vector<1x1x64x16xf32> to vector<64x16xf32>
    %cst_216 = arith.constant dense<0.000000e+00> : vector<16x16xf32>
    %311 = tpu.matmul %308, %310, %cst_216 {dimension_numbers = #tpu.dot_dimension_numbers<[1], [0], [0], [1], [0, 0, 1, 1], [], []>} : vector<16x64xf32>, vector<64x16xf32>, vector<16x16xf32> -> vector<16x16xf32>
    %c1_217 = arith.constant 1 : index
    %c0_218 = arith.constant 0 : index
    %c0_219 = arith.constant 0 : index
    %c0_220 = arith.constant 0 : index
    %312 = vector.load %arg9[%c1_217, %c0_218, %c0_219, %c0_220] : memref<2x4x1x16xf32, #tpu.memory_space<vmem>>, vector<1x1x1x16xf32>
    %313 = vector.shape_cast %312 : vector<1x1x1x16xf32> to vector<1x16xf32>
    %314 = vector.broadcast %313 : vector<1x16xf32> to vector<16x16xf32>
    %315 = arith.addf %311, %314 : vector<16x16xf32>
    %c1_221 = arith.constant 1 : index
    %c0_222 = arith.constant 0 : index
    %c0_223 = arith.constant 0 : index
    %c0_224 = arith.constant 0 : index
    %316 = vector.load %arg10[%c1_221, %c0_222, %c0_223, %c0_224] : memref<2x4x64x16xf32, #tpu.memory_space<vmem>>, vector<1x1x64x16xf32>
    %317 = vector.shape_cast %316 : vector<1x1x64x16xf32> to vector<64x16xf32>
    %cst_225 = arith.constant dense<0.000000e+00> : vector<16x16xf32>
    %318 = tpu.matmul %308, %317, %cst_225 {dimension_numbers = #tpu.dot_dimension_numbers<[1], [0], [0], [1], [0, 0, 1, 1], [], []>} : vector<16x64xf32>, vector<64x16xf32>, vector<16x16xf32> -> vector<16x16xf32>
    %c1_226 = arith.constant 1 : index
    %c0_227 = arith.constant 0 : index
    %c0_228 = arith.constant 0 : index
    %c0_229 = arith.constant 0 : index
    %319 = vector.load %arg11[%c1_226, %c0_227, %c0_228, %c0_229] : memref<2x4x1x16xf32, #tpu.memory_space<vmem>>, vector<1x1x1x16xf32>
    %320 = vector.shape_cast %319 : vector<1x1x1x16xf32> to vector<1x16xf32>
    %321 = vector.broadcast %320 : vector<1x16xf32> to vector<16x16xf32>
    %322 = arith.addf %318, %321 : vector<16x16xf32>
    %c1_230 = arith.constant 1 : index
    %c0_231 = arith.constant 0 : index
    %c0_232 = arith.constant 0 : index
    %c0_233 = arith.constant 0 : index
    %323 = vector.load %arg12[%c1_230, %c0_231, %c0_232, %c0_233] : memref<2x4x64x16xf32, #tpu.memory_space<vmem>>, vector<1x1x64x16xf32>
    %324 = vector.shape_cast %323 : vector<1x1x64x16xf32> to vector<64x16xf32>
    %cst_234 = arith.constant dense<0.000000e+00> : vector<16x16xf32>
    %325 = tpu.matmul %308, %324, %cst_234 {dimension_numbers = #tpu.dot_dimension_numbers<[1], [0], [0], [1], [0, 0, 1, 1], [], []>} : vector<16x64xf32>, vector<64x16xf32>, vector<16x16xf32> -> vector<16x16xf32>
    %c1_235 = arith.constant 1 : index
    %c0_236 = arith.constant 0 : index
    %c0_237 = arith.constant 0 : index
    %c0_238 = arith.constant 0 : index
    %326 = vector.load %arg13[%c1_235, %c0_236, %c0_237, %c0_238] : memref<2x4x1x16xf32, #tpu.memory_space<vmem>>, vector<1x1x1x16xf32>
    %327 = vector.shape_cast %326 : vector<1x1x1x16xf32> to vector<1x16xf32>
    %328 = vector.broadcast %327 : vector<1x16xf32> to vector<16x16xf32>
    %329 = arith.addf %325, %328 : vector<16x16xf32>
    %330 = vector.shape_cast %315 : vector<16x16xf32> to vector<2x8x16xf32>
    %331 = vector.shape_cast %322 : vector<16x16xf32> to vector<2x8x16xf32>
    %332 = vector.shape_cast %329 : vector<16x16xf32> to vector<2x8x16xf32>
    "tpu.trace_start"() <{level = 10 : i32, message = "bqd,bkd->bqk"}> : () -> ()
    %cst_239 = arith.constant dense<0.000000e+00> : vector<2x8x8xf32>
    %333 = tpu.matmul %330, %331, %cst_239 {dimension_numbers = #tpu.dot_dimension_numbers<[2], [2], [1], [1], [0, 0, 0, 1, 1, 1], [0], [0]>} : vector<2x8x16xf32>, vector<2x8x16xf32>, vector<2x8x8xf32> -> vector<2x8x8xf32>
    %cst_240 = arith.constant -1.000000e+30 : f32
    "tpu.trace_stop"() : () -> ()
    %334 = vector.broadcast %cst_240 : f32 to vector<2x8x8xf32>
    %335 = arith.select %31, %333, %334 : vector<2x8x8xi1>, vector<2x8x8xf32>
    %cst_241 = arith.constant dense<0xFF800000> : vector<2x8xf32>
    %336 = vector.multi_reduction <maximumf>, %335, %cst_241 [2] : vector<2x8x8xf32> to vector<2x8xf32>
    %337 = vector.shape_cast %336 : vector<2x8xf32> to vector<2x8x1xf32>
    %338 = vector.broadcast %337 : vector<2x8x1xf32> to vector<2x8x8xf32>
    %339 = arith.subf %335, %338 : vector<2x8x8xf32>
    %340 = math.exp %339 : vector<2x8x8xf32>
    %cst_242 = arith.constant dense<0.000000e+00> : vector<2x8xf32>
    %341 = vector.multi_reduction <add>, %340, %cst_242 [2] : vector<2x8x8xf32> to vector<2x8xf32>
    %342 = vector.shape_cast %341 : vector<2x8xf32> to vector<2x8x1xf32>
    %343 = tpu.reciprocal %342 {approx = true} : vector<2x8x1xf32> -> vector<2x8x1xf32>
    %344 = vector.broadcast %343 : vector<2x8x1xf32> to vector<2x8x8xf32>
    %345 = arith.mulf %340, %344 : vector<2x8x8xf32>
    "tpu.trace_start"() <{level = 10 : i32, message = "bqk,bkd->bqd"}> : () -> ()
    %cst_243 = arith.constant dense<0.000000e+00> : vector<2x8x16xf32>
    %346 = tpu.matmul %345, %332, %cst_243 {dimension_numbers = #tpu.dot_dimension_numbers<[2], [1], [1], [2], [0, 0, 0, 1, 1, 2], [0], [0]>} : vector<2x8x8xf32>, vector<2x8x16xf32>, vector<2x8x16xf32> -> vector<2x8x16xf32>
    "tpu.trace_stop"() : () -> ()
    %347 = vector.shape_cast %346 : vector<2x8x16xf32> to vector<16x16xf32>
    %c1_244 = arith.constant 1 : index
    %c0_245 = arith.constant 0 : index
    %c0_246 = arith.constant 0 : index
    %c0_247 = arith.constant 0 : index
    %348 = vector.load %arg14[%c1_244, %c0_245, %c0_246, %c0_247] : memref<2x4x16x64xf32, #tpu.memory_space<vmem>>, vector<1x1x16x64xf32>
    %349 = vector.shape_cast %348 : vector<1x1x16x64xf32> to vector<16x64xf32>
    %cst_248 = arith.constant dense<0.000000e+00> : vector<16x64xf32>
    %350 = tpu.matmul %347, %349, %cst_248 {dimension_numbers = #tpu.dot_dimension_numbers<[1], [0], [0], [1], [0, 0, 1, 1], [], []>} : vector<16x16xf32>, vector<16x64xf32>, vector<16x64xf32> -> vector<16x64xf32>
    %c1_249 = arith.constant 1 : index
    %c1_250 = arith.constant 1 : index
    %c0_251 = arith.constant 0 : index
    %c0_252 = arith.constant 0 : index
    %351 = vector.load %arg8[%c1_249, %c1_250, %c0_251, %c0_252] : memref<2x4x64x16xf32, #tpu.memory_space<vmem>>, vector<1x1x64x16xf32>
    %352 = vector.shape_cast %351 : vector<1x1x64x16xf32> to vector<64x16xf32>
    %cst_253 = arith.constant dense<0.000000e+00> : vector<16x16xf32>
    %353 = tpu.matmul %308, %352, %cst_253 {dimension_numbers = #tpu.dot_dimension_numbers<[1], [0], [0], [1], [0, 0, 1, 1], [], []>} : vector<16x64xf32>, vector<64x16xf32>, vector<16x16xf32> -> vector<16x16xf32>
    %c1_254 = arith.constant 1 : index
    %c1_255 = arith.constant 1 : index
    %c0_256 = arith.constant 0 : index
    %c0_257 = arith.constant 0 : index
    %354 = vector.load %arg9[%c1_254, %c1_255, %c0_256, %c0_257] : memref<2x4x1x16xf32, #tpu.memory_space<vmem>>, vector<1x1x1x16xf32>
    %355 = vector.shape_cast %354 : vector<1x1x1x16xf32> to vector<1x16xf32>
    %356 = vector.broadcast %355 : vector<1x16xf32> to vector<16x16xf32>
    %357 = arith.addf %353, %356 : vector<16x16xf32>
    %c1_258 = arith.constant 1 : index
    %c1_259 = arith.constant 1 : index
    %c0_260 = arith.constant 0 : index
    %c0_261 = arith.constant 0 : index
    %358 = vector.load %arg10[%c1_258, %c1_259, %c0_260, %c0_261] : memref<2x4x64x16xf32, #tpu.memory_space<vmem>>, vector<1x1x64x16xf32>
    %359 = vector.shape_cast %358 : vector<1x1x64x16xf32> to vector<64x16xf32>
    %cst_262 = arith.constant dense<0.000000e+00> : vector<16x16xf32>
    %360 = tpu.matmul %308, %359, %cst_262 {dimension_numbers = #tpu.dot_dimension_numbers<[1], [0], [0], [1], [0, 0, 1, 1], [], []>} : vector<16x64xf32>, vector<64x16xf32>, vector<16x16xf32> -> vector<16x16xf32>
    %c1_263 = arith.constant 1 : index
    %c1_264 = arith.constant 1 : index
    %c0_265 = arith.constant 0 : index
    %c0_266 = arith.constant 0 : index
    %361 = vector.load %arg11[%c1_263, %c1_264, %c0_265, %c0_266] : memref<2x4x1x16xf32, #tpu.memory_space<vmem>>, vector<1x1x1x16xf32>
    %362 = vector.shape_cast %361 : vector<1x1x1x16xf32> to vector<1x16xf32>
    %363 = vector.broadcast %362 : vector<1x16xf32> to vector<16x16xf32>
    %364 = arith.addf %360, %363 : vector<16x16xf32>
    %c1_267 = arith.constant 1 : index
    %c1_268 = arith.constant 1 : index
    %c0_269 = arith.constant 0 : index
    %c0_270 = arith.constant 0 : index
    %365 = vector.load %arg12[%c1_267, %c1_268, %c0_269, %c0_270] : memref<2x4x64x16xf32, #tpu.memory_space<vmem>>, vector<1x1x64x16xf32>
    %366 = vector.shape_cast %365 : vector<1x1x64x16xf32> to vector<64x16xf32>
    %cst_271 = arith.constant dense<0.000000e+00> : vector<16x16xf32>
    %367 = tpu.matmul %308, %366, %cst_271 {dimension_numbers = #tpu.dot_dimension_numbers<[1], [0], [0], [1], [0, 0, 1, 1], [], []>} : vector<16x64xf32>, vector<64x16xf32>, vector<16x16xf32> -> vector<16x16xf32>
    %c1_272 = arith.constant 1 : index
    %c1_273 = arith.constant 1 : index
    %c0_274 = arith.constant 0 : index
    %c0_275 = arith.constant 0 : index
    %368 = vector.load %arg13[%c1_272, %c1_273, %c0_274, %c0_275] : memref<2x4x1x16xf32, #tpu.memory_space<vmem>>, vector<1x1x1x16xf32>
    %369 = vector.shape_cast %368 : vector<1x1x1x16xf32> to vector<1x16xf32>
    %370 = vector.broadcast %369 : vector<1x16xf32> to vector<16x16xf32>
    %371 = arith.addf %367, %370 : vector<16x16xf32>
    %372 = vector.shape_cast %357 : vector<16x16xf32> to vector<2x8x16xf32>
    %373 = vector.shape_cast %364 : vector<16x16xf32> to vector<2x8x16xf32>
    %374 = vector.shape_cast %371 : vector<16x16xf32> to vector<2x8x16xf32>
    "tpu.trace_start"() <{level = 10 : i32, message = "bqd,bkd->bqk"}> : () -> ()
    %cst_276 = arith.constant dense<0.000000e+00> : vector<2x8x8xf32>
    %375 = tpu.matmul %372, %373, %cst_276 {dimension_numbers = #tpu.dot_dimension_numbers<[2], [2], [1], [1], [0, 0, 0, 1, 1, 1], [0], [0]>} : vector<2x8x16xf32>, vector<2x8x16xf32>, vector<2x8x8xf32> -> vector<2x8x8xf32>
    %cst_277 = arith.constant -1.000000e+30 : f32
    "tpu.trace_stop"() : () -> ()
    %376 = vector.broadcast %cst_277 : f32 to vector<2x8x8xf32>
    %377 = arith.select %31, %375, %376 : vector<2x8x8xi1>, vector<2x8x8xf32>
    %cst_278 = arith.constant dense<0xFF800000> : vector<2x8xf32>
    %378 = vector.multi_reduction <maximumf>, %377, %cst_278 [2] : vector<2x8x8xf32> to vector<2x8xf32>
    %379 = vector.shape_cast %378 : vector<2x8xf32> to vector<2x8x1xf32>
    %380 = vector.broadcast %379 : vector<2x8x1xf32> to vector<2x8x8xf32>
    %381 = arith.subf %377, %380 : vector<2x8x8xf32>
    %382 = math.exp %381 : vector<2x8x8xf32>
    %cst_279 = arith.constant dense<0.000000e+00> : vector<2x8xf32>
    %383 = vector.multi_reduction <add>, %382, %cst_279 [2] : vector<2x8x8xf32> to vector<2x8xf32>
    %384 = vector.shape_cast %383 : vector<2x8xf32> to vector<2x8x1xf32>
    %385 = tpu.reciprocal %384 {approx = true} : vector<2x8x1xf32> -> vector<2x8x1xf32>
    %386 = vector.broadcast %385 : vector<2x8x1xf32> to vector<2x8x8xf32>
    %387 = arith.mulf %382, %386 : vector<2x8x8xf32>
    "tpu.trace_start"() <{level = 10 : i32, message = "bqk,bkd->bqd"}> : () -> ()
    %cst_280 = arith.constant dense<0.000000e+00> : vector<2x8x16xf32>
    %388 = tpu.matmul %387, %374, %cst_280 {dimension_numbers = #tpu.dot_dimension_numbers<[2], [1], [1], [2], [0, 0, 0, 1, 1, 2], [0], [0]>} : vector<2x8x8xf32>, vector<2x8x16xf32>, vector<2x8x16xf32> -> vector<2x8x16xf32>
    "tpu.trace_stop"() : () -> ()
    %389 = vector.shape_cast %388 : vector<2x8x16xf32> to vector<16x16xf32>
    %c1_281 = arith.constant 1 : index
    %c1_282 = arith.constant 1 : index
    %c0_283 = arith.constant 0 : index
    %c0_284 = arith.constant 0 : index
    %390 = vector.load %arg14[%c1_281, %c1_282, %c0_283, %c0_284] : memref<2x4x16x64xf32, #tpu.memory_space<vmem>>, vector<1x1x16x64xf32>
    %391 = vector.shape_cast %390 : vector<1x1x16x64xf32> to vector<16x64xf32>
    %cst_285 = arith.constant dense<0.000000e+00> : vector<16x64xf32>
    %392 = tpu.matmul %389, %391, %cst_285 {dimension_numbers = #tpu.dot_dimension_numbers<[1], [0], [0], [1], [0, 0, 1, 1], [], []>} : vector<16x16xf32>, vector<16x64xf32>, vector<16x64xf32> -> vector<16x64xf32>
    %393 = arith.addf %350, %392 : vector<16x64xf32>
    %c1_286 = arith.constant 1 : index
    %c2_287 = arith.constant 2 : index
    %c0_288 = arith.constant 0 : index
    %c0_289 = arith.constant 0 : index
    %394 = vector.load %arg8[%c1_286, %c2_287, %c0_288, %c0_289] : memref<2x4x64x16xf32, #tpu.memory_space<vmem>>, vector<1x1x64x16xf32>
    %395 = vector.shape_cast %394 : vector<1x1x64x16xf32> to vector<64x16xf32>
    %cst_290 = arith.constant dense<0.000000e+00> : vector<16x16xf32>
    %396 = tpu.matmul %308, %395, %cst_290 {dimension_numbers = #tpu.dot_dimension_numbers<[1], [0], [0], [1], [0, 0, 1, 1], [], []>} : vector<16x64xf32>, vector<64x16xf32>, vector<16x16xf32> -> vector<16x16xf32>
    %c1_291 = arith.constant 1 : index
    %c2_292 = arith.constant 2 : index
    %c0_293 = arith.constant 0 : index
    %c0_294 = arith.constant 0 : index
    %397 = vector.load %arg9[%c1_291, %c2_292, %c0_293, %c0_294] : memref<2x4x1x16xf32, #tpu.memory_space<vmem>>, vector<1x1x1x16xf32>
    %398 = vector.shape_cast %397 : vector<1x1x1x16xf32> to vector<1x16xf32>
    %399 = vector.broadcast %398 : vector<1x16xf32> to vector<16x16xf32>
    %400 = arith.addf %396, %399 : vector<16x16xf32>
    %c1_295 = arith.constant 1 : index
    %c2_296 = arith.constant 2 : index
    %c0_297 = arith.constant 0 : index
    %c0_298 = arith.constant 0 : index
    %401 = vector.load %arg10[%c1_295, %c2_296, %c0_297, %c0_298] : memref<2x4x64x16xf32, #tpu.memory_space<vmem>>, vector<1x1x64x16xf32>
    %402 = vector.shape_cast %401 : vector<1x1x64x16xf32> to vector<64x16xf32>
    %cst_299 = arith.constant dense<0.000000e+00> : vector<16x16xf32>
    %403 = tpu.matmul %308, %402, %cst_299 {dimension_numbers = #tpu.dot_dimension_numbers<[1], [0], [0], [1], [0, 0, 1, 1], [], []>} : vector<16x64xf32>, vector<64x16xf32>, vector<16x16xf32> -> vector<16x16xf32>
    %c1_300 = arith.constant 1 : index
    %c2_301 = arith.constant 2 : index
    %c0_302 = arith.constant 0 : index
    %c0_303 = arith.constant 0 : index
    %404 = vector.load %arg11[%c1_300, %c2_301, %c0_302, %c0_303] : memref<2x4x1x16xf32, #tpu.memory_space<vmem>>, vector<1x1x1x16xf32>
    %405 = vector.shape_cast %404 : vector<1x1x1x16xf32> to vector<1x16xf32>
    %406 = vector.broadcast %405 : vector<1x16xf32> to vector<16x16xf32>
    %407 = arith.addf %403, %406 : vector<16x16xf32>
    %c1_304 = arith.constant 1 : index
    %c2_305 = arith.constant 2 : index
    %c0_306 = arith.constant 0 : index
    %c0_307 = arith.constant 0 : index
    %408 = vector.load %arg12[%c1_304, %c2_305, %c0_306, %c0_307] : memref<2x4x64x16xf32, #tpu.memory_space<vmem>>, vector<1x1x64x16xf32>
    %409 = vector.shape_cast %408 : vector<1x1x64x16xf32> to vector<64x16xf32>
    %cst_308 = arith.constant dense<0.000000e+00> : vector<16x16xf32>
    %410 = tpu.matmul %308, %409, %cst_308 {dimension_numbers = #tpu.dot_dimension_numbers<[1], [0], [0], [1], [0, 0, 1, 1], [], []>} : vector<16x64xf32>, vector<64x16xf32>, vector<16x16xf32> -> vector<16x16xf32>
    %c1_309 = arith.constant 1 : index
    %c2_310 = arith.constant 2 : index
    %c0_311 = arith.constant 0 : index
    %c0_312 = arith.constant 0 : index
    %411 = vector.load %arg13[%c1_309, %c2_310, %c0_311, %c0_312] : memref<2x4x1x16xf32, #tpu.memory_space<vmem>>, vector<1x1x1x16xf32>
    %412 = vector.shape_cast %411 : vector<1x1x1x16xf32> to vector<1x16xf32>
    %413 = vector.broadcast %412 : vector<1x16xf32> to vector<16x16xf32>
    %414 = arith.addf %410, %413 : vector<16x16xf32>
    %415 = vector.shape_cast %400 : vector<16x16xf32> to vector<2x8x16xf32>
    %416 = vector.shape_cast %407 : vector<16x16xf32> to vector<2x8x16xf32>
    %417 = vector.shape_cast %414 : vector<16x16xf32> to vector<2x8x16xf32>
    "tpu.trace_start"() <{level = 10 : i32, message = "bqd,bkd->bqk"}> : () -> ()
    %cst_313 = arith.constant dense<0.000000e+00> : vector<2x8x8xf32>
    %418 = tpu.matmul %415, %416, %cst_313 {dimension_numbers = #tpu.dot_dimension_numbers<[2], [2], [1], [1], [0, 0, 0, 1, 1, 1], [0], [0]>} : vector<2x8x16xf32>, vector<2x8x16xf32>, vector<2x8x8xf32> -> vector<2x8x8xf32>
    %cst_314 = arith.constant -1.000000e+30 : f32
    "tpu.trace_stop"() : () -> ()
    %419 = vector.broadcast %cst_314 : f32 to vector<2x8x8xf32>
    %420 = arith.select %31, %418, %419 : vector<2x8x8xi1>, vector<2x8x8xf32>
    %cst_315 = arith.constant dense<0xFF800000> : vector<2x8xf32>
    %421 = vector.multi_reduction <maximumf>, %420, %cst_315 [2] : vector<2x8x8xf32> to vector<2x8xf32>
    %422 = vector.shape_cast %421 : vector<2x8xf32> to vector<2x8x1xf32>
    %423 = vector.broadcast %422 : vector<2x8x1xf32> to vector<2x8x8xf32>
    %424 = arith.subf %420, %423 : vector<2x8x8xf32>
    %425 = math.exp %424 : vector<2x8x8xf32>
    %cst_316 = arith.constant dense<0.000000e+00> : vector<2x8xf32>
    %426 = vector.multi_reduction <add>, %425, %cst_316 [2] : vector<2x8x8xf32> to vector<2x8xf32>
    %427 = vector.shape_cast %426 : vector<2x8xf32> to vector<2x8x1xf32>
    %428 = tpu.reciprocal %427 {approx = true} : vector<2x8x1xf32> -> vector<2x8x1xf32>
    %429 = vector.broadcast %428 : vector<2x8x1xf32> to vector<2x8x8xf32>
    %430 = arith.mulf %425, %429 : vector<2x8x8xf32>
    "tpu.trace_start"() <{level = 10 : i32, message = "bqk,bkd->bqd"}> : () -> ()
    %cst_317 = arith.constant dense<0.000000e+00> : vector<2x8x16xf32>
    %431 = tpu.matmul %430, %417, %cst_317 {dimension_numbers = #tpu.dot_dimension_numbers<[2], [1], [1], [2], [0, 0, 0, 1, 1, 2], [0], [0]>} : vector<2x8x8xf32>, vector<2x8x16xf32>, vector<2x8x16xf32> -> vector<2x8x16xf32>
    "tpu.trace_stop"() : () -> ()
    %432 = vector.shape_cast %431 : vector<2x8x16xf32> to vector<16x16xf32>
    %c1_318 = arith.constant 1 : index
    %c2_319 = arith.constant 2 : index
    %c0_320 = arith.constant 0 : index
    %c0_321 = arith.constant 0 : index
    %433 = vector.load %arg14[%c1_318, %c2_319, %c0_320, %c0_321] : memref<2x4x16x64xf32, #tpu.memory_space<vmem>>, vector<1x1x16x64xf32>
    %434 = vector.shape_cast %433 : vector<1x1x16x64xf32> to vector<16x64xf32>
    %cst_322 = arith.constant dense<0.000000e+00> : vector<16x64xf32>
    %435 = tpu.matmul %432, %434, %cst_322 {dimension_numbers = #tpu.dot_dimension_numbers<[1], [0], [0], [1], [0, 0, 1, 1], [], []>} : vector<16x16xf32>, vector<16x64xf32>, vector<16x64xf32> -> vector<16x64xf32>
    %436 = arith.addf %393, %435 : vector<16x64xf32>
    %c1_323 = arith.constant 1 : index
    %c3_324 = arith.constant 3 : index
    %c0_325 = arith.constant 0 : index
    %c0_326 = arith.constant 0 : index
    %437 = vector.load %arg8[%c1_323, %c3_324, %c0_325, %c0_326] : memref<2x4x64x16xf32, #tpu.memory_space<vmem>>, vector<1x1x64x16xf32>
    %438 = vector.shape_cast %437 : vector<1x1x64x16xf32> to vector<64x16xf32>
    %cst_327 = arith.constant dense<0.000000e+00> : vector<16x16xf32>
    %439 = tpu.matmul %308, %438, %cst_327 {dimension_numbers = #tpu.dot_dimension_numbers<[1], [0], [0], [1], [0, 0, 1, 1], [], []>} : vector<16x64xf32>, vector<64x16xf32>, vector<16x16xf32> -> vector<16x16xf32>
    %c1_328 = arith.constant 1 : index
    %c3_329 = arith.constant 3 : index
    %c0_330 = arith.constant 0 : index
    %c0_331 = arith.constant 0 : index
    %440 = vector.load %arg9[%c1_328, %c3_329, %c0_330, %c0_331] : memref<2x4x1x16xf32, #tpu.memory_space<vmem>>, vector<1x1x1x16xf32>
    %441 = vector.shape_cast %440 : vector<1x1x1x16xf32> to vector<1x16xf32>
    %442 = vector.broadcast %441 : vector<1x16xf32> to vector<16x16xf32>
    %443 = arith.addf %439, %442 : vector<16x16xf32>
    %c1_332 = arith.constant 1 : index
    %c3_333 = arith.constant 3 : index
    %c0_334 = arith.constant 0 : index
    %c0_335 = arith.constant 0 : index
    %444 = vector.load %arg10[%c1_332, %c3_333, %c0_334, %c0_335] : memref<2x4x64x16xf32, #tpu.memory_space<vmem>>, vector<1x1x64x16xf32>
    %445 = vector.shape_cast %444 : vector<1x1x64x16xf32> to vector<64x16xf32>
    %cst_336 = arith.constant dense<0.000000e+00> : vector<16x16xf32>
    %446 = tpu.matmul %308, %445, %cst_336 {dimension_numbers = #tpu.dot_dimension_numbers<[1], [0], [0], [1], [0, 0, 1, 1], [], []>} : vector<16x64xf32>, vector<64x16xf32>, vector<16x16xf32> -> vector<16x16xf32>
    %c1_337 = arith.constant 1 : index
    %c3_338 = arith.constant 3 : index
    %c0_339 = arith.constant 0 : index
    %c0_340 = arith.constant 0 : index
    %447 = vector.load %arg11[%c1_337, %c3_338, %c0_339, %c0_340] : memref<2x4x1x16xf32, #tpu.memory_space<vmem>>, vector<1x1x1x16xf32>
    %448 = vector.shape_cast %447 : vector<1x1x1x16xf32> to vector<1x16xf32>
    %449 = vector.broadcast %448 : vector<1x16xf32> to vector<16x16xf32>
    %450 = arith.addf %446, %449 : vector<16x16xf32>
    %c1_341 = arith.constant 1 : index
    %c3_342 = arith.constant 3 : index
    %c0_343 = arith.constant 0 : index
    %c0_344 = arith.constant 0 : index
    %451 = vector.load %arg12[%c1_341, %c3_342, %c0_343, %c0_344] : memref<2x4x64x16xf32, #tpu.memory_space<vmem>>, vector<1x1x64x16xf32>
    %452 = vector.shape_cast %451 : vector<1x1x64x16xf32> to vector<64x16xf32>
    %cst_345 = arith.constant dense<0.000000e+00> : vector<16x16xf32>
    %453 = tpu.matmul %308, %452, %cst_345 {dimension_numbers = #tpu.dot_dimension_numbers<[1], [0], [0], [1], [0, 0, 1, 1], [], []>} : vector<16x64xf32>, vector<64x16xf32>, vector<16x16xf32> -> vector<16x16xf32>
    %c1_346 = arith.constant 1 : index
    %c3_347 = arith.constant 3 : index
    %c0_348 = arith.constant 0 : index
    %c0_349 = arith.constant 0 : index
    %454 = vector.load %arg13[%c1_346, %c3_347, %c0_348, %c0_349] : memref<2x4x1x16xf32, #tpu.memory_space<vmem>>, vector<1x1x1x16xf32>
    %455 = vector.shape_cast %454 : vector<1x1x1x16xf32> to vector<1x16xf32>
    %456 = vector.broadcast %455 : vector<1x16xf32> to vector<16x16xf32>
    %457 = arith.addf %453, %456 : vector<16x16xf32>
    %458 = vector.shape_cast %443 : vector<16x16xf32> to vector<2x8x16xf32>
    %459 = vector.shape_cast %450 : vector<16x16xf32> to vector<2x8x16xf32>
    %460 = vector.shape_cast %457 : vector<16x16xf32> to vector<2x8x16xf32>
    "tpu.trace_start"() <{level = 10 : i32, message = "bqd,bkd->bqk"}> : () -> ()
    %cst_350 = arith.constant dense<0.000000e+00> : vector<2x8x8xf32>
    %461 = tpu.matmul %458, %459, %cst_350 {dimension_numbers = #tpu.dot_dimension_numbers<[2], [2], [1], [1], [0, 0, 0, 1, 1, 1], [0], [0]>} : vector<2x8x16xf32>, vector<2x8x16xf32>, vector<2x8x8xf32> -> vector<2x8x8xf32>
    %cst_351 = arith.constant -1.000000e+30 : f32
    "tpu.trace_stop"() : () -> ()
    %462 = vector.broadcast %cst_351 : f32 to vector<2x8x8xf32>
    %463 = arith.select %31, %461, %462 : vector<2x8x8xi1>, vector<2x8x8xf32>
    %cst_352 = arith.constant dense<0xFF800000> : vector<2x8xf32>
    %464 = vector.multi_reduction <maximumf>, %463, %cst_352 [2] : vector<2x8x8xf32> to vector<2x8xf32>
    %465 = vector.shape_cast %464 : vector<2x8xf32> to vector<2x8x1xf32>
    %466 = vector.broadcast %465 : vector<2x8x1xf32> to vector<2x8x8xf32>
    %467 = arith.subf %463, %466 : vector<2x8x8xf32>
    %468 = math.exp %467 : vector<2x8x8xf32>
    %cst_353 = arith.constant dense<0.000000e+00> : vector<2x8xf32>
    %469 = vector.multi_reduction <add>, %468, %cst_353 [2] : vector<2x8x8xf32> to vector<2x8xf32>
    %470 = vector.shape_cast %469 : vector<2x8xf32> to vector<2x8x1xf32>
    %471 = tpu.reciprocal %470 {approx = true} : vector<2x8x1xf32> -> vector<2x8x1xf32>
    %472 = vector.broadcast %471 : vector<2x8x1xf32> to vector<2x8x8xf32>
    %473 = arith.mulf %468, %472 : vector<2x8x8xf32>
    "tpu.trace_start"() <{level = 10 : i32, message = "bqk,bkd->bqd"}> : () -> ()
    %cst_354 = arith.constant dense<0.000000e+00> : vector<2x8x16xf32>
    %474 = tpu.matmul %473, %460, %cst_354 {dimension_numbers = #tpu.dot_dimension_numbers<[2], [1], [1], [2], [0, 0, 0, 1, 1, 2], [0], [0]>} : vector<2x8x8xf32>, vector<2x8x16xf32>, vector<2x8x16xf32> -> vector<2x8x16xf32>
    "tpu.trace_stop"() : () -> ()
    %475 = vector.shape_cast %474 : vector<2x8x16xf32> to vector<16x16xf32>
    %c1_355 = arith.constant 1 : index
    %c3_356 = arith.constant 3 : index
    %c0_357 = arith.constant 0 : index
    %c0_358 = arith.constant 0 : index
    %476 = vector.load %arg14[%c1_355, %c3_356, %c0_357, %c0_358] : memref<2x4x16x64xf32, #tpu.memory_space<vmem>>, vector<1x1x16x64xf32>
    %477 = vector.shape_cast %476 : vector<1x1x16x64xf32> to vector<16x64xf32>
    %cst_359 = arith.constant dense<0.000000e+00> : vector<16x64xf32>
    %478 = tpu.matmul %475, %477, %cst_359 {dimension_numbers = #tpu.dot_dimension_numbers<[1], [0], [0], [1], [0, 0, 1, 1], [], []>} : vector<16x16xf32>, vector<16x64xf32>, vector<16x64xf32> -> vector<16x64xf32>
    %479 = arith.addf %436, %478 : vector<16x64xf32>
    %480 = arith.addf %282, %479 : vector<16x64xf32>
    %c1_360 = arith.constant 1 : index
    %c0_361 = arith.constant 0 : index
    %c0_362 = arith.constant 0 : index
    %481 = vector.load %arg15[%c1_360, %c0_361, %c0_362] : memref<2x1x64xf32, #tpu.memory_space<vmem>>, vector<1x1x64xf32>
    %482 = vector.shape_cast %481 : vector<1x1x64xf32> to vector<1x64xf32>
    %483 = vector.broadcast %482 : vector<1x64xf32> to vector<16x64xf32>
    %484 = arith.addf %480, %483 : vector<16x64xf32>
    %c1_363 = arith.constant 1 : index
    %c0_364 = arith.constant 0 : index
    %c0_365 = arith.constant 0 : index
    %485 = vector.load %arg16[%c1_363, %c0_364, %c0_365] : memref<2x1x64xf32, #tpu.memory_space<vmem>>, vector<1x1x64xf32>
    %486 = vector.shape_cast %485 : vector<1x1x64xf32> to vector<1x64xf32>
    %c1_366 = arith.constant 1 : index
    %c0_367 = arith.constant 0 : index
    %c0_368 = arith.constant 0 : index
    %487 = vector.load %arg17[%c1_366, %c0_367, %c0_368] : memref<2x1x64xf32, #tpu.memory_space<vmem>>, vector<1x1x64xf32>
    %488 = vector.shape_cast %487 : vector<1x1x64xf32> to vector<1x64xf32>
    %cst_369 = arith.constant dense<0.000000e+00> : vector<16xf32>
    %489 = vector.multi_reduction <add>, %484, %cst_369 [1] : vector<16x64xf32> to vector<16xf32>
    %490 = vector.shape_cast %489 : vector<16xf32> to vector<16x1xf32>
    %cst_370 = arith.constant 6.400000e+01 : f32
    %491 = vector.broadcast %cst_370 : f32 to vector<16x1xf32>
    %492 = arith.divf %490, %491 : vector<16x1xf32>
    %493 = vector.broadcast %492 : vector<16x1xf32> to vector<16x64xf32>
    %494 = arith.subf %484, %493 : vector<16x64xf32>
    %495 = arith.mulf %494, %494 : vector<16x64xf32>
    %cst_371 = arith.constant dense<0.000000e+00> : vector<16xf32>
    %496 = vector.multi_reduction <add>, %495, %cst_371 [1] : vector<16x64xf32> to vector<16xf32>
    %497 = vector.shape_cast %496 : vector<16xf32> to vector<16x1xf32>
    %cst_372 = arith.constant 6.400000e+01 : f32
    %498 = vector.broadcast %cst_372 : f32 to vector<16x1xf32>
    %499 = arith.divf %497, %498 : vector<16x1xf32>
    %500 = vector.broadcast %492 : vector<16x1xf32> to vector<16x64xf32>
    %501 = arith.subf %484, %500 : vector<16x64xf32>
    %cst_373 = arith.constant 9.99999974E-6 : f32
    %502 = vector.broadcast %cst_373 : f32 to vector<16x1xf32>
    %503 = arith.addf %499, %502 : vector<16x1xf32>
    %504 = math.rsqrt %503 : vector<16x1xf32>
    %505 = vector.broadcast %504 : vector<16x1xf32> to vector<16x64xf32>
    %506 = arith.mulf %501, %505 : vector<16x64xf32>
    %507 = vector.broadcast %486 : vector<1x64xf32> to vector<16x64xf32>
    %508 = arith.mulf %506, %507 : vector<16x64xf32>
    %509 = vector.broadcast %488 : vector<1x64xf32> to vector<16x64xf32>
    %510 = arith.addf %508, %509 : vector<16x64xf32>
    %c1_374 = arith.constant 1 : index
    %c0_375 = arith.constant 0 : index
    %c0_376 = arith.constant 0 : index
    %511 = vector.load %arg18[%c1_374, %c0_375, %c0_376] : memref<2x64x256xf32, #tpu.memory_space<vmem>>, vector<1x64x256xf32>
    %512 = vector.shape_cast %511 : vector<1x64x256xf32> to vector<64x256xf32>
    %cst_377 = arith.constant dense<0.000000e+00> : vector<16x256xf32>
    %513 = tpu.matmul %510, %512, %cst_377 {dimension_numbers = #tpu.dot_dimension_numbers<[1], [0], [0], [1], [0, 0, 1, 1], [], []>} : vector<16x64xf32>, vector<64x256xf32>, vector<16x256xf32> -> vector<16x256xf32>
    %c1_378 = arith.constant 1 : index
    %c0_379 = arith.constant 0 : index
    %c0_380 = arith.constant 0 : index
    %514 = vector.load %arg19[%c1_378, %c0_379, %c0_380] : memref<2x1x256xf32, #tpu.memory_space<vmem>>, vector<1x1x256xf32>
    %515 = vector.shape_cast %514 : vector<1x1x256xf32> to vector<1x256xf32>
    %516 = vector.broadcast %515 : vector<1x256xf32> to vector<16x256xf32>
    %517 = arith.addf %513, %516 : vector<16x256xf32>
    %cst_381 = arith.constant 5.000000e-01 : f32
    %518 = vector.broadcast %cst_381 : f32 to vector<16x256xf32>
    %519 = arith.mulf %518, %517 : vector<16x256xf32>
    %cst_382 = arith.constant 0.707106769 : f32
    %520 = vector.broadcast %cst_382 : f32 to vector<16x256xf32>
    %521 = arith.mulf %517, %520 : vector<16x256xf32>
    %522 = math.erf %521 : vector<16x256xf32>
    %cst_383 = arith.constant 1.000000e+00 : f32
    %523 = vector.broadcast %cst_383 : f32 to vector<16x256xf32>
    %524 = arith.addf %523, %522 : vector<16x256xf32>
    %525 = arith.mulf %519, %524 : vector<16x256xf32>
    %c1_384 = arith.constant 1 : index
    %c0_385 = arith.constant 0 : index
    %c0_386 = arith.constant 0 : index
    %526 = vector.load %arg20[%c1_384, %c0_385, %c0_386] : memref<2x256x64xf32, #tpu.memory_space<vmem>>, vector<1x256x64xf32>
    %527 = vector.shape_cast %526 : vector<1x256x64xf32> to vector<256x64xf32>
    %cst_387 = arith.constant dense<0.000000e+00> : vector<16x64xf32>
    %528 = tpu.matmul %525, %527, %cst_387 {dimension_numbers = #tpu.dot_dimension_numbers<[1], [0], [0], [1], [0, 0, 1, 1], [], []>} : vector<16x256xf32>, vector<256x64xf32>, vector<16x64xf32> -> vector<16x64xf32>
    %c1_388 = arith.constant 1 : index
    %c0_389 = arith.constant 0 : index
    %c0_390 = arith.constant 0 : index
    %529 = vector.load %arg21[%c1_388, %c0_389, %c0_390] : memref<2x1x64xf32, #tpu.memory_space<vmem>>, vector<1x1x64xf32>
    %530 = vector.shape_cast %529 : vector<1x1x64xf32> to vector<1x64xf32>
    %531 = vector.broadcast %530 : vector<1x64xf32> to vector<16x64xf32>
    %532 = arith.addf %528, %531 : vector<16x64xf32>
    %533 = arith.addf %484, %532 : vector<16x64xf32>
    %534 = vector.shape_cast %533 : vector<16x64xf32> to vector<2x8x64xf32>
    %535 = vector.extract_strided_slice %534 {offsets = [0, 0, 0], sizes = [2, 1, 64], strides = [1, 1, 1]} : vector<2x8x64xf32> to vector<2x1x64xf32>
    %536 = vector.shape_cast %535 : vector<2x1x64xf32> to vector<2x64xf32>
    %c0_391 = arith.constant 0 : index
    %c0_392 = arith.constant 0 : index
    %537 = vector.load %arg22[%c0_391, %c0_392] : memref<1x64xf32, #tpu.memory_space<vmem>>, vector<1x64xf32>
    %c0_393 = arith.constant 0 : index
    %c0_394 = arith.constant 0 : index
    %538 = vector.load %arg23[%c0_393, %c0_394] : memref<1x64xf32, #tpu.memory_space<vmem>>, vector<1x64xf32>
    %cst_395 = arith.constant dense<0.000000e+00> : vector<2xf32>
    %539 = vector.multi_reduction <add>, %536, %cst_395 [1] : vector<2x64xf32> to vector<2xf32>
    %540 = vector.shape_cast %539 : vector<2xf32> to vector<2x1xf32>
    %cst_396 = arith.constant 6.400000e+01 : f32
    %541 = vector.broadcast %cst_396 : f32 to vector<2x1xf32>
    %542 = arith.divf %540, %541 : vector<2x1xf32>
    %543 = vector.broadcast %542 : vector<2x1xf32> to vector<2x64xf32>
    %544 = arith.subf %536, %543 : vector<2x64xf32>
    %545 = arith.mulf %544, %544 : vector<2x64xf32>
    %cst_397 = arith.constant dense<0.000000e+00> : vector<2xf32>
    %546 = vector.multi_reduction <add>, %545, %cst_397 [1] : vector<2x64xf32> to vector<2xf32>
    %547 = vector.shape_cast %546 : vector<2xf32> to vector<2x1xf32>
    %cst_398 = arith.constant 6.400000e+01 : f32
    %548 = vector.broadcast %cst_398 : f32 to vector<2x1xf32>
    %549 = arith.divf %547, %548 : vector<2x1xf32>
    %550 = vector.broadcast %542 : vector<2x1xf32> to vector<2x64xf32>
    %551 = arith.subf %536, %550 : vector<2x64xf32>
    %cst_399 = arith.constant 9.99999974E-6 : f32
    %552 = vector.broadcast %cst_399 : f32 to vector<2x1xf32>
    %553 = arith.addf %549, %552 : vector<2x1xf32>
    %554 = math.rsqrt %553 : vector<2x1xf32>
    %555 = vector.broadcast %554 : vector<2x1xf32> to vector<2x64xf32>
    %556 = arith.mulf %551, %555 : vector<2x64xf32>
    %557 = vector.broadcast %537 : vector<1x64xf32> to vector<2x64xf32>
    %558 = arith.mulf %556, %557 : vector<2x64xf32>
    %559 = vector.broadcast %538 : vector<1x64xf32> to vector<2x64xf32>
    %560 = arith.addf %558, %559 : vector<2x64xf32>
    %c0_400 = arith.constant 0 : index
    %c0_401 = arith.constant 0 : index
    %561 = vector.load %arg24[%c0_400, %c0_401] : memref<2x64xf32, #tpu.memory_space<vmem>>, vector<2x64xf32>
    tpu.vector_store %arg24[%c0_400, %c0_401], %560 {strides = array<i32>} : memref<2x64xf32, #tpu.memory_space<vmem>>, vector<2x64xf32>,
    return
  }
  func.func @transform_0(%arg0: i32) -> (i32, i32) {
    %c0_i32 = arith.constant 0 : i32
    %c0_i32_0 = arith.constant 0 : i32
    %c0_i32_1 = arith.constant 0 : i32
    return %c0_i32, %c0_i32_0 : i32, i32
  }
  func.func @transform_1(%arg0: i32) -> (i32, i32) {
    %c0_i32 = arith.constant 0 : i32
    %c0_i32_0 = arith.constant 0 : i32
    %c0_i32_1 = arith.constant 0 : i32
    return %c0_i32, %c0_i32_0 : i32, i32
  }
  func.func @transform_2(%arg0: i32) -> (i32, i32) {
    %c0_i32 = arith.constant 0 : i32
    %c0_i32_0 = arith.constant 0 : i32
    %c0_i32_1 = arith.constant 0 : i32
    return %c0_i32, %c0_i32_0 : i32, i32
  }
  func.func @transform_3(%arg0: i32) -> (i32, i32) {
    %c0_i32 = arith.constant 0 : i32
    %c0_i32_0 = arith.constant 0 : i32
    %c0_i32_1 = arith.constant 0 : i32
    return %c0_i32, %c0_i32_0 : i32, i32
  }
  func.func @transform_4(%arg0: i32) -> (i32, i32) {
    %c0_i32 = arith.constant 0 : i32
    %c0_i32_0 = arith.constant 0 : i32
    %c0_i32_1 = arith.constant 0 : i32
    return %c0_i32, %c0_i32_0 : i32, i32
  }
  func.func @transform_5(%arg0: i32) -> (i32, i32, i32) {
    %c0_i32 = arith.constant 0 : i32
    %c0_i32_0 = arith.constant 0 : i32
    %c0_i32_1 = arith.constant 0 : i32
    %c0_i32_2 = arith.constant 0 : i32
    return %c0_i32, %c0_i32_0, %c0_i32_1 : i32, i32, i32
  }
  func.func @transform_6(%arg0: i32) -> (i32, i32, i32) {
    %c0_i32 = arith.constant 0 : i32
    %c0_i32_0 = arith.constant 0 : i32
    %c0_i32_1 = arith.constant 0 : i32
    %c0_i32_2 = arith.constant 0 : i32
    return %c0_i32, %c0_i32_0, %c0_i32_1 : i32, i32, i32
  }
  func.func @transform_7(%arg0: i32) -> (i32, i32, i32, i32) {
    %c0_i32 = arith.constant 0 : i32
    %c0_i32_0 = arith.constant 0 : i32
    %c0_i32_1 = arith.constant 0 : i32
    %c0_i32_2 = arith.constant 0 : i32
    %c0_i32_3 = arith.constant 0 : i32
    return %c0_i32, %c0_i32_0, %c0_i32_1, %c0_i32_2 : i32, i32, i32, i32
  }
  func.func @transform_8(%arg0: i32) -> (i32, i32, i32, i32) {
    %c0_i32 = arith.constant 0 : i32
    %c0_i32_0 = arith.constant 0 : i32
    %c0_i32_1 = arith.constant 0 : i32
    %c0_i32_2 = arith.constant 0 : i32
    %c0_i32_3 = arith.constant 0 : i32
    return %c0_i32, %c0_i32_0, %c0_i32_1, %c0_i32_2 : i32, i32, i32, i32
  }
  func.func @transform_9(%arg0: i32) -> (i32, i32, i32, i32) {
    %c0_i32 = arith.constant 0 : i32
    %c0_i32_0 = arith.constant 0 : i32
    %c0_i32_1 = arith.constant 0 : i32
    %c0_i32_2 = arith.constant 0 : i32
    %c0_i32_3 = arith.constant 0 : i32
    return %c0_i32, %c0_i32_0, %c0_i32_1, %c0_i32_2 : i32, i32, i32, i32
  }
  func.func @transform_10(%arg0: i32) -> (i32, i32, i32, i32) {
    %c0_i32 = arith.constant 0 : i32
    %c0_i32_0 = arith.constant 0 : i32
    %c0_i32_1 = arith.constant 0 : i32
    %c0_i32_2 = arith.constant 0 : i32
    %c0_i32_3 = arith.constant 0 : i32
    return %c0_i32, %c0_i32_0, %c0_i32_1, %c0_i32_2 : i32, i32, i32, i32
  }
  func.func @transform_11(%arg0: i32) -> (i32, i32, i32, i32) {
    %c0_i32 = arith.constant 0 : i32
    %c0_i32_0 = arith.constant 0 : i32
    %c0_i32_1 = arith.constant 0 : i32
    %c0_i32_2 = arith.constant 0 : i32
    %c0_i32_3 = arith.constant 0 : i32
    return %c0_i32, %c0_i32_0, %c0_i32_1, %c0_i32_2 : i32, i32, i32, i32
  }
  func.func @transform_12(%arg0: i32) -> (i32, i32, i32, i32) {
    %c0_i32 = arith.constant 0 : i32
    %c0_i32_0 = arith.constant 0 : i32
    %c0_i32_1 = arith.constant 0 : i32
    %c0_i32_2 = arith.constant 0 : i32
    %c0_i32_3 = arith.constant 0 : i32
    return %c0_i32, %c0_i32_0, %c0_i32_1, %c0_i32_2 : i32, i32, i32, i32
  }
  func.func @transform_13(%arg0: i32) -> (i32, i32, i32, i32) {
    %c0_i32 = arith.constant 0 : i32
    %c0_i32_0 = arith.constant 0 : i32
    %c0_i32_1 = arith.constant 0 : i32
    %c0_i32_2 = arith.constant 0 : i32
    %c0_i32_3 = arith.constant 0 : i32
    return %c0_i32, %c0_i32_0, %c0_i32_1, %c0_i32_2 : i32, i32, i32, i32
  }
  func.func @transform_14(%arg0: i32) -> (i32, i32, i32) {
    %c0_i32 = arith.constant 0 : i32
    %c0_i32_0 = arith.constant 0 : i32
    %c0_i32_1 = arith.constant 0 : i32
    %c0_i32_2 = arith.constant 0 : i32
    return %c0_i32, %c0_i32_0, %c0_i32_1 : i32, i32, i32
  }
  func.func @transform_15(%arg0: i32) -> (i32, i32, i32) {
    %c0_i32 = arith.constant 0 : i32
    %c0_i32_0 = arith.constant 0 : i32
    %c0_i32_1 = arith.constant 0 : i32
    %c0_i32_2 = arith.constant 0 : i32
    return %c0_i32, %c0_i32_0, %c0_i32_1 : i32, i32, i32
  }
  func.func @transform_16(%arg0: i32) -> (i32, i32, i32) {
    %c0_i32 = arith.constant 0 : i32
    %c0_i32_0 = arith.constant 0 : i32
    %c0_i32_1 = arith.constant 0 : i32
    %c0_i32_2 = arith.constant 0 : i32
    return %c0_i32, %c0_i32_0, %c0_i32_1 : i32, i32, i32
  }
  func.func @transform_17(%arg0: i32) -> (i32, i32, i32) {
    %c0_i32 = arith.constant 0 : i32
    %c0_i32_0 = arith.constant 0 : i32
    %c0_i32_1 = arith.constant 0 : i32
    %c0_i32_2 = arith.constant 0 : i32
    return %c0_i32, %c0_i32_0, %c0_i32_1 : i32, i32, i32
  }
  func.func @transform_18(%arg0: i32) -> (i32, i32, i32) {
    %c0_i32 = arith.constant 0 : i32
    %c0_i32_0 = arith.constant 0 : i32
    %c0_i32_1 = arith.constant 0 : i32
    %c0_i32_2 = arith.constant 0 : i32
    return %c0_i32, %c0_i32_0, %c0_i32_1 : i32, i32, i32
  }
  func.func @transform_19(%arg0: i32) -> (i32, i32, i32) {
    %c0_i32 = arith.constant 0 : i32
    %c0_i32_0 = arith.constant 0 : i32
    %c0_i32_1 = arith.constant 0 : i32
    %c0_i32_2 = arith.constant 0 : i32
    return %c0_i32, %c0_i32_0, %c0_i32_1 : i32, i32, i32
  }
  func.func @transform_20(%arg0: i32) -> (i32, i32, i32) {
    %c0_i32 = arith.constant 0 : i32
    %c0_i32_0 = arith.constant 0 : i32
    %c0_i32_1 = arith.constant 0 : i32
    %c0_i32_2 = arith.constant 0 : i32
    return %c0_i32, %c0_i32_0, %c0_i32_1 : i32, i32, i32
  }
  func.func @transform_21(%arg0: i32) -> (i32, i32) {
    %c0_i32 = arith.constant 0 : i32
    %c0_i32_0 = arith.constant 0 : i32
    %c0_i32_1 = arith.constant 0 : i32
    return %c0_i32, %c0_i32_0 : i32, i32
  }
  func.func @transform_22(%arg0: i32) -> (i32, i32) {
    %c0_i32 = arith.constant 0 : i32
    %c0_i32_0 = arith.constant 0 : i32
    %c0_i32_1 = arith.constant 0 : i32
    return %c0_i32, %c0_i32_0 : i32, i32
  }
  func.func @transform_23(%arg0: i32) -> (i32, i32) {
    %c0_i32 = arith.constant 0 : i32
    %c0_i32_0 = arith.constant 0 : i32
    %c0_i32_1 = arith.constant 0 : i32
    return %c0_i32, %c0_i32_0 : i32, i32
  }
}

</mosaic_0001>

<bundles_post_ra>
// kernel: _lambda_.1
= control target key start
LH: loop header
LB: loop body
LE: loop exit
PB: predicated region body
PF: predicated region fallthrough
CT: control target
= control target key end

     0   :  { %s5229_s0 = inlined_call_operand.vmem [shape: f32[16,192], index: 0, kind: input, shape index: {}]   ;;  %s5230_s1 = inlined_call_operand.vmem [shape: f32[192,64], index: 1, kind: input, shape index: {}]   ;;  %s5231_s2 = inlined_call_operand.vmem [shape: f32[16,64], index: 2, kind: input, shape index: {}]   ;;  %s5232_s3 = inlined_call_operand.vmem [shape: f32[1,64], index: 3, kind: input, shape index: {}, may-alias: {3,21}]   ;;  %s5233_s4 = inlined_call_operand.vmem [shape: f32[1,64], index: 4, kind: input, shape index: {}, may-alias: {4,22}]   ;;  %s5234_s5 = inlined_call_operand.vmem [shape: f32[2,1,64], index: 5, kind: input, shape index: {}, may-alias: {5,15}]   ;;  %s5235_s6 = inlined_call_operand.vmem [shape: f32[2,1,64], index: 6, kind: input, shape index: {}, may-alias: {6,14,16,20}]   ;;  %s5236_s7 = inlined_call_operand.hbm [shape: f32[2,4,64,16], index: 7, kind: input, shape index: {}]   ;;  %s5237_s8 = inlined_call_operand.vmem [shape: f32[2,4,1,16], index: 8, kind: input, shape index: {}, may-alias: {8,10,12}]   ;;  %s5238_s9 = inlined_call_operand.hbm [shape: f32[2,4,64,16], index: 9, kind: input, shape index: {}]   ;;  %s5239_s10 = inlined_call_operand.vmem [shape: f32[2,4,1,16], index: 10, kind: input, shape index: {}, may-alias: {8,10,12}]   ;;  %s5240_s11 = inlined_call_operand.hbm [shape: f32[2,4,64,16], index: 11, kind: input, shape index: {}]   ;;  %s5241_s12 = inlined_call_operand.vmem [shape: f32[2,4,1,16], index: 12, kind: input, shape index: {}, may-alias: {8,10,12}]   ;;  %s5242_s13 = inlined_call_operand.vmem [shape: f32[2,4,16,64], index: 13, kind: input, shape index: {}]   ;;  %s5243_s14 = inlined_call_operand.vmem [shape: f32[2,1,64], index: 14, kind: input, shape index: {}, may-alias: {6,14,16,20}]   ;;  %s5244_s15 = inlined_call_operand.vmem [shape: f32[2,1,64], index: 15, kind: input, shape index: {}, may-alias: {5,15}]   ;;  %s5245_s16 = inlined_call_operand.vmem [shape: f32[2,1,64], index: 16, kind: input, shape index: {}, may-alias: {6,14,16,20}]   ;;  %s5246_s17 = inlined_call_operand.vmem [shape: f32[2,64,256], index: 17, kind: input, shape index: {}]   ;;  %s5247_s18 = inlined_call_operand.vmem [shape: f32[2,1,256], index: 18, kind: input, shape index: {}]   ;;  %s5248_s19 = inlined_call_operand.vmem [shape: f32[2,256,64], index: 19, kind: input, shape index: {}]   ;;  %s5249_s20 = inlined_call_operand.vmem [shape: f32[2,1,64], index: 20, kind: input, shape index: {}, may-alias: {6,14,16,20}]   ;;  %s5250_s21 = inlined_call_operand.vmem [shape: f32[1,64], index: 21, kind: input, shape index: {}, may-alias: {3,21}]   ;;  %s5251_s22 = inlined_call_operand.vmem [shape: f32[1,64], index: 22, kind: input, shape index: {}, may-alias: {4,22}]   ;;  %s5252_s23 = inlined_call_operand.hbm [shape: f32[2,64], index: 23, kind: output, shape index: {}]  }
   0x1   :  { %5258 = sst [smem:[#allocation12_spill]] %s5229_s0 }
   0x2   :  { %5259 = sst [smem:[#allocation13_spill]] %s5230_s1 }
   0x3   :  { %5260 = sst [smem:[#allocation14_spill]] %s5231_s2 }
   0x4   :  { %5261 = sst [smem:[#allocation15_spill]] %s5232_s3 }
   0x5   :  { %5262 = sst [smem:[#allocation16_spill]] %s5233_s4 }
   0x6   :  { %5263 = sst [smem:[#allocation17_spill]] %s5234_s5 }
   0x7   :  { %5264 = sst [smem:[#allocation18_spill]] %s5235_s6 }
   0x8   :  { %5265 = sst [smem:[#allocation19_spill]] %s5236_s7 }
   0x9   :  { %5266 = sst [smem:[#allocation20_spill]] %s5252_s23 }
   0xa   :  { %28 = vsyncpa [#allocation3], 0 }
   0xb   :  { %29 = vsyncpa [#allocation6], 0 }
   0xc   :  { %30 = vsyncpa [#allocation4], 0  ;;  %s64_s24 = sshll.u32 %s5238_s9, 4  ;;  %s3885_s25 = smov [#allocation5]   ;;  %s65_s24 = int_to_ptr.hbm [resolvable:$true] %s64_s24 }
   0xd   :  { %s66_s5 = sshll.u32 %s3885_s25, 4  ;;  %s5267_s2 = sld [smem:[#allocation19_spill]]  ;;  %s67_s5 = int_to_ptr.vmem [resolvable:$true] %s66_s5 }
   0xe   :  { %s3886_s27 = smov 128   ;;  %s3887_s7 = smov 8  }
   0xf   :  { %72 = dma.hbm_to_vmem [thread:$0]  %s65_s24, 8192, %s67_s5, [#allocation6], %s3886_s27, %s3886_s27, %s3887_s7  }
  0x10   :  { %s3888_s28 = smov [#allocation2]   ;;  %s79_s23 = sshll.u32 %s5240_s11, 4  ;;  %s80_s23 = int_to_ptr.hbm [resolvable:$true] %s79_s23 }
  0x11   :  { %s51_s29 = sshll.u32 %s3888_s28, 4  ;;  %s3889_s9 = smov [#allocation7]   ;;  %s52_s29 = int_to_ptr.vmem [resolvable:$true] %s51_s29 }
  0x12   :  { %s81_s4 = sshll.u32 %s3889_s9, 4  ;;  %s82_s4 = int_to_ptr.vmem [resolvable:$true] %s81_s4 }
  0x13   :  { %s49_s6 = sshll.u32 %s5267_s2, 4  ;;  %s50_s6 = int_to_ptr.hbm [resolvable:$true] %s49_s6 }
  0x14   :  { %57 = dma.hbm_to_vmem [thread:$0]  %s50_s6, 8192, %s52_s29, [#allocation3], %s3886_s27, %s3886_s27, %s3887_s7  }
  0x15   :  { %87 = dma.hbm_to_vmem [thread:$0]  %s80_s23, 8192, %s82_s4, [#allocation6], %s3886_s27, %s3886_s27, %s3887_s7  }
  0x16   :  { %3879 = dma.done.wait [#allocation3], 8192  }
  0x17   :  { %3880 = vsyncadd [#allocation3], 4294959104 }
  0x18   :  { %3881 = dma.done.wait [#allocation6], 16384  }
  0x19   :  { %3882 = vsyncadd [#allocation6], 4294950912  ;;  %s5268_s25 = sld [smem:[#allocation13_spill]]  ;;  %vm152_vm0 = vcmask 523264   ;;  %v3890_v40 = vmov 64.0   ;;  %vm438_vm14 = vcmask 130048  }
  0x1a   :  { %s5269_s11 = sld [smem:[#allocation12_spill]]  ;;  %3679 = vrcp.f32 %v3890_v40  ;;  %v571_v40 = vld [vmem:[#allocation2 + $0x70] sm:$0xff]  ;;  %s3891_s28 = smov [#allocation8]  }
  0x1b   :  { %s5270_s27 = sld [smem:[#allocation14_spill]] }
  0x1c   :  { %s5271_s29 = sld [smem:[#allocation15_spill]] }
  0x1d   :  { %s5272_s9 = sld [smem:[#allocation16_spill]] }
  0x1e   :  { %s5273_s24 = sld [smem:[#allocation17_spill]] }
  0x1f   :  { %v141_v0 = vld [vmem:[%s5268_s25 + $0x78] sm:$0xff]  ;;  %v140_v1 = vld [vmem:[%s5268_s25 + $0x70] sm:$0xff]  ;;  %v139_v2 = vld [vmem:[%s5268_s25 + $0x68] sm:$0xff]  ;;  %s5274_s26 = sld [smem:[#allocation18_spill]] }
  0x20   :  { %159 = vmatpush.msra.mxu0 %v141_v0  ;;  %v149_v3 = vld [vmem:[%s5268_s25 + $0xb8] sm:$0xff]  ;;  %v138_v4 = vld [vmem:[%s5268_s25 + $0x60] sm:$0xff]  ;;  %v148_v5 = vld [vmem:[%s5268_s25 + $0xb0] sm:$0xff]  ;;  %v3680_v41 = vpop.eup %3679 }
  0x21   :  { %190 = vmatpush.msra.mxu1 %v149_v3  ;;  %v147_v6 = vld [vmem:[%s5268_s25 + $0xa8] sm:$0xff]  ;;  %v137_v7 = vld [vmem:[%s5268_s25 + $0x58] sm:$0xff]  ;;  %v146_v8 = vld [vmem:[%s5268_s25 + $0xa0] sm:$0xff]  ;;  %v214_v42 = vmul.f32 64.0, %v3680_v41  ;;  %vm218_vm1 = vweird.f32 %v3680_v41 }
  0x22   :  { %160 = vmatpush.msra.mxu0 %v140_v1  ;;  %v136_v9 = vld [vmem:[%s5268_s25 + $0x50] sm:$0xff]  ;;  %v135_v10 = vld [vmem:[%s5268_s25 + $0x48] sm:$0xff]  ;;  %v145_v11 = vld [vmem:[%s5268_s25 + $0x98] sm:$0xff] }
  0x23   :  { %191 = vmatpush.msra.mxu1 %v148_v5  ;;  %v144_v12 = vld [vmem:[%s5268_s25 + $0x90] sm:$0xff]  ;;  %v134_v13 = vld [vmem:[%s5268_s25 + $0x40] sm:$0xff]  ;;  %v143_v14 = vld [vmem:[%s5268_s25 + $0x88] sm:$0xff]  ;;  %v215_v43 = vsub.f32 1.0, %v214_v42 }
  0x24   :  { %161 = vmatpush.msra.mxu0 %v139_v2  ;;  %v133_v15 = vld [vmem:[%s5268_s25 + $0x38] sm:$0xff]  ;;  %v142_v16 = vld [vmem:[%s5268_s25 + $0x80] sm:$0xff]  ;;  %v132_v17 = vld [vmem:[%s5268_s25 + $0x30] sm:$0xff] }
  0x25   :  { %192 = vmatpush.msra.mxu1 %v147_v6  ;;  %v123_v18 = vld [vmem:[%s5269_s11 + $0x8] sm:$0xff]  ;;  %v130_v20 = vld [vmem:[%s5268_s25 + $0x20] sm:$0xff]  ;;  %v129_v21 = vld [vmem:[%s5268_s25 + $0x18] sm:$0xff]  ;;  %v216_v44 = vmul.f32 %v3680_v41, %v215_v43 }
  0x26   :  { %162 = vmatpush.msra.mxu0 %v138_v4  ;;  %v131_v19 = vld [vmem:[%s5268_s25 + $0x28] sm:$0xff]  ;;  %v128_v22 = vld [vmem:[%s5268_s25 + $0x10] sm:$0xff]  ;;  %v125_v23 = vld [vmem:[%s5269_s11 + $0x18] sm:$0xff] }
  0x27   :  { %193 = vmatpush.msra.mxu1 %v146_v8  ;;  %v127_v24 = vld [vmem:[%s5268_s25 + $0x8] sm:$0xff]  ;;  %v126_v25 = vld [vmem:[%s5268_s25] sm:$0xff]  ;;  %v124_v27 = vld [vmem:[%s5269_s11 + $0x10] sm:$0xff]  ;;  %v217_v45 = vadd.f32 %v3680_v41, %v216_v44 }
  0x28   :  { %163 = vmatpush.msra.mxu0 %v137_v7  ;;  %v122_v26 = vld [vmem:[%s5269_s11] sm:$0xff]  ;;  %v151_v34 = vld [vmem:[%s5270_s27 + $0x8] sm:$0xff] }
  0x29   :  { %194 = vmatpush.msra.mxu1 %v145_v11  ;;  %v150_v28 = vld [vmem:[%s5270_s27] sm:$0xff]  ;;  %v4115_v46 = vsel %vm218_vm1, %v3680_v41, %v217_v45  ;;  %v332_v41 = vld [vmem:[#allocation2 + $0x28] sm:$0xff]  ;;  %vm493_vm1 = vcmask 64512  }
  0x2a   :  { %164 = vmatpush.msra.mxu0 %v136_v9  ;;  %v3639_v7 = vld [vmem:[%s5271_s29] ss:$0 sm:$0xff]  ;;  %v373_v42 = vld [vmem:[#allocation5 + $0x28] sm:$0xff]  ;;  %s3391_s29 = sshll.u32 %s3891_s28, 4  ;;  %s3392_s29 = int_to_ptr.vmem [resolvable:$true] %s3391_s29 }
  0x2b   :  { %195 = vmatpush.msra.mxu1 %v144_v12  ;;  %v3640_v11 = vld [vmem:[%s5272_s9] ss:$0 sm:$0xff]  ;;  %v408_v43 = vld [vmem:[#allocation7 + $0x28] sm:$0xff]  ;;  %s5275_s9 = sld [smem:[#allocation20_spill]] }
  0x2c   :  { %165 = vmatpush.msra.mxu0 %v135_v10  ;;  %v570_v44 = vld [vmem:[#allocation2 + $0x68] sm:$0xff]  ;;  %v331_v45 = vld [vmem:[#allocation2 + $0x20] sm:$0xff] }
  0x2d   :  { %196 = vmatpush.msra.mxu1 %v143_v14 }
  0x2e   :  { %166 = vmatpush.msra.mxu0 %v134_v13 }
  0x2f   :  { %197 = vmatpush.msra.mxu1 %v142_v16 }
  0x30   :  { %167 = vmatpush.msra.mxu0 %v133_v15  ;;  %3404 = vmatmul.msk.f32.vlgmr.msra.gmra.mxu1 %vm152_vm0, %v123_v18 }
  0x31   :  { %s3393_s4 = sshll.u32 %s5275_s9, 4  ;;  %s3394_s4 = int_to_ptr.hbm [resolvable:$true] %s3393_s4 }
  0x32   :  { %168 = vmatpush.msra.mxu0 %v132_v17 }
  0x34   :  { %169 = vmatpush.msra.mxu0 %v131_v19 }
  0x36   :  { %170 = vmatpush.msra.mxu0 %v130_v20 }
  0x38   :  { %171 = vmatpush.msra.mxu0 %v129_v21  ;;  %3405 = vmatmul.msk.f32.gmra.mxu1 %vm152_vm0, %v125_v23 }
  0x3a   :  { %172 = vmatpush.msra.mxu0 %v128_v22 }
  0x3c   :  { %173 = vmatpush.msra.mxu0 %v127_v24 }
  0x3e   :  { %174 = vmatpush.msra.mxu0 %v126_v25 }
  0x3f   :  { %175 = vmatmul.f32.vlgmr.msra.gmra.mxu0 %v122_v26 }
  0x47   :  { %178 = vmatmul.f32.gmra.mxu0 %v124_v27 }
  0xad   :  { %v199_v29 = vpop.f32.mrf.mxu1 }
  0xb5   :  { %v202_v36 = vpop.f32.mrf.mxu1 }
  0xbc   :  { %v176_v30 = vpop.f32.mrf.mxu0 }
  0xbd   :  { %v177_v31 = vadd.f32 %v176_v30, %v150_v28 }
  0xbf   :  { %v200_v32 = vadd.f32 %v199_v29, %v177_v31 }
  0xc1   :  { %v207_v33 = vsel %vm152_vm0, %v200_v32, 0.0 }
  0xc2   :  { %208 = vadd.xlane.f32.xlu0 %v207_v33  ;;  %v334_v33 = vld [vmem:[#allocation2 + $0x38] sm:$0xff] }
  0xc3   :  { %353 = vmatpush.msra.mxu2 %v334_v33 }
  0xc4   :  { %v179_v35 = vpop.f32.mrf.mxu0 }
  0xc5   :  { %v180_v37 = vadd.f32 %v179_v35, %v151_v34  ;;  %v375_v34 = vld [vmem:[#allocation5 + $0x38] sm:$0xff] }
  0xc6   :  { %v410_v35 = vld [vmem:[#allocation7 + $0x38] sm:$0xff]  ;;  %388 = vmatpush.msra.mxu3 %v375_v34 }
  0xc7   :  { %v203_v38 = vadd.f32 %v202_v36, %v180_v37  ;;  %v572_v36 = vld [vmem:[#allocation2 + $0x78] sm:$0xff]  ;;  %423 = vmatpush.msrb.mxu1 %v410_v35  ;;  %v333_v37 = vld [vmem:[#allocation2 + $0x30] sm:$0xff] }
  0xc8   :  { %586 = vmatpush.msrb.mxu0 %v572_v36  ;;  %354 = vmatpush.msra.mxu2 %v333_v37 }
  0xc9   :  { %v210_v39 = vsel %vm152_vm0, %v203_v38, 0.0 }
  0xca   :  { %211 = vadd.xlane.f32.xlu0 %v210_v39  ;;  %v409_v39 = vld [vmem:[#allocation7 + $0x30] sm:$0xff]  ;;  %587 = vmatpush.msrb.mxu0 %v571_v40 }
  0xcb   :  { %424 = vmatpush.msrb.mxu1 %v409_v39  ;;  %355 = vmatpush.msra.mxu2 %v332_v41  ;;  %v901_v41 = vld [vmem:[#allocation5 + $0xa8] sm:$0xff] }
  0xcc   :  { %588 = vmatpush.msrb.mxu0 %v570_v44  ;;  %v900_v44 = vld [vmem:[#allocation5 + $0xa0] sm:$0xff] }
  0xcd   :  { %425 = vmatpush.msrb.mxu1 %v408_v43  ;;  %356 = vmatpush.msra.mxu2 %v331_v45  ;;  %v898_v45 = vld [vmem:[#allocation5 + $0x90] sm:$0xff] }
 0x135   :  { %v209_v47 = vpop.xlane.xlu0 %208 }
 0x136   :  { %v220_v48 = vmul.f32 %v4115_v46, %v209_v47  ;;  %v372_v47 = vld [vmem:[#allocation5 + $0x20] sm:$0xff] }
 0x138   :  { %v222_v49 = vsub.f32 %v200_v32, %v220_v48  ;;  %v407_v48 = vld [vmem:[#allocation7 + $0x20] sm:$0xff] }
 0x139   :  { %426 = vmatpush.msrb.mxu1 %v407_v48  ;;  %v896_v48 = vld [vmem:[#allocation5 + $0x80] sm:$0xff] }
 0x13a   :  { %v224_v50 = vmul.f32 %v222_v49, %v222_v49 }
 0x13c   :  { %v226_v51 = vsel %vm152_vm0, %v224_v50, 0.0  ;;  %v330_v50 = vld [vmem:[#allocation2 + $0x18] sm:$0xff] }
 0x13d   :  { %227 = vadd.xlane.f32.xlu1 %v226_v51  ;;  %v212_v52 = vpop.xlane.xlu0 %211  ;;  %v371_v51 = vld [vmem:[#allocation5 + $0x18] sm:$0xff]  ;;  %357 = vmatpush.msra.mxu2 %v330_v50  ;;  %v3646_v50 = vld [vmem:[%s5239_s10] ss:$0 sm:$0xff] }
 0x13e   :  { %v221_v53 = vmul.f32 %v4115_v46, %v212_v52  ;;  %v406_v52 = vld [vmem:[#allocation7 + $0x18] sm:$0xff] }
 0x13f   :  { %427 = vmatpush.msrb.mxu1 %v406_v52  ;;  %v3645_v52 = vld [vmem:[%s5237_s8] ss:$0 sm:$0xff] }
 0x140   :  { %v223_v54 = vsub.f32 %v203_v38, %v221_v53  ;;  %v374_v38 = vld [vmem:[#allocation5 + $0x30] sm:$0xff]  ;;  %v568_v53 = vld [vmem:[#allocation2 + $0x58] sm:$0xff] }
 0x141   :  { %389 = vmatpush.msra.mxu3 %v374_v38  ;;  %v903_v38 = vld [vmem:[#allocation5 + $0xb8] sm:$0xff] }
 0x142   :  { %v225_v55 = vmul.f32 %v223_v54, %v223_v54 }
 0x143   :  { %390 = vmatpush.msra.mxu3 %v373_v42 }
 0x144   :  { %v229_v56 = vsel %vm152_vm0, %v225_v55, 0.0  ;;  %v370_v55 = vld [vmem:[#allocation5 + $0x10] sm:$0xff] }
 0x145   :  { %230 = vadd.xlane.f32.xlu1 %v229_v56  ;;  %391 = vmatpush.msra.mxu3 %v372_v47  ;;  %v405_v56 = vld [vmem:[#allocation7 + $0x10] sm:$0xff]  ;;  %v897_v47 = vld [vmem:[#allocation5 + $0x88] sm:$0xff] }
 0x146   :  { %428 = vmatpush.msrb.mxu1 %v405_v56 }
 0x147   :  { %392 = vmatpush.msra.mxu3 %v371_v51  ;;  %v3643_v51 = vld [vmem:[%s5241_s12] ss:$0 sm:$0xff] }
 0x149   :  { %393 = vmatpush.msra.mxu3 %v370_v55 }
 0x1b0   :  { %v228_v57 = vpop.xlane.xlu1 %227 }
 0x1b1   :  { %v232_v58 = vmul.f32 %v228_v57, %v4115_v46  ;;  %v567_v57 = vld [vmem:[#allocation2 + $0x50] sm:$0xff] }
 0x1b3   :  { %v234_v59 = vadd.f32 1e-05, %v232_v58  ;;  %v328_v58 = vld [vmem:[#allocation2 + $0x8] sm:$0xff] }
 0x1b5   :  { %3681 = vrsqrt.f32 %v234_v59  ;;  %vm242_vm3 = vweird.f32 %v234_v59 }
 0x1b8   :  { %v231_v60 = vpop.xlane.xlu1 %230 }
 0x1b9   :  { %v233_v61 = vmul.f32 %v231_v60, %v4115_v46  ;;  %v404_v60 = vld [vmem:[#allocation7 + $0x8] sm:$0xff] }
 0x1ba   :  { %429 = vmatpush.msrb.mxu1 %v404_v60 }
 0x1bb   :  { %v3682_v62 = vpop.eup %3681  ;;  %v235_v63 = vadd.f32 1e-05, %v233_v61  ;;  %v566_v61 = vld [vmem:[#allocation2 + $0x48] sm:$0xff] }
 0x1bc   :  { %v237_v0 = vmul.f32 %v3682_v62, %v234_v59  ;;  %vm243_vm2 = vweird.f32 %v3682_v62  ;;  %v369_v59 = vld [vmem:[#allocation5 + $0x8] sm:$0xff] }
 0x1bd   :  { %3683 = vrsqrt.f32 %v235_v63  ;;  %vm244_vm4 = vmor %vm242_vm3, %vm243_vm2  ;;  %vm252_vm6 = vweird.f32 %v235_v63  ;;  %394 = vmatpush.msra.mxu3 %v369_v59 }
 0x1be   :  { %v238_v1 = vmul.f32 %v3682_v62, %v237_v0  ;;  %v403_v0 = vld [vmem:[#allocation7] sm:$0xff] }
 0x1bf   :  { %430 = vmatpush.msrb.mxu1 %v403_v0 }
 0x1c0   :  { %v239_v2 = vmul.f32 0.5, %v238_v1  ;;  %v565_v1 = vld [vmem:[#allocation2 + $0x40] sm:$0xff] }
 0x1c2   :  { %v240_v3 = vsub.f32 1.5, %v239_v2  ;;  %v609_v2 = vld [vmem:[#allocation5 + $0x78] sm:$0xff] }
 0x1c3   :  { %v3684_v4 = vpop.eup %3683  ;;  %623 = vmatpush.msra.mxu1 %v609_v2 }
 0x1c4   :  { %v241_v5 = vmul.f32 %v3682_v62, %v240_v3  ;;  %v247_v6 = vmul.f32 %v3684_v4, %v235_v63  ;;  %vm253_vm5 = vweird.f32 %v3684_v4  ;;  %v368_v63 = vld [vmem:[#allocation5] sm:$0xff] }
 0x1c5   :  { %vm254_vm7 = vmor %vm252_vm6, %vm253_vm5  ;;  %395 = vmatpush.msra.mxu3 %v368_v63 }
 0x1c6   :  { %v245_v8 = vsel %vm244_vm4, %v3682_v62, %v241_v5  ;;  %v248_v9 = vmul.f32 %v3684_v4, %v247_v6  ;;  %v327_v62 = vld [vmem:[#allocation2] sm:$0xff]  ;;  %v607_v6 = vld [vmem:[#allocation5 + $0x68] sm:$0xff] }
 0x1c7   :  { %v256_v10 = vmul.f32 %v245_v8, %v222_v49  ;;  %v569_v49 = vld [vmem:[#allocation2 + $0x60] sm:$0xff] }
 0x1c8   :  { %v249_v12 = vmul.f32 0.5, %v248_v9  ;;  %589 = vmatpush.msrb.mxu0 %v569_v49  ;;  %v606_v8 = vld [vmem:[#allocation5 + $0x60] sm:$0xff]  ;;  %v605_v9 = vld [vmem:[#allocation5 + $0x58] sm:$0xff] }
 0x1c9   :  { %v261_v13 = vmul.f32 %v3639_v7, %v256_v10  ;;  %v604_v10 = vld [vmem:[#allocation5 + $0x50] sm:$0xff] }
 0x1ca   :  { %v250_v14 = vsub.f32 1.5, %v249_v12  ;;  %590 = vmatpush.msrb.mxu0 %v568_v53  ;;  %v603_v12 = vld [vmem:[#allocation5 + $0x48] sm:$0xff] }
 0x1cb   :  { %v4129_v15 = vadd.f32 %v3640_v11, %v261_v13 }
 0x1cc   :  { %v251_v16 = vmul.f32 %v3684_v4, %v250_v14  ;;  %591 = vmatpush.msrb.mxu0 %v567_v57  ;;  %v602_v14 = vld [vmem:[#allocation5 + $0x40] sm:$0xff] }
 0x1cd   :  { %v273_v17 = vsel %vm152_vm0, %v4129_v15, 0.0 }
 0x1ce   :  { %v255_v18 = vsel %vm254_vm7, %v3684_v4, %v251_v16  ;;  %274 = vadd.xlane.f32.xlu2 %v273_v17  ;;  %592 = vmatpush.msrb.mxu0 %v566_v61  ;;  %v608_v4 = vld [vmem:[#allocation5 + $0x70] sm:$0xff] }
 0x1cf   :  { %v257_v19 = vmul.f32 %v255_v18, %v223_v54  ;;  %v329_v54 = vld [vmem:[#allocation2 + $0x10] sm:$0xff]  ;;  %624 = vmatpush.msra.mxu1 %v608_v4  ;;  %v4214_v4 = vld [vmem:[%s5239_s10 + $0x2] ss:$0 sm:$0xff] }
 0x1d0   :  { %358 = vmatpush.msra.mxu2 %v329_v54  ;;  %593 = vmatpush.msrb.mxu0 %v565_v1 }
 0x1d1   :  { %v262_v20 = vmul.f32 %v3639_v7, %v257_v19  ;;  %625 = vmatpush.msra.mxu1 %v607_v6 }
 0x1d2   :  { %359 = vmatpush.msra.mxu2 %v328_v58 }
 0x1d3   :  { %v4133_v21 = vadd.f32 %v3640_v11, %v262_v20  ;;  %626 = vmatpush.msra.mxu1 %v606_v8 }
 0x1d4   :  { %360 = vmatpush.msra.mxu2 %v327_v62  ;;  %v4203_v62 = vld [vmem:[%s5239_s10 + $0x1] ss:$0 sm:$0xff] }
 0x1d5   :  { %v276_v22 = vsel %vm152_vm0, %v4133_v21, 0.0  ;;  %627 = vmatpush.msra.mxu1 %v605_v9 }
 0x1d6   :  { %277 = vadd.xlane.f32.xlu2 %v276_v22 }
 0x1d7   :  { %628 = vmatpush.msra.mxu1 %v604_v10 }
 0x1d9   :  { %629 = vmatpush.msra.mxu1 %v603_v12 }
 0x1db   :  { %630 = vmatpush.msra.mxu1 %v602_v14 }
 0x241   :  { %v275_v23 = vpop.xlane.xlu2 %274 }
 0x242   :  { %v279_v24 = vmul.f32 %v275_v23, %v4115_v46 }
 0x244   :  { %v4139_v25 = vsub.f32 %v4129_v15, %v279_v24 }
 0x246   :  { %v283_v26 = vmul.f32 %v4139_v25, %v4139_v25 }
 0x248   :  { %v285_v27 = vsel %vm152_vm0, %v283_v26, 0.0 }
 0x249   :  { %286 = vadd.xlane.f32.xlu0 %v285_v27  ;;  %v278_v28 = vpop.xlane.xlu2 %277  ;;  %v3641_v27 = vld [vmem:[%s5273_s24] ss:$0 sm:$0xff] }
 0x24a   :  { %v280_v29 = vmul.f32 %v278_v28, %v4115_v46 }
 0x24c   :  { %v4146_v30 = vsub.f32 %v4133_v21, %v280_v29 }
 0x24e   :  { %v284_v31 = vmul.f32 %v4146_v30, %v4146_v30 }
 0x250   :  { %v288_v32 = vsel %vm152_vm0, %v284_v31, 0.0  ;;  %v3642_v31 = vld [vmem:[%s5274_s26] ss:$0 sm:$0xff] }
 0x251   :  { %289 = vadd.xlane.f32.xlu1 %v288_v32 }
 0x2bc   :  { %v287_v3 = vpop.xlane.xlu0 %286 }
 0x2bd   :  { %v291_v5 = vmul.f32 %v287_v3, %v4115_v46 }
 0x2bf   :  { %v293_v7 = vadd.f32 1e-05, %v291_v5 }
 0x2c1   :  { %3685 = vrsqrt.f32 %v293_v7  ;;  %vm301_vm9 = vweird.f32 %v293_v7 }
 0x2c4   :  { %v290_v11 = vpop.xlane.xlu1 %289 }
 0x2c5   :  { %v292_v13 = vmul.f32 %v290_v11, %v4115_v46 }
 0x2c7   :  { %v3686_v16 = vpop.eup %3685  ;;  %v294_v17 = vadd.f32 1e-05, %v292_v13 }
 0x2c8   :  { %v296_v18 = vmul.f32 %v3686_v16, %v293_v7  ;;  %vm302_vm8 = vweird.f32 %v3686_v16  ;;  %v268_v7 = vlaneseq }
 0x2c9   :  { %3687 = vrsqrt.f32 %v294_v17  ;;  %vm303_vm10 = vmor %vm301_vm9, %vm302_vm8  ;;  %vm311_vm12 = vweird.f32 %v294_v17 }
 0x2ca   :  { %v297_v19 = vmul.f32 %v3686_v16, %v296_v18  ;;  %v4219_v8 = vand.u32 127, %v268_v7  ;;  %v644_v18 = vld [vmem:[#allocation7 + $0x68] sm:$0xff]  ;;  %v4283_v7 = vld [vmem:[%s5237_s8 + $0x2] ss:$0 sm:$0xff] }
 0x2cc   :  { %v298_v20 = vmul.f32 0.5, %v297_v19  ;;  %vm270_vm15 = vcmp.lt.s32.totalorder %v4219_v8, 5  ;;  %v3560_v8 = vld [vmem:[%s5242_s13 + $0x78] sm:$0xff] }
 0x2ce   :  { %v299_v22 = vsub.f32 1.5, %v298_v20 }
 0x2cf   :  { %v3688_v23 = vpop.eup %3687 }
 0x2d0   :  { %v300_v24 = vmul.f32 %v3686_v16, %v299_v22  ;;  %v306_v26 = vmul.f32 %v3688_v23, %v294_v17  ;;  %vm312_vm11 = vweird.f32 %v3688_v23  ;;  %v645_v17 = vld [vmem:[#allocation7 + $0x70] sm:$0xff] }
 0x2d1   :  { %vm313_vm13 = vmor %vm311_vm12, %vm312_vm11 }
 0x2d2   :  { %v304_v28 = vsel %vm303_vm10, %v3686_v16, %v300_v24  ;;  %v307_v29 = vmul.f32 %v3688_v23, %v306_v26  ;;  %v646_v16 = vld [vmem:[#allocation7 + $0x78] sm:$0xff] }
 0x2d3   :  { %v315_v32 = vmul.f32 %v304_v28, %v4139_v25  ;;  %v902_v25 = vld [vmem:[#allocation5 + $0xb0] sm:$0xff] }
 0x2d4   :  { %v308_v33 = vmul.f32 0.5, %v307_v29 }
 0x2d5   :  { %v320_v34 = vmul.f32 %v3641_v27, %v315_v32  ;;  %v643_v32 = vld [vmem:[#allocation7 + $0x60] sm:$0xff] }
 0x2d6   :  { %v309_v35 = vsub.f32 1.5, %v308_v33  ;;  %v642_v33 = vld [vmem:[#allocation7 + $0x58] sm:$0xff] }
 0x2d7   :  { %v4160_v36 = vadd.f32 %v3642_v31, %v320_v34  ;;  %v641_v34 = vld [vmem:[#allocation7 + $0x50] sm:$0xff] }
 0x2d8   :  { %v310_v37 = vmul.f32 %v3688_v23, %v309_v35  ;;  %v640_v35 = vld [vmem:[#allocation7 + $0x48] sm:$0xff] }
 0x2d9   :  { %3406 = vmatmul.msk.f32.vlgmr.msra.gmra.mxu2 %vm152_vm0, %v4160_v36  ;;  %3408 = vmatmul.msk.f32.vlgmr.msra.gmra.mxu3 %vm152_vm0, %v4160_v36 }
 0x2da   :  { %v314_v39 = vsel %vm313_vm13, %v3688_v23, %v310_v37  ;;  %3410 = vmatmul.msk.f32.vlgmr.msrb.gmra.mxu1 %vm152_vm0, %v4160_v36  ;;  %3419 = vmatmul.msk.f32.vlgmr.msrb.gmra.mxu0 %vm152_vm0, %v4160_v36  ;;  %v639_v37 = vld [vmem:[#allocation7 + $0x40] sm:$0xff] }
 0x2db   :  { %v316_v40 = vmul.f32 %v314_v39, %v4146_v30  ;;  %917 = vmatpush.msrb.mxu1 %v903_v38  ;;  %v899_v30 = vld [vmem:[#allocation5 + $0x98] sm:$0xff] }
 0x2dd   :  { %v321_v42 = vmul.f32 %v3641_v27, %v316_v40  ;;  %918 = vmatpush.msrb.mxu1 %v902_v25 }
 0x2df   :  { %v4171_v43 = vadd.f32 %v3642_v31, %v321_v42  ;;  %919 = vmatpush.msrb.mxu1 %v901_v41  ;;  %v4230_v41 = vld [vmem:[#allocation2 + $0xb8] sm:$0xff]  ;;  %v4233_v42 = vld [vmem:[#allocation2 + $0xb0] sm:$0xff] }
 0x2e1   :  { %3407 = vmatmul.msk.f32.gmra.mxu2 %vm152_vm0, %v4171_v43  ;;  %3409 = vmatmul.msk.f32.gmra.mxu3 %vm152_vm0, %v4171_v43 }
 0x2e2   :  { %3411 = vmatmul.msk.f32.gmra.mxu1 %vm152_vm0, %v4171_v43  ;;  %3420 = vmatmul.msk.f32.gmra.mxu0 %vm152_vm0, %v4171_v43 }
 0x2e3   :  { %920 = vmatpush.msrb.mxu1 %v900_v44  ;;  %v4236_v44 = vld [vmem:[#allocation2 + $0xa8] sm:$0xff] }
 0x2e5   :  { %921 = vmatpush.msrb.mxu1 %v899_v30  ;;  %v4239_v30 = vld [vmem:[#allocation2 + $0xa0] sm:$0xff] }
 0x2e7   :  { %922 = vmatpush.msrb.mxu1 %v898_v45 }
 0x2e9   :  { %923 = vmatpush.msrb.mxu1 %v897_v47 }
 0x2ea   :  { %3422 = vmatmul.msk.f32.vlgmr.msra.gmra.mxu1 %vm152_vm0, %v4160_v36 }
 0x2eb   :  { %924 = vmatpush.msrb.mxu1 %v896_v48  ;;  %v4242_v48 = vld [vmem:[#allocation2 + $0x98] sm:$0xff] }
 0x2f2   :  { %3423 = vmatmul.msk.f32.gmra.mxu1 %vm152_vm0, %v4171_v43 }
 0x2fa   :  { %3443 = vmatmul.msk.f32.vlgmr.msrb.gmra.mxu1 %vm152_vm0, %v4160_v36 }
 0x302   :  { %3444 = vmatmul.msk.f32.gmra.mxu1 %vm152_vm0, %v4171_v43 }
 0x357   :  { %v432_v49 = vpop.f32.mrf.mxu1 }
 0x358   :  { %v433_v56 = vadd.f32 %v3643_v51, %v432_v49 }
 0x35c   :  { %v362_v53 = vpop.f32.mrf.mxu2  ;;  %v397_v54 = vpop.f32.mrf.mxu3 }
 0x35d   :  { %v398_v55 = vadd.f32 %v3646_v50, %v397_v54  ;;  %v363_v58 = vadd.f32 %v3645_v52, %v362_v53  ;;  %v4257_v53 = vld [vmem:[#allocation2 + $0x88] sm:$0xff] }
 0x35f   :  { %v435_v57 = vpop.f32.mrf.mxu1  ;;  %3412 = vmatpush.xpose.msk.msrb.mxu2 %vm438_vm14, %v398_v55  ;;  %v4260_v55 = vld [vmem:[#allocation2 + $0x80] sm:$0xff] }
 0x360   :  { %v436_v63 = vadd.f32 %v3643_v51, %v435_v57  ;;  %v595_v51 = vpop.f32.mrf.mxu0 }
 0x362   :  { %3413 = vmatmul.msk.f32.vlgmr.msrb.gmra.mxu2 %vm438_vm14, %v363_v58 }
 0x363   :  { %534 = vmatpush.msra.mxu2 %v433_v56 }
 0x364   :  { %v400_v59 = vpop.f32.mrf.mxu3  ;;  %v365_v60 = vpop.f32.mrf.mxu2 }
 0x365   :  { %v401_v61 = vadd.f32 %v3646_v50, %v400_v59  ;;  %v366_v1 = vadd.f32 %v3645_v52, %v365_v60  ;;  %660 = vmatpush.msrb.mxu2 %v646_v16  ;;  %v4250_v50 = vld [vmem:[#allocation2 + $0x90] sm:$0xff]  ;;  %v3644_v52 = vld [vmem:[%s5237_s8 + $0x1] ss:$0 sm:$0xff] }
 0x366   :  { %v596_v56 = vadd.f32 %v3644_v52, %v595_v51  ;;  %v1132_v51 = vld [vmem:[#allocation2 + $0xf0] sm:$0xff] }
 0x367   :  { %v632_v0 = vpop.f32.mrf.mxu1  ;;  %3414 = vmatpush.xpose.msk.msrb.mxu3 %vm438_vm14, %v401_v61  ;;  %661 = vmatpush.msrb.mxu2 %v645_v17  ;;  %v3649_v61 = vld [vmem:[%s5241_s12 + $0x1] ss:$0 sm:$0xff] }
 0x368   :  { %v633_v2 = vadd.f32 %v4203_v62, %v632_v0  ;;  %v598_v58 = vpop.f32.mrf.mxu0 }
 0x369   :  { %662 = vmatpush.msrb.mxu2 %v644_v18  ;;  %v599_v59 = vadd.f32 %v3644_v52, %v598_v58  ;;  %v1131_v52 = vld [vmem:[#allocation2 + $0xe8] sm:$0xff]  ;;  %v1126_v58 = vld [vmem:[#allocation2 + $0xc0] sm:$0xff] }
 0x36a   :  { %3415 = vmatmul.msk.f32.vlgmr.msrb.gmra.mxu3 %vm438_vm14, %v366_v1 }
 0x36b   :  { %557 = vmatpush.msra.mxu3 %v436_v63  ;;  %663 = vmatpush.msrb.mxu2 %v643_v32  ;;  %v562_v32 = vld [vmem:[%s5242_s13] sm:$0xff] }
 0x36d   :  { %3427 = vmatpush.xpose.msk.msrb.mxu3 %vm438_vm14, %v633_v2  ;;  %664 = vmatpush.msrb.mxu2 %v642_v33 }
 0x36f   :  { %v4209_v3 = vpop.f32.mrf.mxu1  ;;  %665 = vmatpush.msrb.mxu2 %v641_v34  ;;  %v3434_v34 = vld [vmem:[%s5242_s13 + $0x18] sm:$0xff] }
 0x370   :  { %v636_v49 = vadd.f32 %v4203_v62, %v4209_v3 }
 0x371   :  { %666 = vmatpush.msrb.mxu2 %v640_v35 }
 0x373   :  { %667 = vmatpush.msrb.mxu2 %v639_v37 }
 0x377   :  { %v926_v5 = vpop.f32.mrf.mxu1 }
 0x378   :  { %v4217_v6 = vadd.f32 %v4214_v4, %v926_v5 }
 0x37f   :  { %v929_v54 = vpop.f32.mrf.mxu1 }
 0x380   :  { %v930_v57 = vadd.f32 %v4214_v4, %v929_v54  ;;  %v1129_v54 = vld [vmem:[#allocation2 + $0xd8] sm:$0xff] }
 0x3e5   :  { %v462_v9 = vpop.f32.mrf.mxu2 }
 0x3e6   :  { %v491_v10 = vsel %vm270_vm15, %v462_v9, -1e+30 }
 0x3e7   :  { %v494_v11 = vsel %vm493_vm1, %v491_v10, -inf }
 0x3e8   :  { %495 = vmax.xlane.f32.xlu1 %v494_v11 }
 0x3ed   :  { %v488_v12 = vpop.f32.mrf.mxu3 }
 0x3ee   :  { %v492_v13 = vsel %vm270_vm15, %v488_v12, -1e+30 }
 0x3ef   :  { %v497_v14 = vsel %vm493_vm1, %v492_v13, -inf }
 0x3f0   :  { %498 = vmax.xlane.f32.xlu2 %v497_v14 }
 0x45b   :  { %v496_v19 = vpop.xlane.xlu1 %495 }
 0x45c   :  { %v500_v20 = vsub.f32 %v491_v10, %v496_v19 }
 0x45e   :  { %v502_v22 = vmul.f32 1.442695, %v500_v20 }
 0x460   :  { %3689 = vpow2.f32 %v502_v22 }
 0x463   :  { %v499_v23 = vpop.xlane.xlu2 %498 }
 0x464   :  { %v501_v24 = vsub.f32 %v492_v13, %v499_v23 }
 0x466   :  { %v3690_v26 = vpop.eup %3689  ;;  %v504_v27 = vmul.f32 1.442695, %v501_v24 }
 0x467   :  { %v506_v28 = vsel %vm493_vm1, %v3690_v26, 0.0 }
 0x468   :  { %3691 = vpow2.f32 %v504_v27  ;;  %507 = vadd.xlane.f32.xlu2 %v506_v28 }
 0x46e   :  { %v3692_v29 = vpop.eup %3691 }
 0x46f   :  { %v509_v31 = vsel %vm493_vm1, %v3692_v29, 0.0 }
 0x470   :  { %510 = vadd.xlane.f32.xlu0 %v509_v31  ;;  %v563_v31 = vld [vmem:[%s5242_s13 + $0x8] sm:$0xff] }
 0x4db   :  { %v508_v38 = vpop.xlane.xlu2 %507 }
 0x4dc   :  { %3693 = vrcp.f32 %v508_v38 }
 0x4e2   :  { %v3694_v39 = vpop.eup %3693 }
 0x4e3   :  { %v514_v25 = vmul.f32 %v3694_v39, %v3690_v26  ;;  %v511_v40 = vpop.xlane.xlu0 %510 }
 0x4e4   :  { %3695 = vrcp.f32 %v511_v40  ;;  %v3433_v40 = vld [vmem:[%s5242_s13 + $0x10] sm:$0xff] }
 0x4e5   :  { %3416 = vmatmul.msk.f32.vlgmr.msra.gmra.mxu2 %vm493_vm1, %v514_v25 }
 0x4e6   :  { %3624 = vmatpush.msra.mxu2 %v4230_v41 }
 0x4e8   :  { %3625 = vmatpush.msra.mxu2 %v4233_v42 }
 0x4ea   :  { %v3696_v45 = vpop.eup %3695  ;;  %3626 = vmatpush.msra.mxu2 %v4236_v44 }
 0x4eb   :  { %v515_v47 = vmul.f32 %v3696_v45, %v3692_v29  ;;  %v935_v45 = vld [vmem:[#allocation7 + $0x90] sm:$0xff] }
 0x4ec   :  { %3627 = vmatpush.msra.mxu2 %v4239_v30 }
 0x4ed   :  { %3417 = vmatmul.msk.f32.vlgmr.msra.gmra.mxu3 %vm493_vm1, %v515_v47  ;;  %3425 = vmatmul.msk.f32.vlgmr.msrb.gmra.mxu2 %vm152_vm0, %v4160_v36  ;;  %v934_v47 = vld [vmem:[#allocation7 + $0x88] sm:$0xff] }
 0x4ee   :  { %3429 = vmatpush.xpose.msk.msra.mxu3 %vm438_vm14, %v636_v49  ;;  %3628 = vmatpush.msra.mxu2 %v4242_v48  ;;  %v1133_v49 = vld [vmem:[#allocation2 + $0xf8] sm:$0xff] }
 0x4f0   :  { %3629 = vmatpush.msra.mxu2 %v4250_v50 }
 0x4f2   :  { %3630 = vmatpush.msra.mxu2 %v4257_v53 }
 0x4f4   :  { %3631 = vmatpush.msra.mxu2 %v4260_v55 }
 0x4f5   :  { %3428 = vmatmul.msk.f32.vlgmr.msrb.gmra.mxu3 %vm438_vm14, %v596_v56  ;;  %3426 = vmatmul.msk.f32.gmra.mxu2 %vm152_vm0, %v4171_v43  ;;  %v1128_v56 = vld [vmem:[#allocation2 + $0xd0] sm:$0xff] }
 0x4f6   :  { %3450 = vmatpush.xpose.msk.msrb.mxu2 %vm438_vm14, %v930_v57  ;;  %v1127_v57 = vld [vmem:[#allocation2 + $0xc8] sm:$0xff] }
 0x4fd   :  { %3430 = vmatmul.msk.f32.vlgmr.msra.gmra.mxu3 %vm438_vm14, %v599_v59  ;;  %3441 = vmatmul.msk.f32.vlgmr.msra.gmra.mxu2 %vm152_vm0, %v4171_v43 }
 0x568   :  { %v536_v60 = vpop.f32.mrf.mxu2 }
 0x570   :  { %v4275_v62 = vpop.f32.mrf.mxu3  ;;  %v669_v63 = vpop.f32.mrf.mxu2 }
 0x571   :  { %v670_v0 = vadd.f32 %v3649_v61, %v669_v63 }
 0x573   :  { %769 = vmatpush.msra.mxu0 %v670_v0 }
 0x575   :  { %849 = vmatpush.msrb.mxu0 %v563_v31 }
 0x577   :  { %850 = vmatpush.msrb.mxu0 %v562_v32 }
 0x578   :  { %v698_v1 = vpop.f32.mrf.mxu3  ;;  %v672_v2 = vpop.f32.mrf.mxu2 }
 0x579   :  { %v727_v3 = vsel %vm270_vm15, %v698_v1, -1e+30  ;;  %v673_v4 = vadd.f32 %v3649_v61, %v672_v2 }
 0x57a   :  { %v729_v5 = vsel %vm493_vm1, %v727_v3, -inf }
 0x57b   :  { %730 = vmax.xlane.f32.xlu0 %v729_v5  ;;  %792 = vmatpush.msrb.mxu3 %v673_v4  ;;  %v3651_v4 = vld [vmem:[%s5241_s12 + $0x2] ss:$0 sm:$0xff] }
 0x57d   :  { %820 = vmatpush.msra.mxu3 %v3434_v34 }
 0x57f   :  { %821 = vmatpush.msra.mxu3 %v3433_v40  ;;  %v1166_v40 = vld [vmem:[#allocation5 + $0xd8] sm:$0xff] }
 0x580   :  { %v724_v9 = vpop.f32.mrf.mxu3  ;;  %v892_v10 = vpop.f32.mrf.mxu2 }
 0x581   :  { %v728_v11 = vsel %vm270_vm15, %v724_v9, -1e+30  ;;  %v893_v12 = vadd.f32 %v4283_v7, %v892_v10 }
 0x582   :  { %v732_v13 = vsel %vm493_vm1, %v728_v11, -inf }
 0x583   :  { %733 = vmax.xlane.f32.xlu2 %v732_v13  ;;  %3451 = vmatmul.msk.f32.vlgmr.msrb.gmra.mxu2 %vm438_vm14, %v893_v12 }
 0x5ee   :  { %v731_v14 = vpop.xlane.xlu0 %730 }
 0x5ef   :  { %v735_v16 = vsub.f32 %v727_v3, %v731_v14 }
 0x5f1   :  { %v737_v17 = vmul.f32 1.442695, %v735_v16 }
 0x5f3   :  { %3697 = vpow2.f32 %v737_v17  ;;  %v1207_v17 = vld [vmem:[#allocation7 + $0xf8] sm:$0xff] }
 0x5f6   :  { %v734_v18 = vpop.xlane.xlu2 %733 }
 0x5f7   :  { %v736_v19 = vsub.f32 %v728_v11, %v734_v18  ;;  %v1206_v18 = vld [vmem:[#allocation7 + $0xf0] sm:$0xff] }
 0x5f9   :  { %v3698_v20 = vpop.eup %3697  ;;  %v739_v22 = vmul.f32 1.442695, %v736_v19  ;;  %v1205_v19 = vld [vmem:[#allocation7 + $0xe8] sm:$0xff] }
 0x5fa   :  { %v741_v23 = vsel %vm493_vm1, %v3698_v20, 0.0 }
 0x5fb   :  { %3699 = vpow2.f32 %v739_v22  ;;  %742 = vadd.xlane.f32.xlu1 %v741_v23  ;;  %v1203_v22 = vld [vmem:[#allocation7 + $0xd8] sm:$0xff]  ;;  %v1202_v23 = vld [vmem:[#allocation7 + $0xd0] sm:$0xff] }
 0x601   :  { %v3700_v24 = vpop.eup %3699 }
 0x602   :  { %v744_v26 = vsel %vm493_vm1, %v3700_v24, 0.0 }
 0x603   :  { %745 = vadd.xlane.f32.xlu0 %v744_v26  ;;  %v1200_v26 = vld [vmem:[#allocation7 + $0xc0] sm:$0xff] }
 0x606   :  { %v1018_v27 = vpop.f32.mrf.mxu2 }
 0x607   :  { %v4294_v28 = vsel %vm270_vm15, %v1018_v27, -1e+30 }
 0x608   :  { %v1026_v29 = vsel %vm493_vm1, %v4294_v28, -inf }
 0x609   :  { %1027 = vmax.xlane.f32.xlu2 %v1026_v29 }
 0x66e   :  { %v743_v33 = vpop.xlane.xlu1 %742 }
 0x66f   :  { %3701 = vrcp.f32 %v743_v33 }
 0x675   :  { %v3702_v35 = vpop.eup %3701 }
 0x676   :  { %v749_v37 = vmul.f32 %v3702_v35, %v3698_v20  ;;  %v746_v38 = vpop.xlane.xlu0 %745  ;;  %v1204_v20 = vld [vmem:[#allocation7 + $0xe0] sm:$0xff] }
 0x677   :  { %3703 = vrcp.f32 %v746_v38  ;;  %v1169_v38 = vld [vmem:[#allocation5 + $0xf0] sm:$0xff] }
 0x678   :  { %3431 = vmatmul.msk.f32.vlgmr.msra.gmra.mxu0 %vm493_vm1, %v749_v37  ;;  %v1170_v37 = vld [vmem:[#allocation5 + $0xf8] sm:$0xff] }
 0x679   :  { %880 = vmatpush.msra.mxu0 %v4230_v41  ;;  %v940_v41 = vld [vmem:[#allocation7 + $0xb8] sm:$0xff] }
 0x67b   :  { %881 = vmatpush.msra.mxu0 %v4233_v42  ;;  %v939_v42 = vld [vmem:[#allocation7 + $0xb0] sm:$0xff] }
 0x67c   :  { %v1028_v0 = vpop.xlane.xlu2 %1027 }
 0x67d   :  { %v3704_v39 = vpop.eup %3703  ;;  %882 = vmatpush.msra.mxu0 %v4236_v44  ;;  %v938_v44 = vld [vmem:[#allocation7 + $0xa8] sm:$0xff]  ;;  %v1030_v1 = vsub.f32 %v4294_v28, %v1028_v0 }
 0x67e   :  { %v750_v25 = vmul.f32 %v3704_v39, %v3700_v24  ;;  %v1201_v24 = vld [vmem:[#allocation7 + $0xc8] sm:$0xff] }
 0x67f   :  { %883 = vmatpush.msra.mxu0 %v4239_v30  ;;  %v937_v30 = vld [vmem:[#allocation7 + $0xa0] sm:$0xff]  ;;  %v1033_v3 = vmul.f32 1.442695, %v1030_v1  ;;  %v1168_v39 = vld [vmem:[#allocation5 + $0xe8] sm:$0xff] }
 0x680   :  { %3432 = vmatmul.msk.f32.vlgmr.msrb.gmra.mxu3 %vm493_vm1, %v750_v25  ;;  %3437 = vmatmul.msk.f32.vlgmr.msrb.gmra.mxu0 %vm438_vm14, %v536_v60  ;;  %v1167_v25 = vld [vmem:[#allocation5 + $0xe0] sm:$0xff] }
 0x681   :  { %884 = vmatpush.msra.mxu0 %v4242_v48  ;;  %954 = vmatpush.msrb.mxu3 %v940_v41  ;;  %v933_v48 = vld [vmem:[#allocation7 + $0x80] sm:$0xff]  ;;  %3705 = vpow2.f32 %v1033_v3  ;;  %v1165_v41 = vld [vmem:[#allocation5 + $0xd0] sm:$0xff] }
 0x683   :  { %885 = vmatpush.msra.mxu0 %v4250_v50  ;;  %955 = vmatpush.msrb.mxu3 %v939_v42  ;;  %v1164_v42 = vld [vmem:[#allocation5 + $0xc8] sm:$0xff] }
 0x685   :  { %886 = vmatpush.msra.mxu0 %v4257_v53  ;;  %956 = vmatpush.msrb.mxu3 %v938_v44  ;;  %v1130_v53 = vld [vmem:[#allocation2 + $0xe0] sm:$0xff] }
 0x686   :  { %v1163_v44 = vld [vmem:[#allocation5 + $0xc0] sm:$0xff] }
 0x687   :  { %887 = vmatpush.msra.mxu0 %v4260_v55  ;;  %957 = vmatpush.msrb.mxu3 %v937_v30  ;;  %v3706_v12 = vpop.eup %3705 }
 0x688   :  { %3438 = vmatmul.msk.f32.gmra.mxu0 %vm438_vm14, %v4275_v62  ;;  %v1038_v16 = vsel %vm493_vm1, %v3706_v12, 0.0 }
 0x689   :  { %3448 = vmatpush.xpose.msk.msrb.mxu0 %vm438_vm14, %v4217_v6  ;;  %v936_v6 = vld [vmem:[#allocation7 + $0x98] sm:$0xff] }
 0x68a   :  { %958 = vmatpush.msrb.mxu3 %v936_v6  ;;  %v3455_v6 = vld [vmem:[%s5242_s13 + $0x28] sm:$0xff] }
 0x68b   :  { %1114 = vmatpush.msra.mxu2 %v3455_v6 }
 0x68c   :  { %959 = vmatpush.msrb.mxu3 %v935_v45 }
 0x68e   :  { %960 = vmatpush.msrb.mxu3 %v934_v47 }
 0x690   :  { %3440 = vmatmul.msk.f32.vlgmr.msra.gmra.mxu0 %vm152_vm0, %v4160_v36  ;;  %961 = vmatpush.msrb.mxu3 %v933_v48  ;;  %v3454_v48 = vld [vmem:[%s5242_s13 + $0x20] sm:$0xff] }
 0x691   :  { %1115 = vmatpush.msra.mxu2 %v3454_v48 }
 0x6f5   :  { %v771_v50 = vpop.f32.mrf.mxu0 }
 0x6f6   :  { %3435 = vmatmul.msk.f32.vlgmr.msra.gmra.mxu3 %vm438_vm14, %v771_v50 }
 0x6f7   :  { %1147 = vmatpush.msra.mxu3 %v1133_v49 }
 0x6f9   :  { %1148 = vmatpush.msra.mxu3 %v1132_v51 }
 0x6fb   :  { %1149 = vmatpush.msra.mxu3 %v1131_v52  ;;  %v3654_v52 = vld [vmem:[%s5239_s10 + $0x3] ss:$0 sm:$0xff] }
 0x6fd   :  { %v4328_v55 = vpop.f32.mrf.mxu0  ;;  %1150 = vmatpush.msra.mxu3 %v1130_v53 }
 0x6ff   :  { %1151 = vmatpush.msra.mxu3 %v1129_v54 }
 0x701   :  { %1152 = vmatpush.msra.mxu3 %v1128_v56 }
 0x703   :  { %v794_v59 = vpop.f32.mrf.mxu3  ;;  %1153 = vmatpush.msra.mxu3 %v1127_v57  ;;  %v3652_v57 = vld [vmem:[%s5237_s8 + $0x3] ss:$0 sm:$0xff] }
 0x704   :  { %3436 = vmatmul.msk.f32.gmra.mxu3 %vm438_vm14, %v794_v59 }
 0x705   :  { %1154 = vmatpush.msra.mxu3 %v1126_v58  ;;  %v4331_v60 = vpop.f32.mrf.mxu0 }
 0x70c   :  { %3446 = vmatmul.msk.f32.vlgmr.msrb.gmra.mxu3 %vm152_vm0, %v4160_v36 }
 0x70d   :  { %v889_v61 = vpop.f32.mrf.mxu0 }
 0x70e   :  { %v890_v62 = vadd.f32 %v4283_v7, %v889_v61 }
 0x710   :  { %3449 = vmatmul.msk.f32.vlgmr.msrb.gmra.mxu0 %vm438_vm14, %v890_v62 }
 0x714   :  { %3447 = vmatmul.msk.f32.gmra.mxu3 %vm152_vm0, %v4171_v43 }
 0x71c   :  { %3459 = vmatmul.msk.f32.vlgmr.msra.gmra.mxu3 %vm152_vm0, %v4160_v36 }
 0x724   :  { %3460 = vmatmul.msk.f32.gmra.mxu3 %vm152_vm0, %v4171_v43 }
 0x779   :  { %v4343_v63 = vpop.f32.mrf.mxu3 }
 0x787   :  { %v4346_v2 = vpop.f32.mrf.mxu3 }
 0x78d   :  { %v992_v5 = vpop.f32.mrf.mxu0 }
 0x78e   :  { %v1021_v7 = vsel %vm270_vm15, %v992_v5, -1e+30 }
 0x78f   :  { %v963_v9 = vpop.f32.mrf.mxu3  ;;  %v1023_v11 = vsel %vm493_vm1, %v1021_v7, -inf }
 0x790   :  { %v964_v10 = vadd.f32 %v3651_v4, %v963_v9  ;;  %1024 = vmax.xlane.f32.xlu1 %v1023_v11  ;;  %v856_v9 = vadd.f32 %v4331_v60, %v4346_v2 }
 0x792   :  { %1063 = vmatpush.msra.mxu0 %v964_v10 }
 0x794   :  { %1184 = vmatpush.msrb.mxu0 %v1170_v37 }
 0x796   :  { %1185 = vmatpush.msrb.mxu0 %v1169_v38 }
 0x797   :  { %v966_v13 = vpop.f32.mrf.mxu3 }
 0x798   :  { %v967_v14 = vadd.f32 %v3651_v4, %v966_v13  ;;  %1039 = vadd.xlane.f32.xlu1 %v1038_v16  ;;  %1186 = vmatpush.msrb.mxu0 %v1168_v39  ;;  %v853_v4 = vadd.f32 %v4328_v55, %v4343_v63 }
 0x79a   :  { %1086 = vmatpush.msra.mxu1 %v967_v14  ;;  %1187 = vmatpush.msrb.mxu0 %v1167_v25 }
 0x79c   :  { %1221 = vmatpush.msrb.mxu1 %v1207_v17  ;;  %1188 = vmatpush.msrb.mxu0 %v1166_v40  ;;  %v3655_v40 = vld [vmem:[%s5243_s14] ss:$0 sm:$0xff] }
 0x79e   :  { %1222 = vmatpush.msrb.mxu1 %v1206_v18  ;;  %1189 = vmatpush.msrb.mxu0 %v1165_v41 }
 0x79f   :  { %v1156_v53 = vpop.f32.mrf.mxu3 }
 0x7a0   :  { %1223 = vmatpush.msrb.mxu1 %v1205_v19  ;;  %1190 = vmatpush.msrb.mxu0 %v1164_v42  ;;  %v1157_v58 = vadd.f32 %v3652_v57, %v1156_v53 }
 0x7a2   :  { %1224 = vmatpush.msrb.mxu1 %v1204_v20  ;;  %1191 = vmatpush.msrb.mxu0 %v1163_v44 }
 0x7a4   :  { %1225 = vmatpush.msrb.mxu1 %v1203_v22 }
 0x7a6   :  { %1226 = vmatpush.msrb.mxu1 %v1202_v23 }
 0x7a7   :  { %v1159_v62 = vpop.f32.mrf.mxu3 }
 0x7a8   :  { %1227 = vmatpush.msrb.mxu1 %v1201_v24  ;;  %v1160_v3 = vadd.f32 %v3652_v57, %v1159_v62  ;;  %v1471_v57 = vld [vmem:[%s5246_s17 + $0x78] sm:$0xff] }
 0x7a9   :  { %v1467_v62 = vld [vmem:[%s5246_s17 + $0x58] sm:$0xff] }
 0x7aa   :  { %1228 = vmatpush.msrb.mxu1 %v1200_v26 }
 0x803   :  { %v1025_v27 = vpop.xlane.xlu1 %1024 }
 0x804   :  { %v1029_v28 = vsub.f32 %v1021_v7, %v1025_v27  ;;  %v3474_v27 = vld [vmem:[%s5242_s13 + $0x38] sm:$0xff] }
 0x806   :  { %v1031_v29 = vmul.f32 1.442695, %v1029_v28 }
 0x808   :  { %3707 = vpow2.f32 %v1031_v29 }
 0x80b   :  { %v1040_v31 = vpop.xlane.xlu1 %1039 }
 0x80c   :  { %3709 = vrcp.f32 %v1040_v31 }
 0x80e   :  { %v3708_v32 = vpop.eup %3707 }
 0x80f   :  { %v1035_v33 = vsel %vm493_vm1, %v3708_v32, 0.0 }
 0x810   :  { %1036 = vadd.xlane.f32.xlu0 %v1035_v33 }
 0x812   :  { %v3710_v34 = vpop.eup %3709 }
 0x813   :  { %v1044_v35 = vmul.f32 %v3710_v34, %v3706_v12 }
 0x815   :  { %3453 = vmatmul.msk.f32.vlgmr.msra.gmra.mxu1 %vm493_vm1, %v1044_v35  ;;  %v3473_v35 = vld [vmem:[%s5242_s13 + $0x30] sm:$0xff] }
 0x81d   :  { %3465 = vmatmul.msk.f32.vlgmr.msrb.gmra.mxu1 %vm152_vm0, %v4160_v36 }
 0x825   :  { %3466 = vmatmul.msk.f32.gmra.mxu1 %vm152_vm0, %v4171_v43 }
 0x883   :  { %v1037_v30 = vpop.xlane.xlu0 %1036 }
 0x884   :  { %3711 = vrcp.f32 %v1037_v30 }
 0x88a   :  { %v3712_v45 = vpop.eup %3711 }
 0x88b   :  { %v1043_v47 = vmul.f32 %v3712_v45, %v3708_v32 }
 0x88d   :  { %3452 = vmatmul.msk.f32.vlgmr.msra.gmra.mxu0 %vm493_vm1, %v1043_v47 }
 0x88e   :  { %1381 = vmatpush.msra.mxu0 %v3474_v27 }
 0x890   :  { %1382 = vmatpush.msra.mxu0 %v3473_v35 }
 0x892   :  { %v1088_v49 = vpop.f32.mrf.mxu1 }
 0x895   :  { %3462 = vmatmul.msk.f32.vlgmr.msrb.gmra.mxu0 %vm152_vm0, %v4160_v36  ;;  %v3653_v36 = vld [vmem:[%s5241_s12 + $0x3] ss:$0 sm:$0xff] }
 0x89a   :  { %v1230_v51 = vpop.f32.mrf.mxu1 }
 0x89b   :  { %v1231_v56 = vadd.f32 %v3653_v36, %v1230_v51 }
 0x89d   :  { %3463 = vmatmul.msk.f32.gmra.mxu0 %vm152_vm0, %v4171_v43 }
 0x8a2   :  { %v1233_v59 = vpop.f32.mrf.mxu1 }
 0x8a3   :  { %v1234_v1 = vadd.f32 %v3653_v36, %v1233_v59  ;;  %v1469_v59 = vld [vmem:[%s5246_s17 + $0x68] sm:$0xff] }
 0x90a   :  { %v1065_v50 = vpop.f32.mrf.mxu0 }
 0x90b   :  { %3456 = vmatmul.msk.f32.vlgmr.msra.gmra.mxu2 %vm438_vm14, %v1065_v50 }
 0x912   :  { %v1193_v43 = vpop.f32.mrf.mxu0 }
 0x913   :  { %v1194_v54 = vadd.f32 %v3654_v52, %v1193_v43  ;;  %3457 = vmatmul.msk.f32.gmra.mxu2 %vm438_vm14, %v1088_v49 }
 0x915   :  { %3467 = vmatpush.xpose.msk.msrb.mxu2 %vm438_vm14, %v1194_v54 }
 0x919   :  { %1330 = vmatpush.msra.mxu2 %v1231_v56  ;;  %v1470_v56 = vld [vmem:[%s5246_s17 + $0x70] sm:$0xff] }
 0x91a   :  { %v1196_v61 = vpop.f32.mrf.mxu0  ;;  %1492 = vmatpush.msra.mxu1 %v1470_v56  ;;  %v1715_v56 = vld [vmem:[%s5248_s19 + $0x48] sm:$0xff] }
 0x91b   :  { %v1197_v0 = vadd.f32 %v3654_v52, %v1196_v61  ;;  %3468 = vmatmul.msk.f32.vlgmr.msrb.gmra.mxu2 %vm438_vm14, %v1157_v58  ;;  %v1468_v58 = vld [vmem:[%s5246_s17 + $0x60] sm:$0xff]  ;;  %v1466_v61 = vld [vmem:[%s5246_s17 + $0x50] sm:$0xff] }
 0x91c   :  { %1515 = vmatpush.msrb.mxu2 %v1471_v57  ;;  %1493 = vmatpush.msra.mxu1 %v1468_v58  ;;  %v1734_v57 = vld [vmem:[%s5248_s19 + $0xe0] sm:$0xff] }
 0x91d   :  { %3469 = vmatpush.xpose.msk.msrb.mxu3 %vm438_vm14, %v1197_v0  ;;  %v1464_v0 = vld [vmem:[%s5246_s17 + $0x40] sm:$0xff] }
 0x91e   :  { %1516 = vmatpush.msrb.mxu2 %v1469_v59  ;;  %1494 = vmatpush.msra.mxu1 %v1466_v61 }
 0x920   :  { %3470 = vmatmul.msk.f32.vlgmr.msrb.gmra.mxu3 %vm438_vm14, %v1160_v3  ;;  %1517 = vmatpush.msrb.mxu2 %v1467_v62  ;;  %v1462_v3 = vld [vmem:[%s5246_s17 + $0x30] sm:$0xff]  ;;  %v1714_v62 = vld [vmem:[%s5248_s19 + $0x40] sm:$0xff] }
 0x921   :  { %1353 = vmatpush.msra.mxu3 %v1234_v1  ;;  %v1465_v1 = vld [vmem:[%s5246_s17 + $0x48] sm:$0xff]  ;;  %1495 = vmatpush.msra.mxu1 %v1464_v0  ;;  %v1733_v0 = vld [vmem:[%s5248_s19 + $0xd8] sm:$0xff] }
 0x922   :  { %1518 = vmatpush.msrb.mxu2 %v1465_v1 }
 0x923   :  { %1496 = vmatpush.msra.mxu1 %v1462_v3 }
 0x98e   :  { %v1117_v5 = vpop.f32.mrf.mxu2 }
 0x98f   :  { %v1123_v7 = vadd.f32 %v1117_v5, %v853_v4  ;;  %v1463_v4 = vld [vmem:[%s5246_s17 + $0x38] sm:$0xff]  ;;  %v1460_v5 = vld [vmem:[%s5246_s17 + $0x20] sm:$0xff] }
 0x990   :  { %1519 = vmatpush.msrb.mxu2 %v1463_v4  ;;  %1497 = vmatpush.msra.mxu1 %v1460_v5 }
 0x996   :  { %v1120_v10 = vpop.f32.mrf.mxu2 }
 0x997   :  { %v1124_v11 = vadd.f32 %v1120_v10, %v856_v9  ;;  %v1458_v9 = vld [vmem:[%s5246_s17 + $0x10] sm:$0xff]  ;;  %v1459_v10 = vld [vmem:[%s5246_s17 + $0x18] sm:$0xff] }
 0x998   :  { %1498 = vmatpush.msra.mxu1 %v1458_v9 }
 0x99e   :  { %v1259_v12 = vpop.f32.mrf.mxu2 }
 0x99f   :  { %v1288_v13 = vsel %vm270_vm15, %v1259_v12, -1e+30  ;;  %v1457_v12 = vld [vmem:[%s5246_s17 + $0x8] sm:$0xff] }
 0x9a0   :  { %v1290_v14 = vsel %vm493_vm1, %v1288_v13, -inf }
 0x9a1   :  { %1291 = vmax.xlane.f32.xlu2 %v1290_v14 }
 0x9a3   :  { %v1285_v16 = vpop.f32.mrf.mxu3 }
 0x9a4   :  { %v1289_v17 = vsel %vm270_vm15, %v1285_v16, -1e+30 }
 0x9a5   :  { %v1293_v55 = vsel %vm493_vm1, %v1289_v17, -inf }
 0x9a6   :  { %1294 = vmax.xlane.f32.xlu0 %v1293_v55 }
 0xa14   :  { %v1292_v63 = vpop.xlane.xlu2 %1291 }
 0xa15   :  { %v1296_v18 = vsub.f32 %v1288_v13, %v1292_v63 }
 0xa17   :  { %v1298_v19 = vmul.f32 1.442695, %v1296_v18 }
 0xa19   :  { %3713 = vpow2.f32 %v1298_v19  ;;  %v1295_v60 = vpop.xlane.xlu0 %1294 }
 0xa1a   :  { %v1297_v2 = vsub.f32 %v1289_v17, %v1295_v60 }
 0xa1c   :  { %v1300_v20 = vmul.f32 1.442695, %v1297_v2 }
 0xa1e   :  { %3715 = vpow2.f32 %v1300_v20 }
 0xa1f   :  { %v3714_v22 = vpop.eup %3713 }
 0xa20   :  { %v1302_v23 = vsel %vm493_vm1, %v3714_v22, 0.0 }
 0xa21   :  { %1303 = vadd.xlane.f32.xlu1 %v1302_v23 }
 0xa24   :  { %v3716_v24 = vpop.eup %3715 }
 0xa25   :  { %v1305_v26 = vsel %vm493_vm1, %v3716_v24, 0.0 }
 0xa26   :  { %1306 = vadd.xlane.f32.xlu2 %v1305_v26  ;;  %v3656_v26 = vld [vmem:[%s5244_s15] ss:$0 sm:$0xff] }
 0xa94   :  { %v1304_v28 = vpop.xlane.xlu1 %1303 }
 0xa95   :  { %3717 = vrcp.f32 %v1304_v28 }
 0xa99   :  { %v1307_v29 = vpop.xlane.xlu2 %1306 }
 0xa9a   :  { %3719 = vrcp.f32 %v1307_v29 }
 0xa9b   :  { %v3718_v31 = vpop.eup %3717 }
 0xa9c   :  { %v1310_v32 = vmul.f32 %v3718_v31, %v3714_v22  ;;  %v3657_v31 = vld [vmem:[%s5245_s16] ss:$0 sm:$0xff] }
 0xa9e   :  { %3471 = vmatmul.msk.f32.vlgmr.msra.gmra.mxu2 %vm493_vm1, %v1310_v32 }
 0xaa0   :  { %v3720_v33 = vpop.eup %3719 }
 0xaa1   :  { %v1311_v34 = vmul.f32 %v3720_v33, %v3716_v24 }
 0xaa3   :  { %3472 = vmatmul.msk.f32.vlgmr.msra.gmra.mxu3 %vm493_vm1, %v1311_v34 }
 0xb21   :  { %v1332_v37 = vpop.f32.mrf.mxu2 }
 0xb22   :  { %3475 = vmatmul.msk.f32.vlgmr.msra.gmra.mxu0 %vm438_vm14, %v1332_v37 }
 0xb26   :  { %v1355_v38 = vpop.f32.mrf.mxu3 }
 0xb2a   :  { %3476 = vmatmul.msk.f32.gmra.mxu0 %vm438_vm14, %v1355_v38 }
 0xb9f   :  { %v1384_v39 = vpop.f32.mrf.mxu0 }
 0xba0   :  { %v1390_v25 = vadd.f32 %v1384_v39, %v1123_v7  ;;  %v1461_v7 = vld [vmem:[%s5246_s17 + $0x28] sm:$0xff] }
 0xba1   :  { %1520 = vmatpush.msrb.mxu2 %v1461_v7  ;;  %v1713_v7 = vld [vmem:[%s5248_s19 + $0x38] sm:$0xff] }
 0xba2   :  { %v1392_v41 = vadd.f32 %v1390_v25, %v4129_v15 }
 0xba3   :  { %1521 = vmatpush.msrb.mxu2 %v1459_v10  ;;  %v1732_v10 = vld [vmem:[%s5248_s19 + $0xd0] sm:$0xff] }
 0xba4   :  { %v4413_v42 = vadd.f32 %v3655_v40, %v1392_v41  ;;  %v1721_v41 = vld [vmem:[%s5248_s19 + $0x78] sm:$0xff] }
 0xba5   :  { %1522 = vmatpush.msrb.mxu2 %v1457_v12  ;;  %1742 = vmatpush.msrb.mxu3 %v1721_v41 }
 0xba6   :  { %v1402_v44 = vsel %vm152_vm0, %v4413_v42, 0.0 }
 0xba7   :  { %1403 = vadd.xlane.f32.xlu0 %v1402_v44  ;;  %v1387_v30 = vpop.f32.mrf.mxu0  ;;  %v4504_v44 = vld [vmem:[%s5247_s18] sm:$0x3] }
 0xba8   :  { %v1391_v6 = vadd.f32 %v1387_v30, %v1124_v11  ;;  %v1456_v11 = vld [vmem:[%s5246_s17] sm:$0xff]  ;;  %v1720_v30 = vld [vmem:[%s5248_s19 + $0x70] sm:$0xff] }
 0xba9   :  { %1499 = vmatpush.msra.mxu1 %v1456_v11  ;;  %1743 = vmatpush.msrb.mxu3 %v1720_v30  ;;  %v1727_v30 = vld [vmem:[%s5248_s19 + $0xa8] sm:$0xff] }
 0xbaa   :  { %v1393_v45 = vadd.f32 %v1391_v6, %v4133_v21  ;;  %v1474_v6 = vperm.slane %v4504_v44, 0 }
 0xbac   :  { %v4418_v47 = vadd.f32 %v3655_v40, %v1393_v45  ;;  %v1719_v45 = vld [vmem:[%s5248_s19 + $0x68] sm:$0xff] }
 0xbad   :  { %1744 = vmatpush.msrb.mxu3 %v1719_v45 }
 0xbae   :  { %v1405_v48 = vsel %vm152_vm0, %v4418_v47, 0.0 }
 0xbaf   :  { %1406 = vadd.xlane.f32.xlu1 %v1405_v48  ;;  %v1718_v48 = vld [vmem:[%s5248_s19 + $0x60] sm:$0xff] }
 0xbb0   :  { %1745 = vmatpush.msrb.mxu3 %v1718_v48 }
 0xc1a   :  { %v1404_v49 = vpop.xlane.xlu0 %1403 }
 0xc1b   :  { %v1408_v50 = vmul.f32 %v1404_v49, %v4115_v46  ;;  %v1737_v49 = vld [vmem:[%s5248_s19 + $0xf8] sm:$0xff] }
 0xc1c   :  { %1765 = vmatpush.msrb.mxu0 %v1737_v49 }
 0xc1d   :  { %v4424_v15 = vsub.f32 %v4413_v42, %v1408_v50 }
 0xc1f   :  { %v1412_v51 = vmul.f32 %v4424_v15, %v4424_v15 }
 0xc21   :  { %v1414_v52 = vsel %vm152_vm0, %v1412_v51, 0.0  ;;  %v1717_v51 = vld [vmem:[%s5248_s19 + $0x58] sm:$0xff] }
 0xc22   :  { %1415 = vadd.xlane.f32.xlu2 %v1414_v52  ;;  %v1407_v36 = vpop.xlane.xlu1 %1406  ;;  %v1736_v52 = vld [vmem:[%s5248_s19 + $0xf0] sm:$0xff]  ;;  %1746 = vmatpush.msrb.mxu3 %v1717_v51 }
 0xc23   :  { %v1409_v21 = vmul.f32 %v1407_v36, %v4115_v46  ;;  %1766 = vmatpush.msrb.mxu0 %v1736_v52  ;;  %v1707_v52 = vld [vmem:[%s5248_s19 + $0x8] sm:$0xff] }
 0xc25   :  { %v4431_v53 = vsub.f32 %v4418_v47, %v1409_v21  ;;  %v1475_v21 = vperm.slane %v4504_v44, 1  ;;  %v1708_v44 = vld [vmem:[%s5248_s19 + $0x10] sm:$0xff] }
 0xc27   :  { %v1413_v43 = vmul.f32 %v4431_v53, %v4431_v53 }
 0xc29   :  { %v1417_v54 = vsel %vm152_vm0, %v1413_v43, 0.0  ;;  %v1735_v43 = vld [vmem:[%s5248_s19 + $0xe8] sm:$0xff] }
 0xc2a   :  { %1418 = vadd.xlane.f32.xlu0 %v1417_v54  ;;  %1767 = vmatpush.msrb.mxu0 %v1735_v43 }
 0xc2c   :  { %1768 = vmatpush.msrb.mxu0 %v1734_v57 }
 0xc2e   :  { %1769 = vmatpush.msrb.mxu0 %v1733_v0  ;;  %v1706_v0 = vld [vmem:[%s5248_s19] sm:$0xff] }
 0xc30   :  { %1770 = vmatpush.msrb.mxu0 %v1732_v10 }
 0xc95   :  { %v1416_v13 = vpop.xlane.xlu2 %1415 }
 0xc96   :  { %v1420_v14 = vmul.f32 %v1416_v13, %v4115_v46  ;;  %v1712_v13 = vld [vmem:[%s5248_s19 + $0x30] sm:$0xff] }
 0xc98   :  { %v1422_v16 = vadd.f32 1e-05, %v1420_v14 }
 0xc9a   :  { %3721 = vrsqrt.f32 %v1422_v16  ;;  %vm1430_vm3 = vweird.f32 %v1422_v16 }
 0xc9d   :  { %v1419_v17 = vpop.xlane.xlu0 %1418 }
 0xc9e   :  { %v1421_v55 = vmul.f32 %v1419_v17, %v4115_v46  ;;  %v1731_v17 = vld [vmem:[%s5248_s19 + $0xc8] sm:$0xff] }
 0xc9f   :  { %1771 = vmatpush.msrb.mxu0 %v1731_v17 }
 0xca0   :  { %v3722_v63 = vpop.eup %3721  ;;  %v1423_v18 = vadd.f32 1e-05, %v1421_v55 }
 0xca1   :  { %v1425_v19 = vmul.f32 %v3722_v63, %v1422_v16  ;;  %vm1431_vm2 = vweird.f32 %v3722_v63 }
 0xca2   :  { %3723 = vrsqrt.f32 %v1423_v18  ;;  %vm1432_vm4 = vmor %vm1430_vm3, %vm1431_vm2  ;;  %vm1440_vm6 = vweird.f32 %v1423_v18 }
 0xca3   :  { %v1426_v60 = vmul.f32 %v3722_v63, %v1425_v19  ;;  %v1730_v19 = vld [vmem:[%s5248_s19 + $0xc0] sm:$0xff] }
 0xca4   :  { %1772 = vmatpush.msrb.mxu0 %v1730_v19  ;;  %v1722_v19 = vld [vmem:[%s5248_s19 + $0x80] sm:$0xff] }
 0xca5   :  { %v1427_v2 = vmul.f32 0.5, %v1426_v60 }
 0xca7   :  { %v1428_v20 = vsub.f32 1.5, %v1427_v2 }
 0xca8   :  { %v3724_v22 = vpop.eup %3723 }
 0xca9   :  { %v1429_v23 = vmul.f32 %v3722_v63, %v1428_v20  ;;  %v1435_v24 = vmul.f32 %v3724_v22, %v1423_v18  ;;  %vm1441_vm5 = vweird.f32 %v3724_v22  ;;  %v1711_v18 = vld [vmem:[%s5248_s19 + $0x28] sm:$0xff] }
 0xcaa   :  { %vm1442_vm7 = vmor %vm1440_vm6, %vm1441_vm5 }
 0xcab   :  { %v1433_v27 = vsel %vm1432_vm4, %v3722_v63, %v1429_v23  ;;  %v1436_v28 = vmul.f32 %v3724_v22, %v1435_v24 }
 0xcac   :  { %v1444_v29 = vmul.f32 %v1433_v27, %v4424_v15  ;;  %v1729_v27 = vld [vmem:[%s5248_s19 + $0xb8] sm:$0xff] }
 0xcad   :  { %v1437_v32 = vmul.f32 0.5, %v1436_v28  ;;  %1773 = vmatpush.msrb.mxu0 %v1729_v27 }
 0xcae   :  { %v1449_v33 = vmul.f32 %v3656_v26, %v1444_v29 }
 0xcaf   :  { %v1438_v34 = vsub.f32 1.5, %v1437_v32 }
 0xcb0   :  { %v1454_v35 = vadd.f32 %v3657_v31, %v1449_v33 }
 0xcb1   :  { %v1439_v37 = vmul.f32 %v3724_v22, %v1438_v34 }
 0xcb2   :  { %3477 = vmatmul.msk.f32.vlgmr.msra.gmra.mxu1 %vm152_vm0, %v1454_v35  ;;  %3479 = vmatmul.msk.f32.vlgmr.msrb.gmra.mxu2 %vm152_vm0, %v1454_v35  ;;  %v1709_v35 = vld [vmem:[%s5248_s19 + $0x18] sm:$0xff] }
 0xcb3   :  { %v1443_v38 = vsel %vm1442_vm7, %v3724_v22, %v1439_v37  ;;  %v1728_v37 = vld [vmem:[%s5248_s19 + $0xb0] sm:$0xff] }
 0xcb4   :  { %v1445_v39 = vmul.f32 %v1443_v38, %v4431_v53  ;;  %v1716_v53 = vld [vmem:[%s5248_s19 + $0x50] sm:$0xff]  ;;  %1774 = vmatpush.msrb.mxu0 %v1728_v37 }
 0xcb5   :  { %1747 = vmatpush.msrb.mxu3 %v1716_v53 }
 0xcb6   :  { %v1450_v25 = vmul.f32 %v3656_v26, %v1445_v39  ;;  %v1710_v26 = vld [vmem:[%s5248_s19 + $0x20] sm:$0xff]  ;;  %1775 = vmatpush.msrb.mxu0 %v1727_v30 }
 0xcb7   :  { %1748 = vmatpush.msrb.mxu3 %v1715_v56 }
 0xcb8   :  { %v1455_v40 = vadd.f32 %v3657_v31, %v1450_v25 }
 0xcb9   :  { %1749 = vmatpush.msrb.mxu3 %v1714_v62 }
 0xcba   :  { %3478 = vmatmul.msk.f32.gmra.mxu1 %vm152_vm0, %v1455_v40  ;;  %3480 = vmatmul.msk.f32.gmra.mxu2 %vm152_vm0, %v1455_v40 }
 0xcbb   :  { %1750 = vmatpush.msrb.mxu3 %v1713_v7 }
 0xcbd   :  { %1751 = vmatpush.msrb.mxu3 %v1712_v13 }
 0xcbf   :  { %1752 = vmatpush.msrb.mxu3 %v1711_v18 }
 0xcc1   :  { %1753 = vmatpush.msrb.mxu3 %v1710_v26 }
 0xcc3   :  { %1754 = vmatpush.msrb.mxu3 %v1709_v35 }
 0xcc5   :  { %1755 = vmatpush.msrb.mxu3 %v1708_v44 }
 0xcc7   :  { %1756 = vmatpush.msrb.mxu3 %v1707_v52 }
 0xcc9   :  { %1757 = vmatpush.msrb.mxu3 %v1706_v0 }
 0xd2f   :  { %v1501_v50 = vpop.f32.mrf.mxu1 }
 0xd30   :  { %v4519_v15 = vadd.f32 %v1501_v50, %v1474_v6 }
 0xd32   :  { %v4528_v36 = vmul.f32 0.70710677, %v4519_v15 }
 0xd34   :  { %v1538_v54 = vmul.f32 %v4528_v36, %v4528_v36 }
 0xd35   :  { %v1524_v58 = vpop.f32.mrf.mxu2 }
 0xd36   :  { %v4545_v59 = vmin.f32 %v1538_v54, 16.0  ;;  %v4547_v61 = vadd.f32 %v1524_v58, %v1475_v21 }
 0xd37   :  { %v1504_v1 = vpop.f32.mrf.mxu1 }
 0xd38   :  { %v1540_v3 = vmul.f32 2.1237322e-06, %v4545_v59  ;;  %v1551_v4 = vmul.f32 3.8918573e-05, %v4545_v59  ;;  %v4557_v5 = vadd.f32 %v1504_v1, %v1474_v6  ;;  %v4563_v9 = vmul.f32 0.70710677, %v4547_v61 }
 0xd39   :  { %v1725_v1 = vld [vmem:[%s5248_s19 + $0x98] sm:$0xff] }
 0xd3a   :  { %v1541_v11 = vadd.f32 0.00028619796, %v1540_v3  ;;  %v1552_v12 = vadd.f32 0.001143296, %v1551_v4  ;;  %v1578_v14 = vmul.f32 %v4563_v9, %v4563_v9  ;;  %v4574_v16 = vmul.f32 0.70710677, %v4557_v5 }
 0xd3c   :  { %v1542_v55 = vmul.f32 %v1541_v11, %v4545_v59  ;;  %v1553_v63 = vmul.f32 %v1552_v12, %v4545_v59  ;;  %v4587_v60 = vmin.f32 %v1578_v14, 16.0  ;;  %v1618_v2 = vmul.f32 %v4574_v16, %v4574_v16  ;;  %v1724_v11 = vld [vmem:[%s5248_s19 + $0x90] sm:$0xff] }
 0xd3d   :  { %v1527_v20 = vpop.f32.mrf.mxu2 }
 0xd3e   :  { %v1543_v22 = vadd.f32 0.0036580483, %v1542_v55  ;;  %v1554_v23 = vadd.f32 0.014752088, %v1553_v63  ;;  %v4591_v24 = vadd.f32 %v1527_v20, %v1475_v21  ;;  %v1580_v28 = vmul.f32 2.1237322e-06, %v4587_v60 }
 0xd3f   :  { %v1591_v29 = vmul.f32 3.8918573e-05, %v4587_v60  ;;  %v4601_v31 = vmin.f32 %v1618_v2, 16.0  ;;  %v1726_v21 = vld [vmem:[%s5248_s19 + $0xa0] sm:$0xff]  ;;  %v1723_v63 = vld [vmem:[%s5248_s19 + $0x88] sm:$0xff] }
 0xd40   :  { %v1544_v32 = vmul.f32 %v1543_v22, %v4545_v59  ;;  %v1555_v33 = vmul.f32 %v1554_v23, %v4545_v59  ;;  %v4606_v34 = vmul.f32 0.70710677, %v4591_v24  ;;  %v1581_v38 = vadd.f32 0.00028619796, %v1580_v28  ;;  %1776 = vmatpush.msrb.mxu0 %v1726_v21 }
 0xd41   :  { %v1592_v39 = vadd.f32 0.001143296, %v1591_v29  ;;  %v1620_v25 = vmul.f32 2.1237322e-06, %v4601_v31  ;;  %v1631_v49 = vmul.f32 3.8918573e-05, %v4601_v31 }
 0xd42   :  { %v1556_v40 = vadd.f32 0.112945676, %v1555_v33  ;;  %v1658_v41 = vmul.f32 %v4606_v34, %v4606_v34  ;;  %v1582_v6 = vmul.f32 %v1581_v38, %v4587_v60  ;;  %v1545_v50 = vadd.f32 0.05243302, %v1544_v32  ;;  %1777 = vmatpush.msrb.mxu0 %v1725_v1 }
 0xd43   :  { %v1593_v45 = vmul.f32 %v1592_v39, %v4587_v60  ;;  %v1621_v48 = vadd.f32 0.00028619796, %v1620_v25  ;;  %v1632_v56 = vadd.f32 0.001143296, %v1631_v49 }
 0xd44   :  { %v1557_v51 = vmul.f32 %v1556_v40, %v4545_v59  ;;  %v1583_v53 = vadd.f32 0.0036580483, %v1582_v6  ;;  %v4634_v58 = vmin.f32 %v1658_v41, 16.0  ;;  %v1546_v4 = vmul.f32 %v1545_v50, %v4545_v59  ;;  %1778 = vmatpush.msrb.mxu0 %v1724_v11 }
 0xd45   :  { %v1594_v43 = vadd.f32 0.014752088, %v1593_v45  ;;  %v1622_v54 = vmul.f32 %v1621_v48, %v4601_v31  ;;  %v1633_v3 = vmul.f32 %v1632_v56, %v4601_v31 }
 0xd46   :  { %v1558_v57 = vadd.f32 0.4994258, %v1557_v51  ;;  %v1584_v10 = vmul.f32 %v1583_v53, %v4587_v60  ;;  %v1660_v55 = vmul.f32 2.1237322e-06, %v4634_v58  ;;  %v1547_v20 = vadd.f32 0.18741608, %v1546_v4  ;;  %1779 = vmatpush.msrb.mxu0 %v1723_v63 }
 0xd47   :  { %v1595_v62 = vmul.f32 %v1594_v43, %v4587_v60  ;;  %v1623_v13 = vadd.f32 0.0036580483, %v1622_v54  ;;  %v1634_v14 = vadd.f32 0.014752088, %v1633_v3  ;;  %v1671_v23 = vmul.f32 3.8918573e-05, %v4634_v58 }
 0xd48   :  { %v1559_v7 = vmul.f32 %v1558_v57, %v4545_v59  ;;  %v1585_v22 = vadd.f32 0.05243302, %v1584_v10  ;;  %v1661_v28 = vadd.f32 0.00028619796, %v1660_v55  ;;  %1780 = vmatpush.msrb.mxu0 %v1722_v19  ;;  %v1548_v33 = vmul.f32 %v1547_v20, %v4545_v59 }
 0xd49   :  { %v1596_v12 = vadd.f32 0.112945676, %v1595_v62  ;;  %v1635_v2 = vmul.f32 %v1634_v14, %v4601_v31  ;;  %v1624_v27 = vmul.f32 %v1623_v13, %v4601_v31  ;;  %v1672_v38 = vadd.f32 0.001143296, %v1671_v23 }
 0xd4a   :  { %v1560_v17 = vadd.f32 1.0, %v1559_v7  ;;  %v1586_v35 = vmul.f32 %v1585_v22, %v4587_v60  ;;  %v1662_v41 = vmul.f32 %v1661_v28, %v4634_v58  ;;  %v1549_v45 = vadd.f32 1.1283791, %v1548_v33 }
 0xd4b   :  { %v1597_v18 = vmul.f32 %v1596_v12, %v4587_v60  ;;  %v1636_v29 = vadd.f32 0.112945676, %v1635_v2  ;;  %v1625_v25 = vadd.f32 0.05243302, %v1624_v27  ;;  %v1673_v30 = vmul.f32 %v1672_v38, %v4634_v58 }
 0xd4c   :  { %3725 = vrcp.f32 %v1560_v17  ;;  %v1587_v48 = vadd.f32 0.18741608, %v1586_v35  ;;  %v1570_v52 = vand.u32 2147483647, %v1560_v17  ;;  %v1572_v21 = vand.u32 2147483648, %v1560_v17 }
 0xd4d   :  { %v1598_v26 = vadd.f32 0.4994258, %v1597_v18  ;;  %v1637_v37 = vmul.f32 %v1636_v29, %v4601_v31  ;;  %v1626_v59 = vmul.f32 %v1625_v25, %v4601_v31  ;;  %v1674_v51 = vadd.f32 0.014752088, %v1673_v30 }
 0xd4e   :  { %v1663_v53 = vadd.f32 0.0036580483, %v1662_v41  ;;  %v1588_v57 = vmul.f32 %v1587_v48, %v4587_v60  ;;  %vm1566_vm9 = vweird.f32 %v1560_v17  ;;  %v1573_v3 = vor.u32 1.1754944e-38, %v1572_v21 }
 0xd4f   :  { %v1599_v32 = vmul.f32 %v1598_v26, %v4587_v60  ;;  %v1638_v44 = vadd.f32 0.4994258, %v1637_v37  ;;  %v1675_v56 = vmul.f32 %v1674_v51, %v4634_v58  ;;  %v1627_v1 = vadd.f32 0.18741608, %v1626_v59 }
 0xd50   :  { %v1664_v7 = vmul.f32 %v1663_v53, %v4634_v58  ;;  %v1550_v10 = vmul.f32 %v1549_v45, %v4528_v36  ;;  %vm1571_vm11 = vcmp.eq.f32.partialorder %v1570_v52, 8.507059e+37  ;;  %v1589_v14 = vadd.f32 1.1283791, %v1588_v57 }
 0xd51   :  { %v1600_v39 = vadd.f32 1.0, %v1599_v32  ;;  %v1639_v50 = vmul.f32 %v1638_v44, %v4601_v31  ;;  %v1676_v12 = vadd.f32 0.112945676, %v1675_v56  ;;  %v1530_v23 = vmul.f32 0.5, %v4519_v15 }
 0xd52   :  { %v3726_v40 = vpop.eup %3725  ;;  %v1665_v20 = vadd.f32 0.05243302, %v1664_v7  ;;  %v1590_v27 = vmul.f32 %v1589_v14, %v4563_v9  ;;  %v1531_v48 = vmul.f32 0.5, %v4547_v61 }
 0xd53   :  { %v1562_v6 = vmul.f32 %v3726_v40, %v1560_v17  ;;  %3727 = vrcp.f32 %v1600_v39  ;;  %vm1567_vm8 = vweird.f32 %v3726_v40  ;;  %v4669_v54 = vadd.f32 1.0, %v1639_v50 }
 0xd54   :  { %vm1568_vm10 = vmor %vm1566_vm9, %vm1567_vm8  ;;  %v1612_v63 = vand.u32 2147483648, %v1600_v39  ;;  %v1628_v17 = vmul.f32 %v1627_v1, %v4601_v31  ;;  %v1677_v18 = vmul.f32 %v1676_v12, %v4634_v58  ;;  %v1610_v2 = vand.u32 2147483647, %v1600_v39 }
 0xd55   :  { %v1563_v49 = vsub.f32 1.0, %v1562_v6  ;;  %3729 = vrcp.f32 %v4669_v54  ;;  %vm1606_vm13 = vweird.f32 %v1600_v39  ;;  %v1666_v38 = vmul.f32 %v1665_v20, %v4634_v58 }
 0xd56   :  { %v1678_v26 = vadd.f32 0.4994258, %v1677_v18  ;;  %v1613_v31 = vor.u32 1.1754944e-38, %v1612_v63  ;;  %v1629_v33 = vadd.f32 1.1283791, %v1628_v17  ;;  %vm1611_vm3 = vcmp.eq.f32.partialorder %v1610_v2, 8.507059e+37 }
 0xd57   :  { %v1564_v43 = vmul.f32 %v3726_v40, %v1563_v49  ;;  %v1652_v41 = vand.u32 2147483648, %v4669_v54  ;;  %v1650_v30 = vand.u32 2147483647, %v4669_v54  ;;  %vm1646_vm5 = vweird.f32 %v4669_v54  ;;  %v3658_v18 = vld [vmem:[%s5249_s20] ss:$0 sm:$0xff] }
 0xd58   :  { %v1679_v35 = vmul.f32 %v1678_v26, %v4634_v58  ;;  %v1667_v49 = vadd.f32 0.18741608, %v1666_v38  ;;  %v1630_v51 = vmul.f32 %v1629_v33, %v4574_v16 }
 0xd59   :  { %v3728_v62 = vpop.eup %3727  ;;  %v1565_v0 = vadd.f32 %v3726_v40, %v1564_v43  ;;  %v1653_v59 = vor.u32 1.1754944e-38, %v1652_v41  ;;  %vm1651_vm7 = vcmp.eq.f32.partialorder %v1650_v30, 8.507059e+37  ;;  %v1899_v41 = vld [vmem:[#allocation5 + $0x138] sm:$0xff]  ;;  %v1897_v30 = vld [vmem:[#allocation5 + $0x128] sm:$0xff] }
 0xd5a   :  { %v1602_v4 = vmul.f32 %v3728_v62, %v1600_v39  ;;  %vm1607_vm12 = vweird.f32 %v3728_v62  ;;  %v1680_v9 = vadd.f32 1.0, %v1679_v35  ;;  %v1668_v57 = vmul.f32 %v1667_v49, %v4634_v58  ;;  %1913 = vmatpush.msra.mxu2 %v1899_v41  ;;  %v1852_v49 = vld [vmem:[#allocation2 + $0x118] sm:$0xff]  ;;  %v2095_v41 = vld [vmem:[#allocation2 + $0x160] sm:$0xff] }
 0xd5b   :  { %v1569_v11 = vsel %vm1568_vm10, %v3726_v40, %v1565_v0  ;;  %v3730_v22 = vpop.eup %3729  ;;  %vm1608_vm2 = vmor %vm1606_vm13, %vm1607_vm12 }
 0xd5c   :  { %v1574_v13 = vsel %vm1571_vm11, %v1573_v3, %v1569_v11  ;;  %v1603_v55 = vsub.f32 1.0, %v1602_v4  ;;  %v1642_v29 = vmul.f32 %v3730_v22, %v4669_v54  ;;  %vm1647_vm4 = vweird.f32 %v3730_v22 }
 0xd5d   :  { %v1575_v60 = vmul.f32 %v1574_v13, %v1550_v10  ;;  %3731 = vrcp.f32 %v1680_v9  ;;  %vm1648_vm6 = vmor %vm1646_vm5, %vm1647_vm4  ;;  %v1532_v54 = vmul.f32 0.5, %v4557_v5  ;;  %v1669_v3 = vadd.f32 1.1283791, %v1668_v57  ;;  %v1892_v57 = vld [vmem:[#allocation5 + $0x100] sm:$0xff] }
 0xd5e   :  { %v1604_v19 = vmul.f32 %v3728_v62, %v1603_v55  ;;  %v1643_v25 = vsub.f32 1.0, %v1642_v29  ;;  %v1692_v4 = vand.u32 2147483648, %v1680_v9  ;;  %v1690_v16 = vand.u32 2147483647, %v1680_v9 }
 0xd5f   :  { %v3481_v36 = vclamps-f32 %v1575_v60, 1.0  ;;  %vm1686_vm9 = vweird.f32 %v1680_v9  ;;  %v1670_v58 = vmul.f32 %v1669_v3, %v4606_v34  ;;  %v1533_v60 = vmul.f32 0.5, %v4591_v24  ;;  %v1933_v3 = vld [vmem:[#allocation7 + $0x120] sm:$0xff] }
 0xd60   :  { %v1605_v28 = vadd.f32 %v3728_v62, %v1604_v19  ;;  %v1644_v39 = vmul.f32 %v3730_v22, %v1643_v25  ;;  %v1693_v12 = vor.u32 1.1754944e-38, %v1692_v4  ;;  %vm1691_vm11 = vcmp.eq.f32.partialorder %v1690_v16, 8.507059e+37  ;;  %v1931_v16 = vld [vmem:[#allocation7 + $0x110] sm:$0xff] }
 0xd61   :  { %v1698_v32 = vadd.f32 1.0, %v3481_v36 }
 0xd62   :  { %v1609_v37 = vsel %vm1608_vm2, %v3728_v62, %v1605_v28  ;;  %v1645_v45 = vadd.f32 %v3730_v22, %v1644_v39  ;;  %v1854_v39 = vld [vmem:[#allocation2 + $0x128] sm:$0xff] }
 0xd63   :  { %v1702_v15 = vmul.f32 %v1698_v32, %v1530_v23  ;;  %v1614_v40 = vsel %vm1611_vm3, %v1613_v31, %v1609_v37  ;;  %v3732_v56 = vpop.eup %3731 }
 0xd64   :  { %v1615_v44 = vmul.f32 %v1614_v40, %v1590_v27  ;;  %v1649_v52 = vsel %vm1648_vm6, %v3730_v22, %v1645_v45  ;;  %v1682_v0 = vmul.f32 %v3732_v56, %v1680_v9  ;;  %vm1687_vm8 = vweird.f32 %v3732_v56  ;;  %v1856_v40 = vld [vmem:[#allocation2 + $0x138] sm:$0xff]  ;;  %v1855_v9 = vld [vmem:[#allocation2 + $0x130] sm:$0xff]  ;;  %v1896_v45 = vld [vmem:[#allocation5 + $0x120] sm:$0xff] }
 0xd65   :  { %1758 = vmatmul.f32.vlgmr.msrb.gmra.mxu3 %v1702_v15  ;;  %v1654_v21 = vsel %vm1651_vm7, %v1653_v59, %v1649_v52  ;;  %vm1688_vm10 = vmor %vm1686_vm9, %vm1687_vm8  ;;  %1876 = vmatpush.msrb.mxu1 %v1856_v40  ;;  %v1895_v59 = vld [vmem:[#allocation5 + $0x118] sm:$0xff]  ;;  %v1894_v52 = vld [vmem:[#allocation5 + $0x110] sm:$0xff] }
 0xd66   :  { %v3482_v6 = vclamps-f32 %v1615_v44, 1.0  ;;  %v1655_v43 = vmul.f32 %v1654_v21, %v1630_v51  ;;  %v1683_v1 = vsub.f32 1.0, %v1682_v0  ;;  %v1898_v44 = vld [vmem:[#allocation5 + $0x130] sm:$0xff]  ;;  %v2096_v40 = vld [vmem:[#allocation2 + $0x168] sm:$0xff] }
 0xd67   :  { %1877 = vmatpush.msrb.mxu1 %v1855_v9  ;;  %1914 = vmatpush.msra.mxu2 %v1898_v44  ;;  %v1851_v51 = vld [vmem:[#allocation2 + $0x110] sm:$0xff]  ;;  %v2094_v9 = vld [vmem:[#allocation2 + $0x158] sm:$0xff] }
 0xd68   :  { %v1699_v50 = vadd.f32 1.0, %v3482_v6  ;;  %v3483_v62 = vclamps-f32 %v1655_v43, 1.0  ;;  %v1684_v10 = vmul.f32 %v3732_v56, %v1683_v1  ;;  %v1853_v6 = vld [vmem:[#allocation2 + $0x120] sm:$0xff]  ;;  %v1893_v43 = vld [vmem:[#allocation5 + $0x108] sm:$0xff]  ;;  %v1935_v0 = vld [vmem:[#allocation7 + $0x130] sm:$0xff] }
 0xd69   :  { %1878 = vmatpush.msrb.mxu1 %v1854_v39  ;;  %1915 = vmatpush.msra.mxu2 %v1897_v30  ;;  %v1934_v1 = vld [vmem:[#allocation7 + $0x128] sm:$0xff]  ;;  %v2093_v39 = vld [vmem:[#allocation2 + $0x150] sm:$0xff] }
 0xd6a   :  { %v1703_v53 = vmul.f32 %v1699_v50, %v1531_v48  ;;  %v1700_v61 = vadd.f32 1.0, %v3483_v62  ;;  %v1685_v11 = vadd.f32 %v3732_v56, %v1684_v10  ;;  %v1936_v62 = vld [vmem:[#allocation7 + $0x138] sm:$0xff]  ;;  %v2092_v30 = vld [vmem:[#allocation2 + $0x148] sm:$0xff] }
 0xd6b   :  { %1879 = vmatpush.msrb.mxu1 %v1853_v6  ;;  %1916 = vmatpush.msra.mxu2 %v1896_v45  ;;  %v3663_v6 = vld [vmem:[%s5241_s12 + $0x4] ss:$0 sm:$0xff] }
 0xd6c   :  { %1781 = vmatmul.f32.vlgmr.msrb.gmra.mxu0 %v1703_v53  ;;  %v1704_v7 = vmul.f32 %v1700_v61, %v1532_v54  ;;  %v1689_v13 = vsel %vm1688_vm10, %v3732_v56, %v1685_v11  ;;  %v1850_v53 = vld [vmem:[#allocation2 + $0x108] sm:$0xff]  ;;  %v1849_v56 = vld [vmem:[#allocation2 + $0x100] sm:$0xff] }
 0xd6d   :  { %v1694_v14 = vsel %vm1691_vm11, %v1693_v12, %v1689_v13  ;;  %1880 = vmatpush.msrb.mxu1 %v1852_v49  ;;  %1917 = vmatpush.msra.mxu2 %v1895_v59  ;;  %v1930_v13 = vld [vmem:[#allocation7 + $0x108] sm:$0xff]  ;;  %v2091_v45 = vld [vmem:[#allocation2 + $0x140] sm:$0xff]  ;;  %v2135_v59 = vld [vmem:[#allocation5 + $0x178] sm:$0xff] }
 0xd6e   :  { %1761 = vmatmul.f32.gmra.mxu3 %v1704_v7  ;;  %v1695_v55 = vmul.f32 %v1694_v14, %v1670_v58  ;;  %v1932_v7 = vld [vmem:[#allocation7 + $0x118] sm:$0xff] }
 0xd6f   :  { %1881 = vmatpush.msrb.mxu1 %v1851_v51  ;;  %1918 = vmatpush.msra.mxu2 %v1894_v52 }
 0xd70   :  { %v3484_v5 = vclamps-f32 %v1695_v55, 1.0 }
 0xd71   :  { %1882 = vmatpush.msrb.mxu1 %v1850_v53  ;;  %1919 = vmatpush.msra.mxu2 %v1893_v43  ;;  %v2133_v53 = vld [vmem:[#allocation5 + $0x168] sm:$0xff]  ;;  %v2132_v43 = vld [vmem:[#allocation5 + $0x160] sm:$0xff] }
 0xd72   :  { %v1701_v63 = vadd.f32 1.0, %v3484_v5  ;;  %v1929_v5 = vld [vmem:[#allocation7 + $0x100] sm:$0xff] }
 0xd73   :  { %1883 = vmatpush.msrb.mxu1 %v1849_v56  ;;  %1920 = vmatpush.msra.mxu2 %v1892_v57  ;;  %v2131_v57 = vld [vmem:[#allocation5 + $0x158] sm:$0xff] }
 0xd74   :  { %v1705_v17 = vmul.f32 %v1701_v63, %v1533_v60  ;;  %v3659_v60 = vld [vmem:[%s5273_s24 + $0x1] ss:$0 sm:$0xff] }
 0xd75   :  { %1950 = vmatpush.msra.mxu1 %v1936_v62 }
 0xd76   :  { %1784 = vmatmul.f32.gmra.mxu0 %v1705_v17  ;;  %v3660_v17 = vld [vmem:[%s5274_s26 + $0x1] ss:$0 sm:$0xff] }
 0xd77   :  { %1951 = vmatpush.msra.mxu1 %v1935_v0  ;;  %v2130_v0 = vld [vmem:[#allocation5 + $0x150] sm:$0xff] }
 0xd79   :  { %1952 = vmatpush.msra.mxu1 %v1934_v1 }
 0xd7b   :  { %1953 = vmatpush.msra.mxu1 %v1933_v3 }
 0xd7d   :  { %1954 = vmatpush.msra.mxu1 %v1932_v7 }
 0xd7f   :  { %1955 = vmatpush.msra.mxu1 %v1931_v16 }
 0xd81   :  { %1956 = vmatpush.msra.mxu1 %v1930_v13 }
 0xd83   :  { %1957 = vmatpush.msra.mxu1 %v1929_v5 }
 0xde8   :  { %v1759_v19 = vpop.f32.mrf.mxu3 }
 0xde9   :  { %v1760_v2 = vadd.f32 %v3658_v18, %v1759_v19  ;;  %v1782_v20 = vpop.f32.mrf.mxu0 }
 0xdeb   :  { %v1783_v22 = vadd.f32 %v1782_v20, %v1760_v2 }
 0xded   :  { %v4696_v34 = vadd.f32 %v1783_v22, %v4413_v42 }
 0xdef   :  { %v1794_v23 = vsel %vm152_vm0, %v4696_v34, 0.0 }
 0xdf0   :  { %1795 = vadd.xlane.f32.xlu1 %v1794_v23 }
 0xdf1   :  { %v1762_v36 = vpop.f32.mrf.mxu3 }
 0xdf2   :  { %v1763_v24 = vadd.f32 %v3658_v18, %v1762_v36 }
 0xdf3   :  { %v1785_v26 = vpop.f32.mrf.mxu0 }
 0xdf4   :  { %v1786_v27 = vadd.f32 %v1785_v26, %v1763_v24 }
 0xdf6   :  { %v4701_v28 = vadd.f32 %v1786_v27, %v4418_v47 }
 0xdf8   :  { %v1797_v29 = vsel %vm152_vm0, %v4701_v28, 0.0 }
 0xdf9   :  { %1798 = vadd.xlane.f32.xlu2 %v1797_v29 }
 0xe63   :  { %v1796_v32 = vpop.xlane.xlu1 %1795 }
 0xe64   :  { %v1800_v31 = vmul.f32 %v1796_v32, %v4115_v46 }
 0xe66   :  { %v4707_v42 = vsub.f32 %v4696_v34, %v1800_v31 }
 0xe68   :  { %v1804_v33 = vmul.f32 %v4707_v42, %v4707_v42 }
 0xe6a   :  { %v1806_v35 = vsel %vm152_vm0, %v1804_v33, 0.0  ;;  %v3661_v33 = vld [vmem:[%s5237_s8 + $0x4] ss:$0 sm:$0xff] }
 0xe6b   :  { %1807 = vadd.xlane.f32.xlu0 %v1806_v35 }
 0xe6c   :  { %v1799_v37 = vpop.xlane.xlu2 %1798 }
 0xe6d   :  { %v1801_v47 = vmul.f32 %v1799_v37, %v4115_v46 }
 0xe6f   :  { %v4714_v38 = vsub.f32 %v4701_v28, %v1801_v47 }
 0xe71   :  { %v1805_v25 = vmul.f32 %v4714_v38, %v4714_v38 }
 0xe73   :  { %v1809_v15 = vsel %vm152_vm0, %v1805_v25, 0.0 }
 0xe74   :  { %1810 = vadd.xlane.f32.xlu1 %v1809_v15  ;;  %v2097_v15 = vld [vmem:[#allocation2 + $0x170] sm:$0xff] }
 0xede   :  { %v1808_v48 = vpop.xlane.xlu0 %1807 }
 0xedf   :  { %v1812_v50 = vmul.f32 %v1808_v48, %v4115_v46 }
 0xee1   :  { %v1814_v21 = vadd.f32 1e-05, %v1812_v50 }
 0xee3   :  { %3733 = vrsqrt.f32 %v1814_v21  ;;  %vm1822_vm13 = vweird.f32 %v1814_v21 }
 0xee7   :  { %v1811_v11 = vpop.xlane.xlu1 %1810 }
 0xee8   :  { %v1813_v58 = vmul.f32 %v1811_v11, %v4115_v46  ;;  %v3665_v11 = vld [vmem:[%s5239_s10 + $0x5] ss:$0 sm:$0xff] }
 0xee9   :  { %v3734_v54 = vpop.eup %3733 }
 0xeea   :  { %v1817_v61 = vmul.f32 %v3734_v54, %v1814_v21  ;;  %vm1823_vm12 = vweird.f32 %v3734_v54  ;;  %v1815_v55 = vadd.f32 1e-05, %v1813_v58  ;;  %v2134_v21 = vld [vmem:[#allocation5 + $0x170] sm:$0xff] }
 0xeeb   :  { %vm1824_vm2 = vmor %vm1822_vm13, %vm1823_vm12 }
 0xeec   :  { %v1818_v4 = vmul.f32 %v3734_v54, %v1817_v61  ;;  %3735 = vrsqrt.f32 %v1815_v55  ;;  %vm1832_vm4 = vweird.f32 %v1815_v55  ;;  %v2128_v61 = vld [vmem:[#allocation5 + $0x140] sm:$0xff] }
 0xeee   :  { %v1819_v10 = vmul.f32 0.5, %v1818_v4 }
 0xef0   :  { %v1820_v12 = vsub.f32 1.5, %v1819_v10 }
 0xef2   :  { %v1821_v14 = vmul.f32 %v3734_v54, %v1820_v12  ;;  %v3736_v20 = vpop.eup %3735 }
 0xef3   :  { %v1827_v22 = vmul.f32 %v3736_v20, %v1815_v55  ;;  %vm1833_vm3 = vweird.f32 %v3736_v20 }
 0xef4   :  { %v1825_v63 = vsel %vm1824_vm2, %v3734_v54, %v1821_v14  ;;  %vm1834_vm5 = vmor %vm1832_vm4, %vm1833_vm3  ;;  %v2129_v54 = vld [vmem:[#allocation5 + $0x148] sm:$0xff] }
 0xef5   :  { %v1836_v18 = vmul.f32 %v1825_v63, %v4707_v42  ;;  %v1828_v23 = vmul.f32 %v3736_v20, %v1827_v22  ;;  %v3662_v42 = vld [vmem:[%s5239_s10 + $0x4] ss:$0 sm:$0xff]  ;;  %v2172_v22 = vld [vmem:[#allocation7 + $0x178] sm:$0xff] }
 0xef7   :  { %v1841_v19 = vmul.f32 %v3659_v60, %v1836_v18  ;;  %v1829_v36 = vmul.f32 0.5, %v1828_v23  ;;  %v2171_v23 = vld [vmem:[#allocation7 + $0x170] sm:$0xff] }
 0xef9   :  { %v4728_v2 = vadd.f32 %v3660_v17, %v1841_v19  ;;  %v1830_v24 = vsub.f32 1.5, %v1829_v36  ;;  %v2170_v36 = vld [vmem:[#allocation7 + $0x168] sm:$0xff] }
 0xefb   :  { %3488 = vmatmul.msk.f32.vlgmr.msrb.gmra.mxu1 %vm152_vm0, %v4728_v2  ;;  %3491 = vmatmul.msk.f32.vlgmr.msra.gmra.mxu2 %vm152_vm0, %v4728_v2  ;;  %v1831_v26 = vmul.f32 %v3736_v20, %v1830_v24  ;;  %v2169_v24 = vld [vmem:[#allocation7 + $0x160] sm:$0xff] }
 0xefd   :  { %v1835_v27 = vsel %vm1834_vm5, %v3736_v20, %v1831_v26  ;;  %v2168_v26 = vld [vmem:[#allocation7 + $0x158] sm:$0xff] }
 0xefe   :  { %v1837_v29 = vmul.f32 %v1835_v27, %v4714_v38  ;;  %v2098_v38 = vld [vmem:[#allocation2 + $0x178] sm:$0xff]  ;;  %v2167_v27 = vld [vmem:[#allocation7 + $0x150] sm:$0xff] }
 0xf00   :  { %v1842_v32 = vmul.f32 %v3659_v60, %v1837_v29  ;;  %v2166_v29 = vld [vmem:[#allocation7 + $0x148] sm:$0xff] }
 0xf02   :  { %v4735_v31 = vadd.f32 %v3660_v17, %v1842_v32  ;;  %v2165_v32 = vld [vmem:[#allocation7 + $0x140] sm:$0xff] }
 0xf04   :  { %3489 = vmatmul.msk.f32.gmra.mxu1 %vm152_vm0, %v4735_v31  ;;  %3492 = vmatmul.msk.f32.gmra.mxu2 %vm152_vm0, %v4735_v31 }
 0xf0c   :  { %3494 = vmatmul.msk.f32.vlgmr.msra.gmra.mxu1 %vm152_vm0, %v4728_v2 }
 0xf14   :  { %3495 = vmatmul.msk.f32.gmra.mxu1 %vm152_vm0, %v4735_v31 }
 0xf78   :  { %v1885_v37 = vpop.f32.mrf.mxu1 }
 0xf79   :  { %v1886_v25 = vadd.f32 %v3661_v33, %v1885_v37  ;;  %v3503_v37 = vld [vmem:[%s5242_s13 + $0x48] sm:$0xff] }
 0xf7e   :  { %v1922_v35 = vpop.f32.mrf.mxu2 }
 0xf7f   :  { %v1923_v47 = vadd.f32 %v3662_v42, %v1922_v35 }
 0xf81   :  { %3496 = vmatpush.xpose.msk.msrb.mxu2 %vm438_vm14, %v1923_v47  ;;  %v1888_v44 = vpop.f32.mrf.mxu1 }
 0xf82   :  { %v1889_v52 = vadd.f32 %v3661_v33, %v1888_v44 }
 0xf84   :  { %3497 = vmatmul.msk.f32.vlgmr.msrb.gmra.mxu2 %vm438_vm14, %v1886_v25 }
 0xf85   :  { %2112 = vmatpush.msra.mxu2 %v2098_v38 }
 0xf87   :  { %2113 = vmatpush.msra.mxu2 %v2097_v15  ;;  %v1925_v48 = vpop.f32.mrf.mxu2 }
 0xf88   :  { %v1926_v49 = vadd.f32 %v3662_v42, %v1925_v48  ;;  %v3666_v48 = vld [vmem:[%s5241_s12 + $0x5] ss:$0 sm:$0xff] }
 0xf89   :  { %2114 = vmatpush.msra.mxu2 %v2096_v40  ;;  %v1959_v50 = vpop.f32.mrf.mxu1 }
 0xf8a   :  { %v1960_v51 = vadd.f32 %v3663_v6, %v1959_v50  ;;  %3498 = vmatpush.xpose.msk.msra.mxu3 %vm438_vm14, %v1926_v49 }
 0xf8b   :  { %2115 = vmatpush.msra.mxu2 %v2095_v41 }
 0xf8c   :  { %2059 = vmatpush.msra.mxu0 %v1960_v51 }
 0xf8d   :  { %2116 = vmatpush.msra.mxu2 %v2094_v9  ;;  %3499 = vmatmul.msk.f32.vlgmr.msra.gmra.mxu3 %vm438_vm14, %v1889_v52  ;;  %v3664_v9 = vld [vmem:[%s5237_s8 + $0x5] ss:$0 sm:$0xff] }
 0xf8e   :  { %2149 = vmatpush.msrb.mxu3 %v2135_v59  ;;  %2186 = vmatpush.msrb.mxu0 %v2172_v22  ;;  %v2425_v22 = vld [vmem:[#allocation5 + $0x198] sm:$0xff] }
 0xf8f   :  { %2117 = vmatpush.msra.mxu2 %v2093_v39 }
 0xf90   :  { %2150 = vmatpush.msrb.mxu3 %v2134_v21  ;;  %2187 = vmatpush.msrb.mxu0 %v2171_v23  ;;  %v2424_v23 = vld [vmem:[#allocation5 + $0x190] sm:$0xff] }
 0xf91   :  { %2118 = vmatpush.msra.mxu2 %v2092_v30  ;;  %v1962_v56 = vpop.f32.mrf.mxu1 }
 0xf92   :  { %2151 = vmatpush.msrb.mxu3 %v2133_v53  ;;  %v1963_v62 = vadd.f32 %v3663_v6, %v1962_v56  ;;  %2188 = vmatpush.msrb.mxu0 %v2170_v36  ;;  %v3502_v6 = vld [vmem:[%s5242_s13 + $0x40] sm:$0xff]  ;;  %v2423_v36 = vld [vmem:[#allocation5 + $0x188] sm:$0xff] }
 0xf93   :  { %2119 = vmatpush.msra.mxu2 %v2091_v45 }
 0xf94   :  { %3505 = vmatmul.msk.f32.vlgmr.msra.gmra.mxu2 %vm152_vm0, %v4728_v2  ;;  %2152 = vmatpush.msrb.mxu3 %v2132_v43 }
 0xf95   :  { %2082 = vmatpush.msrb.mxu1 %v1963_v62  ;;  %2189 = vmatpush.msrb.mxu0 %v2169_v24  ;;  %v2422_v24 = vld [vmem:[#allocation5 + $0x180] sm:$0xff] }
 0xf96   :  { %2153 = vmatpush.msrb.mxu3 %v2131_v57 }
 0xf97   :  { %2190 = vmatpush.msrb.mxu0 %v2168_v26 }
 0xf98   :  { %2154 = vmatpush.msrb.mxu3 %v2130_v0 }
 0xf99   :  { %2191 = vmatpush.msrb.mxu0 %v2167_v27  ;;  %v3520_v27 = vld [vmem:[%s5242_s13 + $0x58] sm:$0xff] }
 0xf9a   :  { %2155 = vmatpush.msrb.mxu3 %v2129_v54 }
 0xf9b   :  { %2192 = vmatpush.msrb.mxu0 %v2166_v29 }
 0xf9c   :  { %3506 = vmatmul.msk.f32.gmra.mxu2 %vm152_vm0, %v4735_v31  ;;  %2156 = vmatpush.msrb.mxu3 %v2128_v61 }
 0xf9d   :  { %3508 = vmatmul.msk.f32.vlgmr.msrb.gmra.mxu3 %vm152_vm0, %v4728_v2  ;;  %2193 = vmatpush.msrb.mxu0 %v2165_v32 }
 0xf9e   :  { %2346 = vmatpush.msra.mxu3 %v3520_v27 }
 0xfa5   :  { %3509 = vmatmul.msk.f32.gmra.mxu3 %vm152_vm0, %v4735_v31 }
0x1007   :  { %v1988_v1 = vpop.f32.mrf.mxu2 }
0x1008   :  { %v2017_v3 = vsel %vm270_vm15, %v1988_v1, -1e+30 }
0x1009   :  { %v2019_v4 = vsel %vm493_vm1, %v2017_v3, -inf }
0x100a   :  { %2020 = vmax.xlane.f32.xlu1 %v2019_v4 }
0x1010   :  { %v2014_v7 = vpop.f32.mrf.mxu3 }
0x1011   :  { %v2018_v10 = vsel %vm270_vm15, %v2014_v7, -1e+30 }
0x1012   :  { %v2022_v16 = vsel %vm493_vm1, %v2018_v10, -inf }
0x1013   :  { %2023 = vmax.xlane.f32.xlu2 %v2022_v16 }
0x1017   :  { %v2121_v41 = vpop.f32.mrf.mxu2 }
0x1018   :  { %v2122_v44 = vadd.f32 %v3664_v9, %v2121_v41  ;;  %v2461_v41 = vld [vmem:[#allocation7 + $0x190] sm:$0xff] }
0x101f   :  { %v2124_v39 = vpop.f32.mrf.mxu2 }
0x1020   :  { %v2158_v12 = vpop.f32.mrf.mxu3  ;;  %v2125_v30 = vadd.f32 %v3664_v9, %v2124_v39  ;;  %v2460_v9 = vld [vmem:[#allocation7 + $0x188] sm:$0xff] }
0x1021   :  { %v2159_v58 = vadd.f32 %v3665_v11, %v2158_v12  ;;  %v2392_v12 = vld [vmem:[#allocation2 + $0x1b8] sm:$0xff] }
0x1023   :  { %3513 = vmatpush.xpose.msk.msra.mxu1 %vm438_vm14, %v2159_v58  ;;  %v2391_v58 = vld [vmem:[#allocation2 + $0x1b0] sm:$0xff] }
0x1028   :  { %v2161_v38 = vpop.f32.mrf.mxu3 }
0x1029   :  { %v2162_v40 = vadd.f32 %v3665_v11, %v2161_v38  ;;  %v2465_v38 = vld [vmem:[#allocation7 + $0x1b0] sm:$0xff] }
0x107d   :  { %v2021_v13 = vpop.xlane.xlu1 %2020 }
0x107e   :  { %v2025_v14 = vsub.f32 %v2017_v3, %v2021_v13  ;;  %v2390_v13 = vld [vmem:[#allocation2 + $0x1a8] sm:$0xff] }
0x1080   :  { %v2027_v55 = vmul.f32 1.442695, %v2025_v14  ;;  %v2389_v14 = vld [vmem:[#allocation2 + $0x1a0] sm:$0xff] }
0x1082   :  { %3737 = vpow2.f32 %v2027_v55  ;;  %v2388_v55 = vld [vmem:[#allocation2 + $0x198] sm:$0xff] }
0x1086   :  { %v2024_v63 = vpop.xlane.xlu2 %2023 }
0x1087   :  { %v2026_v17 = vsub.f32 %v2018_v10, %v2024_v63  ;;  %v2428_v63 = vld [vmem:[#allocation5 + $0x1b0] sm:$0xff] }
0x1088   :  { %v3738_v5 = vpop.eup %3737 }
0x1089   :  { %v2031_v60 = vsel %vm493_vm1, %v3738_v5, 0.0  ;;  %v2029_v18 = vmul.f32 1.442695, %v2026_v17  ;;  %v2386_v17 = vld [vmem:[#allocation2 + $0x188] sm:$0xff] }
0x108a   :  { %2032 = vadd.xlane.f32.xlu2 %v2031_v60  ;;  %v2387_v60 = vld [vmem:[#allocation2 + $0x190] sm:$0xff] }
0x108b   :  { %3739 = vpow2.f32 %v2029_v18  ;;  %v2427_v18 = vld [vmem:[#allocation5 + $0x1a8] sm:$0xff] }
0x1091   :  { %v3740_v19 = vpop.eup %3739 }
0x1092   :  { %v2034_v20 = vsel %vm493_vm1, %v3740_v19, 0.0 }
0x1093   :  { %2035 = vadd.xlane.f32.xlu0 %v2034_v20  ;;  %v2426_v20 = vld [vmem:[#allocation5 + $0x1a0] sm:$0xff] }
0x10fd   :  { %v2033_v42 = vpop.xlane.xlu2 %2032 }
0x10fe   :  { %3741 = vrcp.f32 %v2033_v42 }
0x1104   :  { %v3742_v33 = vpop.eup %3741 }
0x1105   :  { %v2039_v35 = vmul.f32 %v3742_v33, %v3738_v5  ;;  %v2429_v5 = vld [vmem:[#allocation5 + $0x1b8] sm:$0xff] }
0x1106   :  { %v2036_v47 = vpop.xlane.xlu0 %2035 }
0x1107   :  { %3500 = vmatmul.msk.f32.vlgmr.msra.gmra.mxu0 %vm493_vm1, %v2039_v35  ;;  %3743 = vrcp.f32 %v2036_v47  ;;  %v2466_v47 = vld [vmem:[#allocation7 + $0x1b8] sm:$0xff] }
0x1108   :  { %2375 = vmatpush.msra.mxu0 %v3503_v37  ;;  %v3519_v37 = vld [vmem:[%s5242_s13 + $0x50] sm:$0xff] }
0x1109   :  { %2347 = vmatpush.msra.mxu3 %v3519_v37  ;;  %v2693_v37 = vld [vmem:[#allocation5 + $0x1e0] sm:$0xff] }
0x110a   :  { %2376 = vmatpush.msra.mxu0 %v3502_v6  ;;  %v3668_v6 = vld [vmem:[%s5239_s10 + $0x6] ss:$0 sm:$0xff] }
0x110b   :  { %2480 = vmatpush.msrb.mxu3 %v2466_v47  ;;  %v2692_v47 = vld [vmem:[#allocation5 + $0x1d8] sm:$0xff] }
0x110d   :  { %v3744_v25 = vpop.eup %3743  ;;  %2481 = vmatpush.msrb.mxu3 %v2465_v38  ;;  %v2733_v38 = vld [vmem:[#allocation7 + $0x1f8] sm:$0xff] }
0x110e   :  { %v2040_v15 = vmul.f32 %v3744_v25, %v3740_v19  ;;  %v2385_v19 = vld [vmem:[#allocation2 + $0x180] sm:$0xff]  ;;  %v2464_v25 = vld [vmem:[#allocation7 + $0x1a8] sm:$0xff] }
0x110f   :  { %3511 = vmatmul.msk.f32.vlgmr.msrb.gmra.mxu0 %vm152_vm0, %v4728_v2  ;;  %2482 = vmatpush.msrb.mxu3 %v2464_v25  ;;  %v2691_v25 = vld [vmem:[#allocation5 + $0x1d0] sm:$0xff] }
0x1110   :  { %3501 = vmatmul.msk.f32.vlgmr.msrb.gmra.mxu1 %vm493_vm1, %v2040_v15  ;;  %v2463_v15 = vld [vmem:[#allocation7 + $0x1a0] sm:$0xff] }
0x1111   :  { %3515 = vmatpush.xpose.msk.msrb.mxu1 %vm438_vm14, %v2162_v40  ;;  %2483 = vmatpush.msrb.mxu3 %v2463_v15  ;;  %v2462_v40 = vld [vmem:[#allocation7 + $0x198] sm:$0xff]  ;;  %v2732_v15 = vld [vmem:[#allocation7 + $0x1f0] sm:$0xff] }
0x1113   :  { %2484 = vmatpush.msrb.mxu3 %v2462_v40  ;;  %v2690_v40 = vld [vmem:[#allocation5 + $0x1c8] sm:$0xff] }
0x1115   :  { %2485 = vmatpush.msrb.mxu3 %v2461_v41  ;;  %v2731_v41 = vld [vmem:[#allocation7 + $0x1e8] sm:$0xff] }
0x1117   :  { %3512 = vmatmul.msk.f32.gmra.mxu0 %vm152_vm0, %v4735_v31  ;;  %2486 = vmatpush.msrb.mxu3 %v2460_v9  ;;  %v2689_v9 = vld [vmem:[#allocation5 + $0x1c0] sm:$0xff] }
0x1118   :  { %3514 = vmatmul.msk.f32.vlgmr.msra.gmra.mxu1 %vm438_vm14, %v2122_v44  ;;  %v2459_v44 = vld [vmem:[#allocation7 + $0x180] sm:$0xff] }
0x1119   :  { %2487 = vmatpush.msrb.mxu3 %v2459_v44  ;;  %v2730_v44 = vld [vmem:[#allocation7 + $0x1e0] sm:$0xff] }
0x1120   :  { %3516 = vmatmul.msk.f32.vlgmr.msrb.gmra.mxu1 %vm438_vm14, %v2125_v30 }
0x1184   :  { %v2061_v45 = vpop.f32.mrf.mxu0 }
0x1185   :  { %3523 = vmatmul.msk.f32.vlgmr.msra.gmra.mxu0 %vm438_vm14, %v2061_v45 }
0x118c   :  { %v2195_v49 = vpop.f32.mrf.mxu0 }
0x118d   :  { %v2196_v59 = vadd.f32 %v3666_v48, %v2195_v49  ;;  %v2084_v51 = vpop.f32.mrf.mxu1 }
0x118e   :  { %3524 = vmatmul.msk.f32.gmra.mxu0 %vm438_vm14, %v2084_v51 }
0x118f   :  { %2295 = vmatpush.msra.mxu1 %v2196_v59 }
0x1191   :  { %2406 = vmatpush.msrb.mxu1 %v2392_v12 }
0x1193   :  { %2407 = vmatpush.msrb.mxu1 %v2391_v58 }
0x1194   :  { %v2198_v50 = vpop.f32.mrf.mxu0 }
0x1195   :  { %v2199_v52 = vadd.f32 %v3666_v48, %v2198_v50  ;;  %v2224_v21 = vpop.f32.mrf.mxu1  ;;  %2408 = vmatpush.msrb.mxu1 %v2390_v13  ;;  %v3667_v48 = vld [vmem:[%s5237_s8 + $0x6] ss:$0 sm:$0xff] }
0x1196   :  { %v2253_v53 = vsel %vm270_vm15, %v2224_v21, -1e+30 }
0x1197   :  { %2318 = vmatpush.msrb.mxu2 %v2199_v52  ;;  %v2255_v43 = vsel %vm493_vm1, %v2253_v53, -inf  ;;  %2409 = vmatpush.msrb.mxu1 %v2389_v14 }
0x1198   :  { %2256 = vmax.xlane.f32.xlu1 %v2255_v43 }
0x1199   :  { %2410 = vmatpush.msrb.mxu1 %v2388_v55  ;;  %2443 = vmatpush.msra.mxu2 %v2429_v5 }
0x119b   :  { %2411 = vmatpush.msrb.mxu1 %v2387_v60  ;;  %2444 = vmatpush.msra.mxu2 %v2428_v63 }
0x119d   :  { %v2250_v56 = vpop.f32.mrf.mxu1  ;;  %2412 = vmatpush.msrb.mxu1 %v2386_v17  ;;  %2445 = vmatpush.msra.mxu2 %v2427_v18 }
0x119e   :  { %v2254_v57 = vsel %vm270_vm15, %v2250_v56, -1e+30  ;;  %v2658_v56 = vld [vmem:[#allocation2 + $0x1f0] sm:$0xff] }
0x119f   :  { %v2258_v62 = vsel %vm493_vm1, %v2254_v57, -inf  ;;  %2413 = vmatpush.msrb.mxu1 %v2385_v19  ;;  %2446 = vmatpush.msra.mxu2 %v2426_v20 }
0x11a0   :  { %2259 = vmax.xlane.f32.xlu0 %v2258_v62  ;;  %v2656_v62 = vld [vmem:[#allocation2 + $0x1e0] sm:$0xff] }
0x11a1   :  { %2447 = vmatpush.msra.mxu2 %v2425_v22 }
0x11a3   :  { %2448 = vmatpush.msra.mxu2 %v2424_v23 }
0x11a5   :  { %2449 = vmatpush.msra.mxu2 %v2423_v36 }
0x11a7   :  { %2450 = vmatpush.msra.mxu2 %v2422_v24 }
0x120b   :  { %v2257_v0 = vpop.xlane.xlu1 %2256 }
0x120c   :  { %v2261_v54 = vsub.f32 %v2253_v53, %v2257_v0  ;;  %v2659_v53 = vld [vmem:[#allocation2 + $0x1f8] sm:$0xff] }
0x120d   :  { %v2655_v0 = vld [vmem:[#allocation2 + $0x1d8] sm:$0xff] }
0x120e   :  { %v2263_v61 = vmul.f32 1.442695, %v2261_v54  ;;  %v2654_v54 = vld [vmem:[#allocation2 + $0x1d0] sm:$0xff] }
0x1210   :  { %3745 = vpow2.f32 %v2263_v61  ;;  %v2653_v61 = vld [vmem:[#allocation2 + $0x1c8] sm:$0xff] }
0x1213   :  { %v2260_v1 = vpop.xlane.xlu0 %2259 }
0x1214   :  { %v2262_v3 = vsub.f32 %v2254_v57, %v2260_v1  ;;  %v2657_v57 = vld [vmem:[#allocation2 + $0x1e8] sm:$0xff]  ;;  %v2652_v1 = vld [vmem:[#allocation2 + $0x1c0] sm:$0xff] }
0x1216   :  { %v3746_v4 = vpop.eup %3745  ;;  %v2265_v7 = vmul.f32 1.442695, %v2262_v3  ;;  %v4845_v3 = vpop.f32.mrf.mxu0 }
0x1217   :  { %v2267_v10 = vsel %vm493_vm1, %v3746_v4, 0.0 }
0x1218   :  { %3747 = vpow2.f32 %v2265_v7  ;;  %2268 = vadd.xlane.f32.xlu0 %v2267_v10 }
0x121e   :  { %v3748_v16 = vpop.eup %3747  ;;  %v2381_v7 = vpop.f32.mrf.mxu0 }
0x121f   :  { %v2270_v11 = vsel %vm493_vm1, %v3748_v16, 0.0 }
0x1220   :  { %2271 = vadd.xlane.f32.xlu2 %v2270_v11  ;;  %v3669_v11 = vld [vmem:[%s5241_s12 + $0x6] ss:$0 sm:$0xff] }
0x128b   :  { %v2269_v26 = vpop.xlane.xlu0 %2268 }
0x128c   :  { %3749 = vrcp.f32 %v2269_v26 }
0x1292   :  { %v3750_v29 = vpop.eup %3749 }
0x1293   :  { %v2275_v32 = vmul.f32 %v3750_v29, %v3746_v4  ;;  %v2272_v42 = vpop.xlane.xlu2 %2271 }
0x1294   :  { %3751 = vrcp.f32 %v2272_v42  ;;  %v2696_v42 = vld [vmem:[#allocation5 + $0x1f8] sm:$0xff] }
0x1295   :  { %3517 = vmatmul.msk.f32.vlgmr.msra.gmra.mxu1 %vm493_vm1, %v2275_v32 }
0x129a   :  { %v3752_v33 = vpop.eup %3751 }
0x129b   :  { %v2276_v35 = vmul.f32 %v3752_v33, %v3748_v16  ;;  %v2695_v33 = vld [vmem:[#allocation5 + $0x1f0] sm:$0xff] }
0x129d   :  { %3518 = vmatmul.msk.f32.vlgmr.msrb.gmra.mxu2 %vm493_vm1, %v2276_v35  ;;  %3526 = vmatmul.msk.f32.vlgmr.msrb.gmra.mxu1 %vm152_vm0, %v4728_v2  ;;  %v2694_v35 = vld [vmem:[#allocation5 + $0x1e8] sm:$0xff] }
0x12a5   :  { %3527 = vmatmul.msk.f32.gmra.mxu1 %vm152_vm0, %v4735_v31  ;;  %3529 = vmatmul.msk.f32.vlgmr.msra.gmra.mxu2 %vm152_vm0, %v4728_v2 }
0x12ad   :  { %3530 = vmatmul.msk.f32.gmra.mxu2 %vm152_vm0, %v4735_v31 }
0x1312   :  { %v2297_v39 = vpop.f32.mrf.mxu1 }
0x1313   :  { %3521 = vmatmul.msk.f32.vlgmr.msra.gmra.mxu3 %vm438_vm14, %v2297_v39  ;;  %v2729_v39 = vld [vmem:[#allocation7 + $0x1d8] sm:$0xff] }
0x131a   :  { %v2415_v45 = vpop.f32.mrf.mxu1 }
0x131b   :  { %v2416_v50 = vadd.f32 %v3667_v48, %v2415_v45  ;;  %v2726_v45 = vld [vmem:[#allocation7 + $0x1c0] sm:$0xff] }
0x1320   :  { %v2320_v30 = vpop.f32.mrf.mxu2 }
0x1321   :  { %3522 = vmatmul.msk.f32.gmra.mxu3 %vm438_vm14, %v2320_v30  ;;  %v2728_v30 = vld [vmem:[#allocation7 + $0x1d0] sm:$0xff] }
0x1322   :  { %v2418_v52 = vpop.f32.mrf.mxu1 }
0x1323   :  { %v2419_v43 = vadd.f32 %v3667_v48, %v2418_v52 }
0x1328   :  { %v2452_v49 = vpop.f32.mrf.mxu2 }
0x1329   :  { %v2453_v59 = vadd.f32 %v3668_v6, %v2452_v49  ;;  %3532 = vmatmul.msk.f32.vlgmr.msrb.gmra.mxu3 %vm152_vm0, %v4728_v2  ;;  %v3541_v49 = vld [vmem:[%s5242_s13 + $0x68] sm:$0xff] }
0x132a   :  { %2640 = vmatpush.msra.mxu3 %v3541_v49 }
0x132b   :  { %3534 = vmatpush.xpose.msk.msrb.mxu0 %vm438_vm14, %v2453_v59 }
0x132e   :  { %3535 = vmatmul.msk.f32.vlgmr.msrb.gmra.mxu0 %vm438_vm14, %v2416_v50 }
0x1330   :  { %v2455_v51 = vpop.f32.mrf.mxu2 }
0x1331   :  { %v2456_v21 = vadd.f32 %v3668_v6, %v2455_v51  ;;  %3533 = vmatmul.msk.f32.gmra.mxu3 %vm152_vm0, %v4735_v31  ;;  %v2727_v6 = vld [vmem:[#allocation7 + $0x1c8] sm:$0xff] }
0x1333   :  { %3536 = vmatpush.xpose.msk.msra.mxu0 %vm438_vm14, %v2456_v21 }
0x1336   :  { %3537 = vmatmul.msk.f32.vlgmr.msra.gmra.mxu0 %vm438_vm14, %v2419_v43 }
0x1337   :  { %2673 = vmatpush.msrb.mxu0 %v2659_v53  ;;  %v3540_v53 = vld [vmem:[%s5242_s13 + $0x60] sm:$0xff] }
0x1338   :  { %2641 = vmatpush.msra.mxu3 %v3540_v53 }
0x1339   :  { %2674 = vmatpush.msrb.mxu0 %v2658_v56  ;;  %v3671_v56 = vld [vmem:[%s5239_s10 + $0x7] ss:$0 sm:$0xff] }
0x133b   :  { %2675 = vmatpush.msrb.mxu0 %v2657_v57 }
0x133d   :  { %2676 = vmatpush.msrb.mxu0 %v2656_v62 }
0x133f   :  { %2677 = vmatpush.msrb.mxu0 %v2655_v0 }
0x1341   :  { %2678 = vmatpush.msrb.mxu0 %v2654_v54  ;;  %v3670_v54 = vld [vmem:[%s5237_s8 + $0x7] ss:$0 sm:$0xff] }
0x1343   :  { %2679 = vmatpush.msrb.mxu0 %v2653_v61 }
0x1345   :  { %2680 = vmatpush.msrb.mxu0 %v2652_v1  ;;  %v3672_v1 = vld [vmem:[%s5241_s12 + $0x7] ss:$0 sm:$0xff] }
0x1346   :  { %3545 = vmatmul.msk.f32.vlgmr.msrb.gmra.mxu0 %vm152_vm0, %v4728_v2 }
0x134e   :  { %3546 = vmatmul.msk.f32.gmra.mxu0 %vm152_vm0, %v4735_v31 }
0x1396   :  { %v4847_v4 = vpop.f32.mrf.mxu3 }
0x13a4   :  { %v2352_v10 = vpop.f32.mrf.mxu3 }
0x13a5   :  { %v4849_v16 = vadd.f32 %v2381_v7, %v2352_v10 }
0x13ab   :  { %v2518_v12 = vpop.f32.mrf.mxu0 }
0x13ac   :  { %v2547_v58 = vsel %vm270_vm15, %v2518_v12, -1e+30  ;;  %v2489_v13 = vpop.f32.mrf.mxu3 }
0x13ad   :  { %v2490_v14 = vadd.f32 %v3669_v11, %v2489_v13  ;;  %v2549_v55 = vsel %vm493_vm1, %v2547_v58, -inf }
0x13ae   :  { %2550 = vmax.xlane.f32.xlu1 %v2549_v55  ;;  %v2379_v55 = vadd.f32 %v4845_v3, %v4847_v4 }
0x13af   :  { %2589 = vmatpush.msra.mxu1 %v2490_v14 }
0x13b1   :  { %2710 = vmatpush.msrb.mxu1 %v2696_v42 }
0x13b3   :  { %v2544_v5 = vpop.f32.mrf.mxu0  ;;  %2711 = vmatpush.msrb.mxu1 %v2695_v33 }
0x13b4   :  { %v2548_v60 = vsel %vm270_vm15, %v2544_v5, -1e+30  ;;  %v2492_v63 = vpop.f32.mrf.mxu3 }
0x13b5   :  { %v2493_v17 = vadd.f32 %v3669_v11, %v2492_v63  ;;  %v2552_v18 = vsel %vm493_vm1, %v2548_v60, -inf  ;;  %2712 = vmatpush.msrb.mxu1 %v2694_v35 }
0x13b6   :  { %2553 = vmax.xlane.f32.xlu2 %v2552_v18 }
0x13b7   :  { %2612 = vmatpush.msrb.mxu2 %v2493_v17  ;;  %2713 = vmatpush.msrb.mxu1 %v2693_v37 }
0x13b9   :  { %2714 = vmatpush.msrb.mxu1 %v2692_v47  ;;  %2747 = vmatpush.msra.mxu2 %v2733_v38 }
0x13bb   :  { %2715 = vmatpush.msrb.mxu1 %v2691_v25  ;;  %2748 = vmatpush.msra.mxu2 %v2732_v15 }
0x13bd   :  { %2716 = vmatpush.msrb.mxu1 %v2690_v40  ;;  %2749 = vmatpush.msra.mxu2 %v2731_v41  ;;  %v3559_v40 = vld [vmem:[%s5242_s13 + $0x70] sm:$0xff] }
0x13bf   :  { %2717 = vmatpush.msrb.mxu1 %v2689_v9  ;;  %2750 = vmatpush.msra.mxu2 %v2730_v44 }
0x13c1   :  { %2751 = vmatpush.msra.mxu2 %v2729_v39 }
0x13c3   :  { %2752 = vmatpush.msra.mxu2 %v2728_v30  ;;  %v3673_v30 = vld [vmem:[%s5243_s14 + $0x1] ss:$0 sm:$0xff] }
0x13c5   :  { %2753 = vmatpush.msra.mxu2 %v2727_v6 }
0x13c7   :  { %2754 = vmatpush.msra.mxu2 %v2726_v45 }
0x1421   :  { %v2551_v19 = vpop.xlane.xlu1 %2550 }
0x1422   :  { %v2555_v20 = vsub.f32 %v2547_v58, %v2551_v19 }
0x1424   :  { %v2557_v22 = vmul.f32 1.442695, %v2555_v20 }
0x1426   :  { %3753 = vpow2.f32 %v2557_v22 }
0x1429   :  { %v2554_v23 = vpop.xlane.xlu2 %2553 }
0x142a   :  { %v2556_v36 = vsub.f32 %v2548_v60, %v2554_v23 }
0x142c   :  { %v3754_v24 = vpop.eup %3753  ;;  %v2559_v26 = vmul.f32 1.442695, %v2556_v36 }
0x142d   :  { %v2561_v27 = vsel %vm493_vm1, %v3754_v24, 0.0 }
0x142e   :  { %3755 = vpow2.f32 %v2559_v26  ;;  %2562 = vadd.xlane.f32.xlu0 %v2561_v27 }
0x1434   :  { %v3756_v29 = vpop.eup %3755 }
0x1435   :  { %v2564_v32 = vsel %vm493_vm1, %v3756_v29, 0.0 }
0x1436   :  { %2565 = vadd.xlane.f32.xlu1 %v2564_v32 }
0x14a1   :  { %v2563_v48 = vpop.xlane.xlu0 %2562 }
0x14a2   :  { %3757 = vrcp.f32 %v2563_v48 }
0x14a8   :  { %v3758_v59 = vpop.eup %3757 }
0x14a9   :  { %v2569_v50 = vmul.f32 %v3758_v59, %v3754_v24  ;;  %v2566_v51 = vpop.xlane.xlu1 %2565 }
0x14aa   :  { %3759 = vrcp.f32 %v2566_v51 }
0x14ab   :  { %3538 = vmatmul.msk.f32.vlgmr.msra.gmra.mxu1 %vm493_vm1, %v2569_v50 }
0x14b0   :  { %v3760_v52 = vpop.eup %3759 }
0x14b1   :  { %v2570_v21 = vmul.f32 %v3760_v52, %v3756_v29 }
0x14b3   :  { %3539 = vmatmul.msk.f32.vlgmr.msrb.gmra.mxu2 %vm493_vm1, %v2570_v21  ;;  %3548 = vmatmul.msk.f32.vlgmr.msrb.gmra.mxu1 %vm152_vm0, %v4728_v2 }
0x14b4   :  { %2907 = vmatpush.msrb.mxu2 %v3560_v8 }
0x14b6   :  { %2908 = vmatpush.msrb.mxu2 %v3559_v40 }
0x14bb   :  { %3549 = vmatmul.msk.f32.gmra.mxu1 %vm152_vm0, %v4735_v31  ;;  %3551 = vmatmul.msk.f32.vlgmr.msra.gmra.mxu2 %vm152_vm0, %v4728_v2 }
0x14c3   :  { %3552 = vmatmul.msk.f32.gmra.mxu2 %vm152_vm0, %v4735_v31  ;;  %v2682_v31 = vpop.f32.mrf.mxu0 }
0x14c4   :  { %v2683_v7 = vadd.f32 %v3670_v54, %v2682_v31 }
0x14cb   :  { %v2685_v12 = vpop.f32.mrf.mxu0 }
0x14cc   :  { %v2686_v58 = vadd.f32 %v3670_v54, %v2685_v12  ;;  %v3581_v54 = vld [vmem:[%s5246_s17 + $0xf8] sm:$0xff]  ;;  %v3575_v12 = vld [vmem:[%s5246_s17 + $0xc8] sm:$0xff] }
0x1528   :  { %v2591_v43 = vpop.f32.mrf.mxu1 }
0x1529   :  { %3542 = vmatmul.msk.f32.vlgmr.msra.gmra.mxu3 %vm438_vm14, %v2591_v43 }
0x1530   :  { %v2719_v57 = vpop.f32.mrf.mxu1 }
0x1531   :  { %v2720_v62 = vadd.f32 %v3671_v56, %v2719_v57 }
0x1533   :  { %3553 = vmatpush.xpose.msk.msrb.mxu3 %vm438_vm14, %v2720_v62 }
0x1536   :  { %v2614_v2 = vpop.f32.mrf.mxu2 }
0x1537   :  { %3543 = vmatmul.msk.f32.gmra.mxu3 %vm438_vm14, %v2614_v2 }
0x1538   :  { %v2722_v0 = vpop.f32.mrf.mxu1 }
0x1539   :  { %v2723_v61 = vadd.f32 %v3671_v56, %v2722_v0  ;;  %v3580_v0 = vld [vmem:[%s5246_s17 + $0xf0] sm:$0xff] }
0x153b   :  { %3555 = vmatpush.xpose.msk.msra.mxu3 %vm438_vm14, %v2723_v61  ;;  %v3578_v61 = vld [vmem:[%s5246_s17 + $0xe0] sm:$0xff] }
0x153e   :  { %v2756_v10 = vpop.f32.mrf.mxu2 }
0x153f   :  { %v2757_v11 = vadd.f32 %v3672_v1, %v2756_v10  ;;  %3554 = vmatmul.msk.f32.vlgmr.msrb.gmra.mxu3 %vm438_vm14, %v2683_v7  ;;  %v3576_v7 = vld [vmem:[%s5246_s17 + $0xd0] sm:$0xff]  ;;  %v3577_v10 = vld [vmem:[%s5246_s17 + $0xd8] sm:$0xff] }
0x1540   :  { %3023 = vmatpush.msrb.mxu3 %v3580_v0 }
0x1541   :  { %2856 = vmatpush.msra.mxu0 %v2757_v11  ;;  %v3574_v11 = vld [vmem:[%s5246_s17 + $0xc0] sm:$0xff] }
0x1542   :  { %3024 = vmatpush.msrb.mxu3 %v3578_v61  ;;  %v3617_v61 = vld [vmem:[%s5248_s19 + $0x1d0] sm:$0xff] }
0x1543   :  { %3046 = vmatpush.msrb.mxu0 %v3581_v54  ;;  %v3604_v54 = vld [vmem:[%s5248_s19 + $0x168] sm:$0xff] }
0x1544   :  { %3025 = vmatpush.msrb.mxu3 %v3576_v7 }
0x1546   :  { %v2759_v13 = vpop.f32.mrf.mxu2  ;;  %3026 = vmatpush.msrb.mxu3 %v3574_v11 }
0x1547   :  { %v2760_v14 = vadd.f32 %v3672_v1, %v2759_v13  ;;  %3556 = vmatmul.msk.f32.vlgmr.msra.gmra.mxu3 %vm438_vm14, %v2686_v58  ;;  %v3579_v1 = vld [vmem:[%s5246_s17 + $0xe8] sm:$0xff]  ;;  %v3572_v58 = vld [vmem:[%s5246_s17 + $0xb0] sm:$0xff]  ;;  %v3573_v13 = vld [vmem:[%s5246_s17 + $0xb8] sm:$0xff] }
0x1548   :  { %3047 = vmatpush.msrb.mxu0 %v3579_v1  ;;  %3027 = vmatpush.msrb.mxu3 %v3572_v58  ;;  %v3616_v58 = vld [vmem:[%s5248_s19 + $0x1c8] sm:$0xff] }
0x1549   :  { %2879 = vmatpush.msra.mxu1 %v2760_v14  ;;  %v3570_v14 = vld [vmem:[%s5246_s17 + $0xa0] sm:$0xff] }
0x154a   :  { %3048 = vmatpush.msrb.mxu0 %v3577_v10  ;;  %3028 = vmatpush.msrb.mxu3 %v3570_v14 }
0x154c   :  { %3049 = vmatpush.msrb.mxu0 %v3575_v12  ;;  %v3603_v12 = vld [vmem:[%s5248_s19 + $0x160] sm:$0xff] }
0x154e   :  { %3050 = vmatpush.msrb.mxu0 %v3573_v13 }
0x15ac   :  { %v2643_v5 = vpop.f32.mrf.mxu3 }
0x15ad   :  { %v2649_v60 = vadd.f32 %v2643_v5, %v2379_v55  ;;  %v3571_v55 = vld [vmem:[%s5246_s17 + $0xa8] sm:$0xff]  ;;  %v3568_v5 = vld [vmem:[%s5246_s17 + $0x90] sm:$0xff] }
0x15ae   :  { %3051 = vmatpush.msrb.mxu0 %v3571_v55  ;;  %3029 = vmatpush.msrb.mxu3 %v3568_v5 }
0x15ba   :  { %v2646_v63 = vpop.f32.mrf.mxu3 }
0x15bb   :  { %v2650_v17 = vadd.f32 %v2646_v63, %v4849_v16  ;;  %v3566_v63 = vld [vmem:[%s5246_s17 + $0x80] sm:$0xff] }
0x15bc   :  { %3030 = vmatpush.msrb.mxu3 %v3566_v63  ;;  %v3615_v63 = vld [vmem:[%s5248_s19 + $0x1c0] sm:$0xff] }
0x15c2   :  { %v2785_v18 = vpop.f32.mrf.mxu3 }
0x15c3   :  { %v2814_v19 = vsel %vm270_vm15, %v2785_v18, -1e+30 }
0x15c4   :  { %v2816_v20 = vsel %vm493_vm1, %v2814_v19, -inf }
0x15c5   :  { %2817 = vmax.xlane.f32.xlu2 %v2816_v20 }
0x15ca   :  { %v2811_v22 = vpop.f32.mrf.mxu3 }
0x15cb   :  { %v2815_v23 = vsel %vm270_vm15, %v2811_v22, -1e+30 }
0x15cc   :  { %v2819_v36 = vsel %vm493_vm1, %v2815_v23, -inf }
0x15cd   :  { %2820 = vmax.xlane.f32.xlu0 %v2819_v36 }
0x1638   :  { %v2818_v3 = vpop.xlane.xlu2 %2817 }
0x1639   :  { %v2822_v4 = vsub.f32 %v2814_v19, %v2818_v3 }
0x163b   :  { %v2824_v24 = vmul.f32 1.442695, %v2822_v4 }
0x163d   :  { %3761 = vpow2.f32 %v2824_v24 }
0x1640   :  { %v2821_v26 = vpop.xlane.xlu0 %2820 }
0x1641   :  { %v2823_v16 = vsub.f32 %v2815_v23, %v2821_v26 }
0x1643   :  { %v3762_v27 = vpop.eup %3761  ;;  %v2826_v29 = vmul.f32 1.442695, %v2823_v16 }
0x1644   :  { %v2828_v32 = vsel %vm493_vm1, %v3762_v27, 0.0 }
0x1645   :  { %3763 = vpow2.f32 %v2826_v29  ;;  %2829 = vadd.xlane.f32.xlu1 %v2828_v32 }
0x164b   :  { %v3764_v42 = vpop.eup %3763 }
0x164c   :  { %v2831_v33 = vsel %vm493_vm1, %v3764_v42, 0.0 }
0x164d   :  { %2832 = vadd.xlane.f32.xlu2 %v2831_v33 }
0x16b8   :  { %v2830_v35 = vpop.xlane.xlu1 %2829 }
0x16b9   :  { %3765 = vrcp.f32 %v2830_v35  ;;  %v3675_v35 = vld [vmem:[%s5245_s16 + $0x1] ss:$0 sm:$0xff] }
0x16bf   :  { %v3766_v37 = vpop.eup %3765 }
0x16c0   :  { %v2836_v47 = vmul.f32 %v3766_v37, %v3762_v27  ;;  %v2833_v38 = vpop.xlane.xlu2 %2832 }
0x16c1   :  { %3767 = vrcp.f32 %v2833_v38 }
0x16c2   :  { %3557 = vmatmul.msk.f32.vlgmr.msra.gmra.mxu0 %vm493_vm1, %v2836_v47 }
0x16c7   :  { %v3768_v25 = vpop.eup %3767 }
0x16c8   :  { %v2837_v15 = vmul.f32 %v3768_v25, %v3764_v42  ;;  %v3674_v42 = vld [vmem:[%s5244_s15 + $0x1] ss:$0 sm:$0xff] }
0x16ca   :  { %3558 = vmatmul.msk.f32.vlgmr.msra.gmra.mxu1 %vm493_vm1, %v2837_v15 }
0x173f   :  { %v2858_v41 = vpop.f32.mrf.mxu0 }
0x1740   :  { %3561 = vmatmul.msk.f32.vlgmr.msrb.gmra.mxu2 %vm438_vm14, %v2858_v41 }
0x1747   :  { %v2881_v9 = vpop.f32.mrf.mxu1 }
0x1748   :  { %3562 = vmatmul.msk.f32.gmra.mxu2 %vm438_vm14, %v2881_v9 }
0x17c3   :  { %v2910_v44 = vpop.f32.mrf.mxu2 }
0x17c4   :  { %v2916_v39 = vadd.f32 %v2910_v44, %v2649_v60  ;;  %v3569_v60 = vld [vmem:[%s5246_s17 + $0x98] sm:$0xff] }
0x17c5   :  { %3052 = vmatpush.msrb.mxu0 %v3569_v60  ;;  %v3602_v60 = vld [vmem:[%s5248_s19 + $0x158] sm:$0xff] }
0x17c6   :  { %v2918_v6 = vadd.f32 %v2916_v39, %v4696_v34 }
0x17c8   :  { %v4918_v45 = vadd.f32 %v3673_v30, %v2918_v6 }
0x17ca   :  { %v2931_v48 = vsel %vm152_vm0, %v4918_v45, 0.0 }
0x17cb   :  { %2932 = vadd.xlane.f32.xlu0 %v2931_v48  ;;  %v2913_v49 = vpop.f32.mrf.mxu2  ;;  %v3622_v48 = vld [vmem:[%s5248_s19 + $0x1f8] sm:$0xff] }
0x17cc   :  { %v2917_v59 = vadd.f32 %v2913_v49, %v2650_v17  ;;  %v3567_v17 = vld [vmem:[%s5246_s17 + $0x88] sm:$0xff]  ;;  %3298 = vmatpush.msra.mxu2 %v3622_v48 }
0x17cd   :  { %3053 = vmatpush.msrb.mxu0 %v3567_v17 }
0x17ce   :  { %v2919_v50 = vadd.f32 %v2917_v59, %v4701_v28  ;;  %v3621_v59 = vld [vmem:[%s5248_s19 + $0x1f0] sm:$0xff] }
0x17cf   :  { %3299 = vmatpush.msra.mxu2 %v3621_v59 }
0x17d0   :  { %v4923_v51 = vadd.f32 %v3673_v30, %v2919_v50  ;;  %v3582_v30 = vld [vmem:[%s5247_s18 + $0x2] sm:$0x3] }
0x17d1   :  { %v3006_v6 = vperm.slane %v3582_v30, 1 }
0x17d2   :  { %v2934_v52 = vsel %vm152_vm0, %v4923_v51, 0.0 }
0x17d3   :  { %2935 = vadd.xlane.f32.xlu1 %v2934_v52  ;;  %v3620_v52 = vld [vmem:[%s5248_s19 + $0x1e8] sm:$0xff] }
0x17d4   :  { %3300 = vmatpush.msra.mxu2 %v3620_v52  ;;  %v3611_v52 = vld [vmem:[%s5248_s19 + $0x1a0] sm:$0xff] }
0x183e   :  { %v2933_v21 = vpop.xlane.xlu0 %2932 }
0x183f   :  { %v2937_v53 = vmul.f32 %v2933_v21, %v4115_v46 }
0x1841   :  { %v4929_v34 = vsub.f32 %v4918_v45, %v2937_v53  ;;  %v3005_v53 = vperm.slane %v3582_v30, 0  ;;  %v3598_v30 = vld [vmem:[%s5248_s19 + $0x138] sm:$0xff] }
0x1843   :  { %v2941_v43 = vmul.f32 %v4929_v34, %v4929_v34 }
0x1845   :  { %v2943_v56 = vsel %vm152_vm0, %v2941_v43, 0.0  ;;  %v3619_v43 = vld [vmem:[%s5248_s19 + $0x1e0] sm:$0xff] }
0x1846   :  { %2944 = vadd.xlane.f32.xlu2 %v2943_v56  ;;  %v2936_v57 = vpop.xlane.xlu1 %2935  ;;  %3301 = vmatpush.msra.mxu2 %v3619_v43 }
0x1847   :  { %v2938_v28 = vmul.f32 %v2936_v57, %v4115_v46 }
0x1849   :  { %v4936_v62 = vsub.f32 %v4923_v51, %v2938_v28  ;;  %v3605_v28 = vld [vmem:[%s5248_s19 + $0x170] sm:$0xff] }
0x184b   :  { %v2942_v2 = vmul.f32 %v4936_v62, %v4936_v62 }
0x184d   :  { %v2946_v31 = vsel %vm152_vm0, %v2942_v2, 0.0 }
0x184e   :  { %2947 = vadd.xlane.f32.xlu0 %v2946_v31 }
0x18b9   :  { %v2945_v18 = vpop.xlane.xlu2 %2944 }
0x18ba   :  { %v2949_v19 = vmul.f32 %v2945_v18, %v4115_v46 }
0x18bc   :  { %v2951_v20 = vadd.f32 1e-05, %v2949_v19 }
0x18be   :  { %3769 = vrsqrt.f32 %v2951_v20  ;;  %vm2959_vm15 = vweird.f32 %v2951_v20 }
0x18c1   :  { %v2948_v22 = vpop.xlane.xlu0 %2947 }
0x18c2   :  { %v2950_v23 = vmul.f32 %v2948_v22, %v4115_v46 }
0x18c4   :  { %v3770_v36 = vpop.eup %3769  ;;  %v2952_v3 = vadd.f32 1e-05, %v2950_v23  ;;  %v3601_v23 = vld [vmem:[%s5248_s19 + $0x150] sm:$0xff] }
0x18c5   :  { %v2954_v4 = vmul.f32 %v3770_v36, %v2951_v20  ;;  %vm2960_vm14 = vweird.f32 %v3770_v36 }
0x18c6   :  { %3771 = vrsqrt.f32 %v2952_v3  ;;  %vm2961_vm1 = vmor %vm2959_vm15, %vm2960_vm14  ;;  %vm2969_vm7 = vweird.f32 %v2952_v3 }
0x18c7   :  { %v2955_v24 = vmul.f32 %v3770_v36, %v2954_v4 }
0x18c9   :  { %v2956_v26 = vmul.f32 0.5, %v2955_v24 }
0x18cb   :  { %v2957_v16 = vsub.f32 1.5, %v2956_v26 }
0x18cc   :  { %v3772_v27 = vpop.eup %3771 }
0x18cd   :  { %v2958_v29 = vmul.f32 %v3770_v36, %v2957_v16  ;;  %v2964_v32 = vmul.f32 %v3772_v27, %v2952_v3  ;;  %vm2970_vm6 = vweird.f32 %v3772_v27 }
0x18ce   :  { %vm2971_vm8 = vmor %vm2969_vm7, %vm2970_vm6 }
0x18cf   :  { %v2962_v33 = vsel %vm2961_vm1, %v3770_v36, %v2958_v29  ;;  %v2965_v8 = vmul.f32 %v3772_v27, %v2964_v32  ;;  %v3614_v36 = vld [vmem:[%s5248_s19 + $0x1b8] sm:$0xff]  ;;  %v3600_v29 = vld [vmem:[%s5248_s19 + $0x148] sm:$0xff] }
0x18d0   :  { %v2973_v37 = vmul.f32 %v2962_v33, %v4929_v34  ;;  %v3606_v34 = vld [vmem:[%s5248_s19 + $0x178] sm:$0xff] }
0x18d1   :  { %v2966_v47 = vmul.f32 0.5, %v2965_v8  ;;  %3275 = vmatpush.msrb.mxu1 %v3606_v34  ;;  %v3613_v8 = vld [vmem:[%s5248_s19 + $0x1b0] sm:$0xff] }
0x18d2   :  { %v2978_v38 = vmul.f32 %v3674_v42, %v2973_v37 }
0x18d3   :  { %v2967_v25 = vsub.f32 1.5, %v2966_v47  ;;  %3276 = vmatpush.msrb.mxu1 %v3605_v28 }
0x18d4   :  { %v2983_v15 = vadd.f32 %v3675_v35, %v2978_v38 }
0x18d5   :  { %v2968_v40 = vmul.f32 %v3772_v27, %v2967_v25  ;;  %3277 = vmatpush.msrb.mxu1 %v3604_v54 }
0x18d6   :  { %3583 = vmatmul.msk.f32.vlgmr.msrb.gmra.mxu3 %vm152_vm0, %v2983_v15  ;;  %3585 = vmatmul.msk.f32.vlgmr.msrb.gmra.mxu0 %vm152_vm0, %v2983_v15 }
0x18d7   :  { %v2972_v41 = vsel %vm2971_vm8, %v3772_v27, %v2968_v40  ;;  %3278 = vmatpush.msrb.mxu1 %v3603_v12 }
0x18d8   :  { %v2974_v9 = vmul.f32 %v2972_v41, %v4936_v62  ;;  %v3618_v62 = vld [vmem:[%s5248_s19 + $0x1d8] sm:$0xff] }
0x18d9   :  { %3302 = vmatpush.msra.mxu2 %v3618_v62  ;;  %3279 = vmatpush.msrb.mxu1 %v3602_v60 }
0x18da   :  { %v2979_v44 = vmul.f32 %v3674_v42, %v2974_v9 }
0x18db   :  { %3303 = vmatpush.msra.mxu2 %v3617_v61  ;;  %3280 = vmatpush.msrb.mxu1 %v3601_v23  ;;  %v3608_v23 = vld [vmem:[%s5248_s19 + $0x188] sm:$0xff] }
0x18dc   :  { %v2984_v39 = vadd.f32 %v3675_v35, %v2979_v44  ;;  %v3599_v44 = vld [vmem:[%s5248_s19 + $0x140] sm:$0xff] }
0x18dd   :  { %3304 = vmatpush.msra.mxu2 %v3616_v58  ;;  %3281 = vmatpush.msrb.mxu1 %v3600_v29 }
0x18de   :  { %3584 = vmatmul.msk.f32.gmra.mxu3 %vm152_vm0, %v2984_v39  ;;  %3586 = vmatmul.msk.f32.gmra.mxu0 %vm152_vm0, %v2984_v39  ;;  %v3612_v39 = vld [vmem:[%s5248_s19 + $0x1a8] sm:$0xff] }
0x18df   :  { %3305 = vmatpush.msra.mxu2 %v3615_v63  ;;  %3282 = vmatpush.msrb.mxu1 %v3599_v44  ;;  %v3591_v44 = vld [vmem:[%s5248_s19 + $0x100] sm:$0xff] }
0x18e1   :  { %3306 = vmatpush.msra.mxu2 %v3614_v36  ;;  %3283 = vmatpush.msrb.mxu1 %v3598_v30 }
0x18e3   :  { %3307 = vmatpush.msra.mxu2 %v3613_v8 }
0x18e5   :  { %3308 = vmatpush.msra.mxu2 %v3612_v39 }
0x18e7   :  { %3309 = vmatpush.msra.mxu2 %v3611_v52 }
0x1953   :  { %v3055_v49 = vpop.f32.mrf.mxu0 }
0x1954   :  { %v5012_v50 = vadd.f32 %v3055_v49, %v3006_v6 }
0x1956   :  { %v5018_v21 = vmul.f32 0.70710677, %v5012_v50 }
0x1958   :  { %v3109_v56 = vmul.f32 %v5018_v21, %v5018_v21 }
0x1959   :  { %v3032_v57 = vpop.f32.mrf.mxu3 }
0x195a   :  { %v5034_v2 = vmin.f32 %v3109_v56, 16.0  ;;  %v5036_v31 = vadd.f32 %v3032_v57, %v3005_v53  ;;  %v3597_v56 = vld [vmem:[%s5248_s19 + $0x130] sm:$0xff]  ;;  %v3610_v57 = vld [vmem:[%s5248_s19 + $0x198] sm:$0xff] }
0x195b   :  { %v3058_v0 = vpop.f32.mrf.mxu0  ;;  %3284 = vmatpush.msrb.mxu1 %v3597_v56  ;;  %3310 = vmatpush.msra.mxu2 %v3610_v57 }
0x195c   :  { %v3111_v1 = vmul.f32 2.1237322e-06, %v5034_v2  ;;  %v3122_v7 = vmul.f32 3.8918573e-05, %v5034_v2  ;;  %v5046_v10 = vadd.f32 %v3058_v0, %v3006_v6  ;;  %v5049_v11 = vmul.f32 0.70710677, %v5036_v31 }
0x195e   :  { %v3112_v13 = vadd.f32 0.00028619796, %v3111_v1  ;;  %v3123_v14 = vadd.f32 0.001143296, %v3122_v7  ;;  %v3069_v55 = vmul.f32 %v5049_v11, %v5049_v11  ;;  %v5060_v5 = vmul.f32 0.70710677, %v5046_v10 }
0x195f   :  { %v3596_v1 = vld [vmem:[%s5248_s19 + $0x128] sm:$0xff]  ;;  %v3609_v7 = vld [vmem:[%s5248_s19 + $0x190] sm:$0xff] }
0x1960   :  { %v3113_v17 = vmul.f32 %v3112_v13, %v5034_v2  ;;  %v3124_v18 = vmul.f32 %v3123_v14, %v5034_v2  ;;  %v5070_v19 = vmin.f32 %v3069_v55, 16.0  ;;  %v3189_v20 = vmul.f32 %v5060_v5, %v5060_v5  ;;  %3285 = vmatpush.msrb.mxu1 %v3596_v1  ;;  %3311 = vmatpush.msra.mxu2 %v3609_v7 }
0x1961   :  { %v3035_v22 = vpop.f32.mrf.mxu3 }
0x1962   :  { %v3114_v3 = vadd.f32 0.0036580483, %v3113_v17  ;;  %v3125_v4 = vadd.f32 0.014752088, %v3124_v18  ;;  %v5080_v24 = vadd.f32 %v3035_v22, %v3005_v53  ;;  %v3071_v26 = vmul.f32 2.1237322e-06, %v5070_v19  ;;  %3312 = vmatpush.msra.mxu2 %v3608_v23 }
0x1963   :  { %v3082_v16 = vmul.f32 3.8918573e-05, %v5070_v19  ;;  %v5084_v27 = vmin.f32 %v3189_v20, 16.0  ;;  %v3595_v22 = vld [vmem:[%s5248_s19 + $0x120] sm:$0xff] }
0x1964   :  { %v3115_v32 = vmul.f32 %v3114_v3, %v5034_v2  ;;  %v3126_v42 = vmul.f32 %v3125_v4, %v5034_v2  ;;  %v5092_v33 = vmul.f32 0.70710677, %v5080_v24  ;;  %v3072_v35 = vadd.f32 0.00028619796, %v3071_v26  ;;  %v3594_v3 = vld [vmem:[%s5248_s19 + $0x118] sm:$0xff]  ;;  %v3607_v4 = vld [vmem:[%s5248_s19 + $0x180] sm:$0xff]  ;;  %3286 = vmatpush.msrb.mxu1 %v3595_v22 }
0x1965   :  { %v3083_v37 = vadd.f32 0.001143296, %v3082_v16  ;;  %v3191_v47 = vmul.f32 2.1237322e-06, %v5084_v27  ;;  %v3202_v25 = vmul.f32 3.8918573e-05, %v5084_v27  ;;  %3313 = vmatpush.msra.mxu2 %v3607_v4 }
0x1966   :  { %v3127_v38 = vadd.f32 0.112945676, %v3126_v42  ;;  %v3149_v15 = vmul.f32 %v5092_v33, %v5092_v33  ;;  %v3073_v40 = vmul.f32 %v3072_v35, %v5070_v19  ;;  %v3116_v6 = vadd.f32 0.05243302, %v3115_v32  ;;  %v3593_v42 = vld [vmem:[%s5248_s19 + $0x110] sm:$0xff]  ;;  %3287 = vmatpush.msrb.mxu1 %v3594_v3 }
0x1967   :  { %v3084_v41 = vmul.f32 %v3083_v37, %v5070_v19  ;;  %v3192_v9 = vadd.f32 0.00028619796, %v3191_v47  ;;  %v3203_v49 = vadd.f32 0.001143296, %v3202_v25 }
0x1968   :  { %v3128_v48 = vmul.f32 %v3127_v38, %v5034_v2  ;;  %v5113_v59 = vmin.f32 %v3149_v15, 16.0  ;;  %v3074_v53 = vadd.f32 0.0036580483, %v3073_v40  ;;  %v3117_v12 = vmul.f32 %v3116_v6, %v5034_v2  ;;  %v3592_v38 = vld [vmem:[%s5248_s19 + $0x108] sm:$0xff]  ;;  %3288 = vmatpush.msrb.mxu1 %v3593_v42 }
0x1969   :  { %v3085_v34 = vadd.f32 0.014752088, %v3084_v41  ;;  %v3193_v43 = vmul.f32 %v3192_v9, %v5084_v27  ;;  %v3204_v62 = vmul.f32 %v3203_v49, %v5084_v27 }
0x196a   :  { %v3129_v28 = vadd.f32 0.4994258, %v3128_v48  ;;  %v3151_v0 = vmul.f32 2.1237322e-06, %v5113_v59  ;;  %v3162_v61 = vmul.f32 3.8918573e-05, %v5113_v59  ;;  %v3075_v14 = vmul.f32 %v3074_v53, %v5070_v19  ;;  %3289 = vmatpush.msrb.mxu1 %v3592_v38 }
0x196b   :  { %v3086_v54 = vmul.f32 %v3085_v34, %v5070_v19  ;;  %v3205_v13 = vadd.f32 0.014752088, %v3204_v62  ;;  %v3194_v60 = vadd.f32 0.0036580483, %v3193_v43  ;;  %v3118_v26 = vadd.f32 0.18741608, %v3117_v12 }
0x196c   :  { %v3130_v58 = vmul.f32 %v3129_v28, %v5034_v2  ;;  %v3163_v63 = vadd.f32 0.001143296, %v3162_v61  ;;  %v3152_v20 = vadd.f32 0.00028619796, %v3151_v0  ;;  %v3076_v29 = vadd.f32 0.05243302, %v3075_v14  ;;  %3290 = vmatpush.msrb.mxu1 %v3591_v44 }
0x196d   :  { %v3087_v55 = vadd.f32 0.112945676, %v3086_v54  ;;  %v3206_v18 = vmul.f32 %v3205_v13, %v5084_v27  ;;  %v3195_v8 = vmul.f32 %v3194_v60, %v5084_v27  ;;  %v3119_v25 = vmul.f32 %v3118_v26, %v5034_v2 }
0x196e   :  { %v5138_v17 = vadd.f32 1.0, %v3130_v58  ;;  %v3164_v16 = vmul.f32 %v3163_v63, %v5113_v59  ;;  %v3153_v37 = vmul.f32 %v3152_v20, %v5113_v59  ;;  %v3077_v41 = vmul.f32 %v3076_v29, %v5070_v19 }
0x196f   :  { %v3088_v36 = vmul.f32 %v3087_v55, %v5070_v19  ;;  %v3207_v35 = vadd.f32 0.112945676, %v3206_v18  ;;  %v3196_v30 = vadd.f32 0.05243302, %v3195_v8  ;;  %v3120_v52 = vadd.f32 1.1283791, %v3119_v25 }
0x1970   :  { %3773 = vrcp.f32 %v5138_v17  ;;  %v3165_v40 = vadd.f32 0.014752088, %v3164_v16  ;;  %v3154_v48 = vadd.f32 0.0036580483, %v3153_v37  ;;  %v3078_v34 = vadd.f32 0.18741608, %v3077_v41 }
0x1971   :  { %v3089_v32 = vadd.f32 0.4994258, %v3088_v36  ;;  %v3208_v15 = vmul.f32 %v3207_v35, %v5084_v27  ;;  %v3141_v57 = vand.u32 2147483647, %v5138_v17  ;;  %v3143_v28 = vand.u32 2147483648, %v5138_v17 }
0x1972   :  { %v3166_v49 = vmul.f32 %v3165_v40, %v5113_v59  ;;  %v3197_v62 = vmul.f32 %v3196_v30, %v5084_v27  ;;  %v3155_v0 = vmul.f32 %v3154_v48, %v5113_v59  ;;  %vm3137_vm9 = vweird.f32 %v5138_v17 }
0x1973   :  { %v3090_v47 = vmul.f32 %v3089_v32, %v5070_v19  ;;  %v3209_v6 = vadd.f32 0.4994258, %v3208_v15  ;;  %v3079_v58 = vmul.f32 %v3078_v34, %v5070_v19  ;;  %v3121_v13 = vmul.f32 %v3120_v52, %v5018_v21 }
0x1974   :  { %v3167_v56 = vadd.f32 0.112945676, %v3166_v49  ;;  %v3144_v14 = vor.u32 1.1754944e-38, %v3143_v28  ;;  %v3198_v60 = vadd.f32 0.18741608, %v3197_v62  ;;  %vm3142_vm11 = vcmp.eq.f32.partialorder %v3141_v57, 8.507059e+37 }
0x1975   :  { %v5168_v9 = vadd.f32 1.0, %v3090_v47  ;;  %v3210_v43 = vmul.f32 %v3209_v6, %v5084_v27  ;;  %v3156_v18 = vadd.f32 0.05243302, %v3155_v0  ;;  %v3080_v3 = vadd.f32 1.1283791, %v3079_v58 }
0x1976   :  { %v3774_v39 = vpop.eup %3773  ;;  %v3168_v1 = vmul.f32 %v3167_v56, %v5113_v59  ;;  %v3199_v26 = vmul.f32 %v3198_v60, %v5084_v27  ;;  %v3062_v8 = vmul.f32 0.5, %v5012_v50 }
0x1977   :  { %v3133_v2 = vmul.f32 %v3774_v39, %v5138_v17  ;;  %3775 = vrcp.f32 %v5168_v9  ;;  %vm3138_vm0 = vweird.f32 %v3774_v39  ;;  %v5181_v61 = vadd.f32 1.0, %v3210_v43 }
0x1978   :  { %vm3139_vm10 = vmor %vm3137_vm9, %vm3138_vm0  ;;  %v3169_v20 = vadd.f32 0.4994258, %v3168_v1  ;;  %v3103_v17 = vand.u32 2147483648, %v5168_v9  ;;  %v3101_v21 = vand.u32 2147483647, %v5168_v9  ;;  %v3157_v32 = vmul.f32 %v3156_v18, %v5113_v59 }
0x1979   :  { %v3134_v53 = vsub.f32 1.0, %v3133_v2  ;;  %3777 = vrcp.f32 %v5181_v61  ;;  %vm3097_vm13 = vweird.f32 %v5168_v9  ;;  %v3081_v38 = vmul.f32 %v3080_v3, %v5049_v11 }
0x197a   :  { %v3170_v19 = vmul.f32 %v3169_v20, %v5113_v59  ;;  %v3104_v25 = vor.u32 1.1754944e-38, %v3103_v17  ;;  %vm3102_vm3 = vcmp.eq.f32.partialorder %v3101_v21, 8.507059e+37  ;;  %v3200_v27 = vadd.f32 1.1283791, %v3199_v26  ;;  %v3676_v17 = vld [vmem:[%s5249_s20 + $0x1] ss:$0 sm:$0xff] }
0x197b   :  { %v3135_v54 = vmul.f32 %v3774_v39, %v3134_v53  ;;  %v3158_v50 = vadd.f32 0.18741608, %v3157_v32  ;;  %vm3217_vm5 = vweird.f32 %v5181_v61  ;;  %v3061_v2 = vmul.f32 0.5, %v5036_v31 }
0x197c   :  { %v3171_v42 = vadd.f32 1.0, %v3170_v19  ;;  %v3201_v52 = vmul.f32 %v3200_v27, %v5060_v5  ;;  %v3064_v5 = vmul.f32 0.5, %v5046_v10  ;;  %vm3328_vm0 = vcmask 1041409  }
0x197d   :  { %v3776_v7 = vpop.eup %3775  ;;  %v3136_v12 = vadd.f32 %v3774_v39, %v3135_v54  ;;  %v3159_v34 = vmul.f32 %v3158_v50, %v5113_v59  ;;  %vm3331_vm9 = vcmask 517120  }
0x197e   :  { %v3093_v55 = vmul.f32 %v3776_v7, %v5168_v9  ;;  %vm3098_vm12 = vweird.f32 %v3776_v7  ;;  %3779 = vrcp.f32 %v3171_v42  ;;  %v3221_v9 = vand.u32 2147483647, %v5181_v61 }
0x197f   :  { %v3140_v63 = vsel %vm3139_vm10, %v3774_v39, %v3136_v12  ;;  %v3778_v16 = vpop.eup %3777  ;;  %vm3099_vm2 = vmor %vm3097_vm13, %vm3098_vm12  ;;  %v3223_v39 = vand.u32 2147483648, %v5181_v61  ;;  %v3160_v1 = vadd.f32 1.1283791, %v3159_v34  ;;  %v3181_v12 = vand.u32 2147483647, %v3171_v42 }
0x1980   :  { %v3145_v22 = vsel %vm3142_vm11, %v3144_v14, %v3140_v63  ;;  %v3094_v23 = vsub.f32 1.0, %v3093_v55  ;;  %v3213_v37 = vmul.f32 %v3778_v16, %v5181_v61  ;;  %vm3218_vm4 = vweird.f32 %v3778_v16 }
0x1981   :  { %v3146_v36 = vmul.f32 %v3145_v22, %v3121_v13  ;;  %vm3219_vm14 = vmor %vm3217_vm5, %vm3218_vm4  ;;  %v3224_v53 = vor.u32 1.1754944e-38, %v3223_v39  ;;  %vm3222_vm15 = vcmp.eq.f32.partialorder %v3221_v9, 8.507059e+37  ;;  %vm3177_vm6 = vweird.f32 %v3171_v42 }
0x1982   :  { %v3095_v4 = vmul.f32 %v3776_v7, %v3094_v23  ;;  %v3214_v40 = vsub.f32 1.0, %v3213_v37  ;;  %v3161_v14 = vmul.f32 %v3160_v1, %v5092_v33  ;;  %vm3182_vm8 = vcmp.eq.f32.partialorder %v3181_v12, 8.507059e+37 }
0x1983   :  { %v3588_v29 = vclamps-f32 %v3146_v36, 1.0  ;;  %v3063_v22 = vmul.f32 0.5, %v5080_v24 }
0x1984   :  { %v3096_v35 = vadd.f32 %v3776_v7, %v3095_v4  ;;  %v3215_v6 = vmul.f32 %v3778_v16, %v3214_v40  ;;  %v3780_v49 = vpop.eup %3779 }
0x1985   :  { %v3230_v47 = vadd.f32 1.0, %v3588_v29  ;;  %v3173_v57 = vmul.f32 %v3780_v49, %v3171_v42  ;;  %vm3178_vm1 = vweird.f32 %v3780_v49 }
0x1986   :  { %v3100_v15 = vsel %vm3099_vm2, %v3776_v7, %v3096_v35  ;;  %v3216_v11 = vadd.f32 %v3778_v16, %v3215_v6  ;;  %v3183_v7 = vand.u32 2147483648, %v3171_v42  ;;  %vm3179_vm7 = vmor %vm3177_vm6, %vm3178_vm1 }
0x1987   :  { %v3234_v41 = vmul.f32 %v3230_v47, %v3062_v8  ;;  %v3105_v44 = vsel %vm3102_vm3, %v3104_v25, %v3100_v15  ;;  %v3174_v54 = vsub.f32 1.0, %v3173_v57 }
0x1988   :  { %v3106_v30 = vmul.f32 %v3105_v44, %v3081_v38  ;;  %v3220_v56 = vsel %vm3219_vm14, %v3778_v16, %v3216_v11  ;;  %v3184_v13 = vor.u32 1.1754944e-38, %v3183_v7 }
0x1989   :  { %3314 = vmatmul.f32.vlgmr.msra.gmra.mxu2 %v3234_v41  ;;  %v3225_v28 = vsel %vm3222_vm15, %v3224_v53, %v3220_v56  ;;  %v3175_v61 = vmul.f32 %v3780_v49, %v3174_v54  ;;  %v3678_v56 = vld [vmem:[%s5251_s22] ss:$0 sm:$0xff] }
0x198a   :  { %v3587_v48 = vclamps-f32 %v3106_v30, 1.0  ;;  %v3226_v0 = vmul.f32 %v3225_v28, %v3201_v52 }
0x198b   :  { %v3176_v58 = vadd.f32 %v3780_v49, %v3175_v61 }
0x198c   :  { %v3229_v43 = vadd.f32 1.0, %v3587_v48  ;;  %v3590_v31 = vclamps-f32 %v3226_v0, 1.0 }
0x198d   :  { %v3180_v55 = vsel %vm3179_vm7, %v3780_v49, %v3176_v58 }
0x198e   :  { %v3233_v62 = vmul.f32 %v3229_v43, %v3061_v2  ;;  %v3232_v59 = vadd.f32 1.0, %v3590_v31  ;;  %v3185_v63 = vsel %vm3182_vm8, %v3184_v13, %v3180_v55  ;;  %v3677_v2 = vld [vmem:[%s5250_s21] ss:$0 sm:$0xff] }
0x198f   :  { %v3186_v18 = vmul.f32 %v3185_v63, %v3161_v14 }
0x1990   :  { %3291 = vmatmul.f32.vlgmr.msrb.gmra.mxu1 %v3233_v62  ;;  %v3236_v60 = vmul.f32 %v3232_v59, %v3064_v5 }
0x1991   :  { %v3589_v20 = vclamps-f32 %v3186_v18, 1.0 }
0x1992   :  { %3317 = vmatmul.f32.gmra.mxu2 %v3236_v60 }
0x1993   :  { %v3231_v23 = vadd.f32 1.0, %v3589_v20 }
0x1995   :  { %v3235_v36 = vmul.f32 %v3231_v23, %v3063_v22 }
0x1998   :  { %3294 = vmatmul.f32.gmra.mxu1 %v3235_v36 }
0x1a0c   :  { %v3315_v3 = vpop.f32.mrf.mxu2 }
0x1a0d   :  { %v3292_v10 = vpop.f32.mrf.mxu1 }
0x1a0e   :  { %v3293_v19 = vadd.f32 %v3676_v17, %v3292_v10 }
0x1a10   :  { %v3316_v26 = vadd.f32 %v3315_v3, %v3293_v19 }
0x1a12   :  { %v3321_v24 = vadd.f32 %v3316_v26, %v4918_v45 }
0x1a15   :  { %v3295_v33 = vpop.f32.mrf.mxu1  ;;  %v3318_v21 = vpop.f32.mrf.mxu2 }
0x1a16   :  { %v3296_v4 = vadd.f32 %v3676_v17, %v3295_v33 }
0x1a18   :  { %v3319_v16 = vadd.f32 %v3318_v21, %v3296_v4 }
0x1a1a   :  { %v3322_v29 = vadd.f32 %v3319_v16, %v4923_v51 }
0x1a1c   :  { %v3327_v32 = vrot.slane %v3322_v29, 7 }
0x1a1e   :  { %v3329_v42 = vsel %vm3328_vm0, %v3327_v32, %v3321_v24 }
0x1a1f   :  { %v3332_v8 = vsel %vm3331_vm9, %v3329_v42, 0.0 }
0x1a20   :  { %3333 = vadd.xlane.f32.xlu1 %v3332_v8 }
0x1a93   :  { %v3334_v35 = vpop.xlane.xlu1 %3333 }
0x1a94   :  { %v3335_v37 = vmul.f32 %v3334_v35, %v4115_v46 }
0x1a96   :  { %v3337_v47 = vrot.slane %v3335_v37, 1  ;;  %v3340_v38 = vsub.f32 %v3321_v24, %v3335_v37 }
0x1a98   :  { %v3341_v25 = vsub.f32 %v3322_v29, %v3337_v47  ;;  %v3342_v27 = vmul.f32 %v3340_v38, %v3340_v38 }
0x1a9a   :  { %v3343_v15 = vmul.f32 %v3341_v25, %v3341_v25 }
0x1a9c   :  { %v3346_v40 = vrot.slane %v3343_v15, 7 }
0x1a9e   :  { %v3347_v51 = vsel %vm3328_vm0, %v3346_v40, %v3342_v27 }
0x1a9f   :  { %v3349_v45 = vsel %vm3331_vm9, %v3347_v51, 0.0 }
0x1aa0   :  { %3350 = vadd.xlane.f32.xlu2 %v3349_v45 }
0x1b13   :  { %v3351_v41 = vpop.xlane.xlu2 %3350 }
0x1b14   :  { %v3352_v44 = vmul.f32 %v3351_v41, %v4115_v46 }
0x1b16   :  { %v3353_v39 = vadd.f32 1e-05, %v3352_v44 }
0x1b18   :  { %3781 = vrsqrt.f32 %v3353_v39  ;;  %vm3360_vm11 = vweird.f32 %v3353_v39 }
0x1b1e   :  { %v3782_v50 = vpop.eup %3781 }
0x1b1f   :  { %v3355_v30 = vmul.f32 %v3782_v50, %v3353_v39  ;;  %vm3361_vm10 = vweird.f32 %v3782_v50 }
0x1b20   :  { %vm3362_vm12 = vmor %vm3360_vm11, %vm3361_vm10 }
0x1b21   :  { %v3356_v6 = vmul.f32 %v3782_v50, %v3355_v30 }
0x1b23   :  { %v3357_v9 = vmul.f32 0.5, %v3356_v6 }
0x1b25   :  { %v3358_v48 = vsub.f32 1.5, %v3357_v9 }
0x1b27   :  { %v3359_v11 = vmul.f32 %v3782_v50, %v3358_v48 }
0x1b29   :  { %v3363_v49 = vsel %vm3362_vm12, %v3782_v50, %v3359_v11 }
0x1b2a   :  { %v3365_v52 = vrot.slane %v3363_v49, 1  ;;  %v3368_v53 = vmul.f32 %v3363_v49, %v3340_v38 }
0x1b2c   :  { %v3369_v34 = vmul.f32 %v3365_v52, %v3341_v25  ;;  %v3373_v46 = vmul.f32 %v3677_v2, %v3368_v53 }
0x1b2e   :  { %v3374_v43 = vmul.f32 %v3677_v2, %v3369_v34  ;;  %v3378_v28 = vadd.f32 %v3678_v56, %v3373_v46 }
0x1b30   :  { %v3379_v57 = vadd.f32 %v3678_v56, %v3374_v43 }
0x1b32   :  { %v3382_v62 = vrot.slane %v3379_v57, 7 }
0x1b34   :  { %v3383_v0 = vsel %vm3328_vm0, %v3382_v62, %v3378_v28 }
0x1b35   :  { %3385 = vst.msk [vmem:[#allocation8] sm:$0x3] %vm3331_vm9, %v3383_v0 }
0x1b36   :  { %3396 = dma.vmem_to_hbm [thread:$0]  %s3392_s29, 32, %s3394_s4, [#allocation4]  }
0x1b37   :  { %3883 = dma.done.wait [#allocation4], 32  }
0x1b38   :  { %3884 = vsyncadd [#allocation4], 4294967264 }
0x1b39   :  { %3401 = vsyncpa [#allocation3], 1 }
0x1b3a   :  { %3402 = vsyncpa [#allocation6], 1 }
0x1b3b   :  { %3403 = vsyncpa [#allocation4], 1 }

</bundles_post_ra>
